<compile_context>
chip_gen: v6e
topology: v6e:2x2x1
jax: 0.10.0
libtpu: 0.0.40
codegen_flags: <defaults>
</compile_context>

<pallas_src>
import math
import functools

import jax
import jax.numpy as jnp
from jax import lax
from jax.experimental import pallas as pl
from jax.experimental.pallas import tpu as pltpu


# ---------------------------------------------------------------------------
# Small helpers
# ---------------------------------------------------------------------------

def _vmem_capacity_bytes():
    """Best-effort VMEM capacity query (used only to pick block-size targets)."""
    try:
        return int(pltpu.get_tpu_info().vmem_capacity_bytes)
    except Exception:
        return 128 << 20


def _mosaic_params(block_bytes, semantics):
    """Right-size the VMEM limit to ~2x the live blocks + headroom (review item)."""
    vmem_limit = int(min(max(2 * block_bytes + (4 << 20), 12 << 20), 48 << 20))
    return pltpu.CompilerParams(dimension_semantics=tuple(semantics),
                                vmem_limit_bytes=vmem_limit)


def _choose_flat_tile(H, W, P, target_bytes, max_sel_bytes=1 << 20):
    """Pick TH so the flattened spatial tile TH*W is lane-aligned (multiple of
    128) or covers the whole H*W axis.  Returns (None, None) if no reasonable
    lane-dense tiling exists (rare; handled by a fallback path)."""
    S = H * W
    m = 128 // math.gcd(W, 128)          # smallest TH making TH*W % 128 == 0

    def ok(th):
        tile = th * W
        return (P * tile * 4 <= target_bytes) and (th * tile * 2 <= max_sel_bytes)

    if ok(H):                             # single tile: TILE == H*W is always legal
        return H, S
    if m <= H and ok(m):
        th = m
        while th + m <= H and ok(th + m):
            th += m
        return th, th * W
    return None, None


def _choose_tile_h_masked(H, W, C, target_bytes):
    """H tile (multiple of 8) for the masked path, plus the padded H it implies."""
    if C * H * W * 4 <= target_bytes or H <= 8:
        return H, H
    th = max(8, (target_bytes // (C * W * 4)) // 8 * 8)
    if th >= H:
        return H, H
    n = math.ceil(H / th)
    th = min(th, math.ceil(math.ceil(H / n) / 8) * 8)   # balance tiles, less padding
    h_pad = math.ceil(H / th) * th
    return th, h_pad


def _expand_with_onehot(slab_f32, sel_bf16):
    """Lane-dense expansion of a small f32 slab through a 0/1 one-hot matrix.

    Each output column of `sel_bf16` has exactly one nonzero, so splitting the
    slab into bf16 hi/lo parts and doing two native bf16 MXU matmuls reproduces
    the f32 values to ~4e-6 regardless of the default matmul precision."""
    hi = slab_f32.astype(jnp.bfloat16)
    lo = (slab_f32 - hi.astype(jnp.float32)).astype(jnp.bfloat16)
    out = jnp.dot(hi, sel_bf16, preferred_element_type=jnp.float32)
    return out + jnp.dot(lo, sel_bf16, preferred_element_type=jnp.float32)


# ---------------------------------------------------------------------------
# Kernels
# ---------------------------------------------------------------------------

def _sine_nomask_kernel(inv_ref, ph_ref, selr_ref, selc_ref, out_ref, *,
                        tile_h, width, y_scale, x_scale):
    """Separable no-mask path, lane-dense flattened output.

    inv_ref, ph_ref : (P, 1) f32       1/dim_t and the sin/cos phase per channel
    selr_ref        : (TH, TH*W) bf16  selr[r, j] = (j // W == r)
    selc_ref        : (W,  TH*W) bf16  selc[c, j] = (j %  W == c)
    out_ref         : (P, TH*W)        one channel half (y if half==0, x if half==1)
    """
    inv = inv_ref[...]                    # (P, 1)
    ph = ph_ref[...]                      # (P, 1)
    half = pl.program_id(0)
    row0 = pl.program_id(1) * tile_h

    @pl.when(half == 0)
    def _():
        # pos_y depends only on the row index: P*TH transcendentals.
        rows = (lax.broadcasted_iota(jnp.int32, (1, tile_h), 1)
                + (row0 + 1)).astype(jnp.float32)
        slab = jnp.sin(rows * (inv * y_scale) + ph)                    # (P, TH)
        out_ref[...] = _expand_with_onehot(slab, selr_ref[...]).astype(out_ref.dtype)

    @pl.when(half == 1)
    def _():
        # pos_x depends only on the column index: P*W transcendentals.
        cols = (lax.broadcasted_iota(jnp.int32, (1, width), 1)
                + 1).astype(jnp.float32)
        slab = jnp.sin(cols * (inv * x_scale) + ph)                    # (P, W)
        out_ref[...] = _expand_with_onehot(slab, selc_ref[...]).astype(out_ref.dtype)


def _sine_masked_kernel(inv_ref, ph_ref, tril_ref, triu_ref, nm_ref, out_ref, *,
                        tile_h, normalize, scale):
    """Masked path (mask destroys separability, so sins cover the full tile).

    inv_ref, ph_ref : (P, 1, 1) f32
    tril_ref        : (TH, H_pad) bf16   rows of the lower-triangular ones
    triu_ref        : (W, W) bf16        upper-triangular ones
    nm_ref          : (1, H_pad, W) bf16 not_mask for this batch (zero-padded rows)
    out_ref         : (1, 2P, TH, W)
    """
    # TODO(synk): lane-dense flattening is not applied here; with a mask the
    # embeddings are not separable and flattening would need an in-kernel relayout.
    P = inv_ref.shape[0]
    row0 = pl.multiple_of(pl.program_id(1) * tile_h, 8)
    nm_full = nm_ref[0]                                   # (H_pad, W) bf16
    nm_rows = nm_ref[0, pl.ds(row0, tile_h), :]           # (TH, W) bf16, in-bounds

    # Prefix sums via MXU, bf16 operands with f32 accumulation (exact for 0/1).
    y_emb = jnp.dot(tril_ref[...], nm_full, preferred_element_type=jnp.float32)
    x_emb = jnp.dot(nm_rows, triu_ref[...], preferred_element_type=jnp.float32)

    if normalize:
        eps = 1e-6
        col_tot = jnp.sum(nm_full.astype(jnp.float32), axis=0, keepdims=True)  # (1, W)
        row_tot = jnp.sum(nm_rows.astype(jnp.float32), axis=1, keepdims=True)  # (TH, 1)
        y_emb = y_emb * (pl.reciprocal(col_tot + eps, approx=True) * scale)
        x_emb = x_emb * (pl.reciprocal(row_tot + eps, approx=True) * scale)

    inv = inv_ref[...]                                    # (P, 1, 1)
    ph = ph_ref[...]
    out_ref[0, :P] = jnp.sin(y_emb[None, :, :] * inv + ph).astype(out_ref.dtype)
    out_ref[0, P:] = jnp.sin(x_emb[None, :, :] * inv + ph).astype(out_ref.dtype)


# ---------------------------------------------------------------------------
# pallas_call wrappers
# ---------------------------------------------------------------------------

def _nomask_flat_forward(H, W, C, P, inv_dim_t, phase, y_scale, x_scale,
                         out_dtype, th, tile):
    S = H * W
    n_t = pl.cdiv(S, tile)
    j = jnp.arange(tile, dtype=jnp.int32)
    selr = (j[None, :] // W == jnp.arange(th, dtype=jnp.int32)[:, None]
            ).astype(jnp.bfloat16)                        # (TH, TILE)
    selc = (j[None, :] % W == jnp.arange(W, dtype=jnp.int32)[:, None]
            ).astype(jnp.bfloat16)                        # (W, TILE)

    kernel = functools.partial(_sine_nomask_kernel, tile_h=th, width=W,
                               y_scale=y_scale, x_scale=x_scale)
    block_bytes = (P * tile * jnp.dtype(out_dtype).itemsize
                   + th * tile * 2 + W * tile * 2 + 4 * P * 4)

    out = pl.pallas_call(
        kernel,
        out_shape=jax.ShapeDtypeStruct((C, S), out_dtype),
        grid_spec=pltpu.PrefetchScalarGridSpec(
            num_scalar_prefetch=0,
            grid=(2, n_t),                                 # (channel half, spatial tile)
            in_specs=[
                pl.BlockSpec((P, 1), lambda h, t: (0, 0)),
                pl.BlockSpec((P, 1), lambda h, t: (0, 0)),
                pl.BlockSpec((th, tile), lambda h, t: (0, 0)),
                pl.BlockSpec((W, tile), lambda h, t: (0, 0)),
            ],
            out_specs=pl.BlockSpec((P, tile), lambda h, t: (h, t)),
        ),
        compiler_params=_mosaic_params(block_bytes, ("parallel", "parallel")),
    )(inv_dim_t.reshape(P, 1), phase.reshape(P, 1), selr, selc)
    return out.reshape(C, H, W)                            # free: same contiguous bytes


def _masked_forward(mask, C, P, inv_dim_t, phase, normalize, scale, out_dtype,
                    target_bytes):
    mask_b = mask.astype(bool)
    B, H, W = mask_b.shape
    th, h_pad = _choose_tile_h_masked(H, W, C, target_bytes)
    n_th = h_pad // th

    not_mask = (~mask_b).astype(jnp.bfloat16)
    if h_pad > H:                                          # zero-padded rows are harmless
        not_mask = jnp.pad(not_mask, ((0, 0), (0, h_pad - H), (0, 0)))
    r = jnp.arange(h_pad, dtype=jnp.int32)
    tril = (r[:, None] >= r[None, :]).astype(jnp.bfloat16)       # (H_pad, H_pad)
    c = jnp.arange(W, dtype=jnp.int32)
    triu = (c[:, None] <= c[None, :]).astype(jnp.bfloat16)       # (W, W)

    kernel = functools.partial(_sine_masked_kernel, tile_h=th,
                               normalize=normalize, scale=float(scale))
    block_bytes = (C * th * W * jnp.dtype(out_dtype).itemsize
                   + h_pad * W * 2 + th * h_pad * 2 + W * W * 2 + 4 * P * 4)

    pos = pl.pallas_call(
        kernel,
        out_shape=jax.ShapeDtypeStruct((B, C, H, W), out_dtype),
        grid_spec=pltpu.PrefetchScalarGridSpec(
            num_scalar_prefetch=0,
            grid=(B, n_th),
            in_specs=[
                pl.BlockSpec((P, 1, 1), lambda b, t: (0, 0, 0)),
                pl.BlockSpec((P, 1, 1), lambda b, t: (0, 0, 0)),
                pl.BlockSpec((th, h_pad), lambda b, t: (t, 0)),
                pl.BlockSpec((W, W), lambda b, t: (0, 0)),
                pl.BlockSpec((1, h_pad, W), lambda b, t: (b, 0, 0)),
            ],
            out_specs=pl.BlockSpec((1, C, th, W), lambda b, t: (b, 0, t, 0)),
        ),
        compiler_params=_mosaic_params(block_bytes, ("parallel", "parallel")),
    )(inv_dim_t.reshape(P, 1, 1), phase.reshape(P, 1, 1), tril, triu, not_mask)
    return pos


def position_embedding_sine(x, mask=None, *, num_pos_feats=64, temperature=10000,
                            normalize=False, scale=None, out_dtype=jnp.float32,
                            block_target_bytes=None):
    """JAX/Pallas equivalent of PositionEmbeddingSine.forward.

    x    : (B, C, H, W) array (only its shape is used, as in the PyTorch module)
    mask : optional (B, H, W) boolean array (True == padded)
    returns (B, 2*num_pos_feats, H, W) NCHW, matching PyTorch (float32 by default).
    """
    if scale is not None and normalize is False:
        raise ValueError('normalize should be True if scale is passed')
    if scale is None:
        scale = 2 * math.pi

    B, _, H, W = x.shape
    P = num_pos_feats
    C = 2 * P

    # Per-channel constants (hoisted, computed once):
    #   out[c] = sin(embed * inv_dim_t[c] + phase[c]),  phase = pi/2 on odd channels.
    cidx = jnp.arange(P, dtype=jnp.float32)
    dim_t = jnp.power(jnp.asarray(float(temperature), jnp.float32),
                      2.0 * jnp.floor(cidx / 2.0) / P)
    inv_dim_t = 1.0 / dim_t
    phase = (cidx % 2.0) * (math.pi / 2.0)

    if block_target_bytes is None:
        # ~4 MiB blocks on 64 MiB (v7x) parts, ~8 MiB on 128 MiB (v5e/v6e) parts.
        block_target_bytes = (8 << 20) if _vmem_capacity_bytes() >= (96 << 20) \
            else (4 << 20)

    if mask is None:
        # Batch-invariant: compute once, broadcast over B (lazy under jit).
        y_scale = float(scale) / (H + 1e-6) if normalize else 1.0
        x_scale = float(scale) / (W + 1e-6) if normalize else 1.0
        if P % 8 == 0:
            th, tile = _choose_flat_tile(H, W, P, block_target_bytes)
        else:
            th, tile = None, None
        if th is not None:
            pos = _nomask_flat_forward(H, W, C, P, inv_dim_t, phase,
                                       y_scale, x_scale, out_dtype, th, tile)
            return jnp.broadcast_to(pos[None], (B, C, H, W))
        # Rare fallback (awkward lane alignment / tiny block budget / P % 8 != 0):
        # reuse the masked kernel with a single all-valid mask, then broadcast.
        zero_mask = jnp.zeros((1, H, W), dtype=bool)
        pos = _masked_forward(zero_mask, C, P, inv_dim_t, phase, normalize, scale,
                              out_dtype, block_target_bytes)
        return jnp.broadcast_to(pos, (B, C, H, W))

    return _masked_forward(mask, C, P, inv_dim_t, phase, normalize, scale,
                           out_dtype, block_target_bytes)


# ---------------------------------------------------------------------------
# Pure-JAX reference (correctness check only)
# ---------------------------------------------------------------------------

def _reference(x, mask=None, num_pos_feats=64, temperature=10000,
               normalize=False, scale=None):
    if scale is None:
        scale = 2 * math.pi
    B, _, H, W = x.shape
    if mask is None:
        mask = jnp.zeros((B, H, W), dtype=bool)
    not_mask = (~mask).astype(jnp.float32)
    y_embed = jnp.cumsum(not_mask, axis=1)
    x_embed = jnp.cumsum(not_mask, axis=2)
    if normalize:
        eps = 1e-6
        y_embed = y_embed / (y_embed[:, -1:, :] + eps) * scale
        x_embed = x_embed / (x_embed[:, :, -1:] + eps) * scale
    dim_t = jnp.arange(num_pos_feats, dtype=jnp.float32)
    dim_t = temperature ** (2 * jnp.floor(dim_t / 2) / num_pos_feats)
    pos_x = x_embed[:, :, :, None] / dim_t
    pos_y = y_embed[:, :, :, None] / dim_t
    pos_x = jnp.stack((jnp.sin(pos_x[:, :, :, 0::2]),
                       jnp.cos(pos_x[:, :, :, 1::2])), axis=4).reshape(B, H, W, -1)
    pos_y = jnp.stack((jnp.sin(pos_y[:, :, :, 0::2]),
                       jnp.cos(pos_y[:, :, :, 1::2])), axis=4).reshape(B, H, W, -1)
    pos = jnp.concatenate((pos_y, pos_x), axis=3).transpose(0, 3, 1, 2)
    return pos


if __name__ == "__main__":
    key = jax.random.PRNGKey(0)
    B, Cin, H, W = 2, 4, 16, 16
    P = 64  # -> 128 output channels

    x = jax.random.normal(key, (B, Cin, H, W), dtype=jnp.float32)

    # 1) Common path: mask=None, normalize=False (separable, lane-dense kernel).
    pos = jax.block_until_ready(position_embedding_sine(x, mask=None, num_pos_feats=P))
    ref = _reference(x, None, P, 10000, False, None)
    assert pos.shape == (B, 2 * P, H, W) and pos.dtype == jnp.float32, pos.shape
    assert jnp.allclose(pos, ref, atol=1e-4, rtol=1e-4), \
        float(jnp.max(jnp.abs(pos - ref)))

    # 2) Masked path (DETR-style padding masks), non-normalized -> tight tolerance.
    H2, W2 = 16, 24
    x2 = jax.random.normal(jax.random.PRNGKey(1), (B, Cin, H2, W2), jnp.float32)
    rows2 = jnp.arange(H2)[None, :, None]
    cols2 = jnp.arange(W2)[None, None, :]
    mask2 = ~((rows2 < jnp.array([H2, 12])[:, None, None])
              & (cols2 < jnp.array([W2, 20])[:, None, None]))
    pos2 = jax.block_until_ready(
        position_embedding_sine(x2, mask2, num_pos_feats=P, normalize=False))
    ref2 = _reference(x2, mask2, P, 10000, False, None)
    assert pos2.shape == (B, 2 * P, H2, W2), pos2.shape
    assert jnp.allclose(pos2, ref2, atol=1e-4, rtol=1e-4), \
        float(jnp.max(jnp.abs(pos2 - ref2)))

    # 3) No-mask, normalized, with a tiny block budget to force spatial tiling
    #    plus a ragged last flattened tile.
    H3, W3 = 40, 24
    x3 = jax.random.normal(jax.random.PRNGKey(2), (B, Cin, H3, W3), jnp.float32)
    pos3 = jax.block_until_ready(position_embedding_sine(
        x3, None, num_pos_feats=P, normalize=True, block_target_bytes=128 * 1024))
    ref3 = _reference(x3, None, P, 10000, True, None)
    assert jnp.allclose(pos3, ref3, atol=1e-4, rtol=1e-4), \
        float(jnp.max(jnp.abs(pos3 - ref3)))

    # 4) Masked + normalized with forced H tiling (padded rows, in-kernel row slice).
    #    Loose tolerance: the normalize branch uses the approx EUP reciprocal.
    H4, W4 = 20, 24
    x4 = jax.random.normal(jax.random.PRNGKey(3), (B, Cin, H4, W4), jnp.float32)
    rows4 = jnp.arange(H4)[None, :, None]
    cols4 = jnp.arange(W4)[None, None, :]
    mask4 = ~((rows4 < jnp.array([H4, 14])[:, None, None])
              & (cols4 < jnp.array([W4, 18])[:, None, None]))
    pos4 = jax.block_until_ready(position_embedding_sine(
        x4, mask4, num_pos_feats=P, normalize=True, block_target_bytes=100 * 1024))
    ref4 = _reference(x4, mask4, P, 10000, True, None)
    assert jnp.allclose(pos4, ref4, atol=1e-2, rtol=0), \
        float(jnp.max(jnp.abs(pos4 - ref4)))

    # 5) No-mask fallback path (flat tiling rejected at a tiny block budget).
    H5, W5 = 16, 48
    x5 = jax.random.normal(jax.random.PRNGKey(4), (B, Cin, H5, W5), jnp.float32)
    pos5 = jax.block_until_ready(position_embedding_sine(
        x5, None, num_pos_feats=P, block_target_bytes=32 * 1024))
    ref5 = _reference(x5, None, P, 10000, False, None)
    assert jnp.allclose(pos5, ref5, atol=1e-4, rtol=1e-4), \
        float(jnp.max(jnp.abs(pos5 - ref5)))

    print("KERNEL_OK")
</pallas_src>

<mosaic_0001>
module attributes {stable_mosaic.version = 11 : i64} {
  func.func @_sine_nomask_kernel(%arg0: i32, %arg1: i32, %arg2: memref<64x1xf32, #tpu.memory_space<vmem>>, %arg3: memref<64x1xf32, #tpu.memory_space<vmem>>, %arg4: memref<16x256xbf16, #tpu.memory_space<vmem>>, %arg5: memref<16x256xbf16, #tpu.memory_space<vmem>>, %arg6: memref<64x256xf32, #tpu.memory_space<vmem>>) attributes {dimension_semantics = [#tpu.dimension_semantics<parallel>, #tpu.dimension_semantics<parallel>], iteration_bounds = array<i64: 2, 1>, scalar_prefetch = 0 : i64, scratch_operands = 0 : i64, tpu.core_type = #tpu.core_type<tc>, window_params = [{pipeline_mode = #tpu.pipeline_mode<synchronous>, transform_indices = @transform_0, window_bounds = array<i64: 64, 1>}, {pipeline_mode = #tpu.pipeline_mode<synchronous>, transform_indices = @transform_1, window_bounds = array<i64: 64, 1>}, {pipeline_mode = #tpu.pipeline_mode<synchronous>, transform_indices = @transform_2, window_bounds = array<i64: 16, 256>}, {pipeline_mode = #tpu.pipeline_mode<synchronous>, transform_indices = @transform_3, window_bounds = array<i64: 16, 256>}, {transform_indices = @transform_4, window_bounds = array<i64: 64, 256>}]} {
    %c0 = arith.constant 0 : index
    %c0_0 = arith.constant 0 : index
    %0 = vector.load %arg2[%c0, %c0_0] : memref<64x1xf32, #tpu.memory_space<vmem>>, vector<64x1xf32>
    %c0_1 = arith.constant 0 : index
    %c0_2 = arith.constant 0 : index
    %1 = vector.load %arg3[%c0_1, %c0_2] : memref<64x1xf32, #tpu.memory_space<vmem>>, vector<64x1xf32>
    %c16_i32 = arith.constant 16 : i32
    %2 = arith.muli %arg1, %c16_i32 : i32
    %c0_i32 = arith.constant 0 : i32
    %3 = arith.cmpi eq, %arg0, %c0_i32 : i32
    %4 = arith.extui %3 : i1 to i32
    %c0_i32_3 = arith.constant 0 : i32
    %5 = arith.cmpi ne, %4, %c0_i32_3 : i32
    scf.if %5 {
      %9 = tpu.iota {dimensions = array<i32: 1>} : vector<1x16xi32>
      %c1_i32_5 = arith.constant 1 : i32
      %10 = arith.addi %2, %c1_i32_5 : i32
      %11 = vector.broadcast %10 : i32 to vector<1x16xi32>
      %12 = arith.addi %9, %11 : vector<1x16xi32>
      %13 = arith.sitofp %12 : vector<1x16xi32> to vector<1x16xf32>
      %cst = arith.constant 1.000000e+00 : f32
      %14 = vector.broadcast %cst : f32 to vector<64x1xf32>
      %15 = arith.mulf %0, %14 : vector<64x1xf32>
      %16 = vector.broadcast %13 : vector<1x16xf32> to vector<64x16xf32>
      %17 = vector.broadcast %15 : vector<64x1xf32> to vector<64x16xf32>
      %18 = arith.mulf %16, %17 : vector<64x16xf32>
      %19 = vector.broadcast %1 : vector<64x1xf32> to vector<64x16xf32>
      %20 = arith.addf %18, %19 : vector<64x16xf32>
      %21 = math.sin %20 : vector<64x16xf32>
      %c0_6 = arith.constant 0 : index
      %c0_7 = arith.constant 0 : index
      %22 = vector.load %arg4[%c0_6, %c0_7] : memref<16x256xbf16, #tpu.memory_space<vmem>>, vector<16x256xbf16>
      %23 = arith.truncf %21 : vector<64x16xf32> to vector<64x16xbf16>
      %24 = arith.extf %23 : vector<64x16xbf16> to vector<64x16xf32>
      %25 = arith.subf %21, %24 : vector<64x16xf32>
      %26 = arith.truncf %25 : vector<64x16xf32> to vector<64x16xbf16>
      %cst_8 = arith.constant dense<0.000000e+00> : vector<64x256xf32>
      %27 = tpu.matmul %23, %22, %cst_8 {dimension_numbers = #tpu.dot_dimension_numbers<[1], [0], [0], [1], [0, 0, 1, 1], [], []>} : vector<64x16xbf16>, vector<16x256xbf16>, vector<64x256xf32> -> vector<64x256xf32>
      %cst_9 = arith.constant dense<0.000000e+00> : vector<64x256xf32>
      %28 = tpu.matmul %26, %22, %cst_9 {dimension_numbers = #tpu.dot_dimension_numbers<[1], [0], [0], [1], [0, 0, 1, 1], [], []>} : vector<64x16xbf16>, vector<16x256xbf16>, vector<64x256xf32> -> vector<64x256xf32>
      %29 = arith.addf %27, %28 : vector<64x256xf32>
      %c0_10 = arith.constant 0 : index
      %c0_11 = arith.constant 0 : index
      %30 = vector.load %arg6[%c0_10, %c0_11] : memref<64x256xf32, #tpu.memory_space<vmem>>, vector<64x256xf32>
      tpu.vector_store %arg6[%c0_10, %c0_11], %29 {strides = array<i32>} : memref<64x256xf32, #tpu.memory_space<vmem>>, vector<64x256xf32>,
    } else {
    }
    %c1_i32 = arith.constant 1 : i32
    %6 = arith.cmpi eq, %arg0, %c1_i32 : i32
    %7 = arith.extui %6 : i1 to i32
    %c0_i32_4 = arith.constant 0 : i32
    %8 = arith.cmpi ne, %7, %c0_i32_4 : i32
    scf.if %8 {
      %9 = tpu.iota {dimensions = array<i32: 1>} : vector<1x16xi32>
      %c1_i32_5 = arith.constant 1 : i32
      %10 = vector.broadcast %c1_i32_5 : i32 to vector<1x16xi32>
      %11 = arith.addi %9, %10 : vector<1x16xi32>
      %12 = arith.sitofp %11 : vector<1x16xi32> to vector<1x16xf32>
      %cst = arith.constant 1.000000e+00 : f32
      %13 = vector.broadcast %cst : f32 to vector<64x1xf32>
      %14 = arith.mulf %0, %13 : vector<64x1xf32>
      %15 = vector.broadcast %12 : vector<1x16xf32> to vector<64x16xf32>
      %16 = vector.broadcast %14 : vector<64x1xf32> to vector<64x16xf32>
      %17 = arith.mulf %15, %16 : vector<64x16xf32>
      %18 = vector.broadcast %1 : vector<64x1xf32> to vector<64x16xf32>
      %19 = arith.addf %17, %18 : vector<64x16xf32>
      %20 = math.sin %19 : vector<64x16xf32>
      %c0_6 = arith.constant 0 : index
      %c0_7 = arith.constant 0 : index
      %21 = vector.load %arg5[%c0_6, %c0_7] : memref<16x256xbf16, #tpu.memory_space<vmem>>, vector<16x256xbf16>
      %22 = arith.truncf %20 : vector<64x16xf32> to vector<64x16xbf16>
      %23 = arith.extf %22 : vector<64x16xbf16> to vector<64x16xf32>
      %24 = arith.subf %20, %23 : vector<64x16xf32>
      %25 = arith.truncf %24 : vector<64x16xf32> to vector<64x16xbf16>
      %cst_8 = arith.constant dense<0.000000e+00> : vector<64x256xf32>
      %26 = tpu.matmul %22, %21, %cst_8 {dimension_numbers = #tpu.dot_dimension_numbers<[1], [0], [0], [1], [0, 0, 1, 1], [], []>} : vector<64x16xbf16>, vector<16x256xbf16>, vector<64x256xf32> -> vector<64x256xf32>
      %cst_9 = arith.constant dense<0.000000e+00> : vector<64x256xf32>
      %27 = tpu.matmul %25, %21, %cst_9 {dimension_numbers = #tpu.dot_dimension_numbers<[1], [0], [0], [1], [0, 0, 1, 1], [], []>} : vector<64x16xbf16>, vector<16x256xbf16>, vector<64x256xf32> -> vector<64x256xf32>
      %28 = arith.addf %26, %27 : vector<64x256xf32>
      %c0_10 = arith.constant 0 : index
      %c0_11 = arith.constant 0 : index
      %29 = vector.load %arg6[%c0_10, %c0_11] : memref<64x256xf32, #tpu.memory_space<vmem>>, vector<64x256xf32>
      tpu.vector_store %arg6[%c0_10, %c0_11], %28 {strides = array<i32>} : memref<64x256xf32, #tpu.memory_space<vmem>>, vector<64x256xf32>,
    } else {
    }
    return
  }
  func.func @transform_0(%arg0: i32, %arg1: i32) -> (i32, i32) {
    %c0_i32 = arith.constant 0 : i32
    %c0_i32_0 = arith.constant 0 : i32
    %c0_i32_1 = arith.constant 0 : i32
    return %c0_i32, %c0_i32_0 : i32, i32
  }
  func.func @transform_1(%arg0: i32, %arg1: i32) -> (i32, i32) {
    %c0_i32 = arith.constant 0 : i32
    %c0_i32_0 = arith.constant 0 : i32
    %c0_i32_1 = arith.constant 0 : i32
    return %c0_i32, %c0_i32_0 : i32, i32
  }
  func.func @transform_2(%arg0: i32, %arg1: i32) -> (i32, i32) {
    %c0_i32 = arith.constant 0 : i32
    %c0_i32_0 = arith.constant 0 : i32
    %c0_i32_1 = arith.constant 0 : i32
    return %c0_i32, %c0_i32_0 : i32, i32
  }
  func.func @transform_3(%arg0: i32, %arg1: i32) -> (i32, i32) {
    %c0_i32 = arith.constant 0 : i32
    %c0_i32_0 = arith.constant 0 : i32
    %c0_i32_1 = arith.constant 0 : i32
    return %c0_i32, %c0_i32_0 : i32, i32
  }
  func.func @transform_4(%arg0: i32, %arg1: i32) -> (i32, i32) {
    %c0_i32 = arith.constant 0 : i32
    return %arg0, %arg1 : i32, i32
  }
}

</mosaic_0001>

<bundles_post_ra>
// kernel: tpu_custom_call.1
= control target key start
LH: loop header
LB: loop body
LE: loop exit
PB: predicated region body
PF: predicated region fallthrough
CT: control target
= control target key end

     0   :  { %9 = vsyncpa [#allocation3], 0  ;;  %s4670_s0 = inlined_call_operand.vmem [shape: f32[64,1], index: 0, kind: input, shape index: {}]   ;;  %s4671_s1 = inlined_call_operand.vmem [shape: f32[64,1], index: 1, kind: input, shape index: {}]   ;;  %s4672_s2 = inlined_call_operand.vmem [shape: bf16[16,256], index: 2, kind: input, shape index: {}]   ;;  %s4673_s3 = inlined_call_operand.vmem [shape: bf16[16,256], index: 3, kind: input, shape index: {}]   ;;  %s4674_s4 = inlined_call_operand.hbm [shape: f32[128,256], index: 4, kind: output, shape index: {}]  }
   0x1   :  { %11 = vsyncpa [#allocation3 + $0x1], 0  ;;  %s3036_s15 = smov 0   ;;  %s3038_s16 = smov 0  }
   0x2   :  { %s3040_s17 = smov 0   ;;  %s3042_s18 = smov 0  }
   0x3   :  { %s3044_s19 = smov 0   ;;  %s3046_s20 = smov 0  }
   0x4 LB: > { %s2608_s21 = sadd.s32 4294967295, %s2992_s20   ;;  %s2609_s22 = sadd.s32 4294967294, %s2992_s20   ;;  %s2992_s20 = sphi %s3046_s20, %s17_s20   ;;  %s2988_s19 = sphi %s3044_s19, %s4801_s19   ;;  %s2984_s18 = sphi %s3042_s18, %s4800_s18   ;;  %s2980_s17 = sphi %s3040_s17, %s4799_s17   ;;  %s2976_s16 = sphi %s3038_s16, %s4798_s16   ;;  %s2972_s15 = sphi %s3036_s15, %s4797_s15  }
   0x5   : > { %s29_s23 = sadd.s32 1, %s2988_s19  ;;  %s122_s24 = sadd.s32 1, %s2980_s17 }
   0x6   : > { %p31_p0 = scmp.ge.s32.totalorder %s29_s23, 2  ;;  %p132_p1 = scmp.ne.s32.totalorder %s2980_s17, %s2976_s16 }
   0x7   : > { %p133_p2 = scmp.eq.s32.totalorder %s2608_s21, 1  ;;  %p138_p3 = scmp.ne.s32.totalorder %s2976_s16, %s2972_s15 }
   0x8   : > { %s4803_s23 = smov (%p31_p0, %s29_s23), 0  ;;  %p139_p5 = scmp.eq.s32.totalorder %s2609_s22, 1 }
   0x9   : > { %p3076_p4 = por %p133_p2, %p132_p1  ;;  %s117_s26 = ssub.s32 %s2988_s19, %s4803_s23 }
   0xa   : > { %p2611_p6 = scmp.ge.s32.totalorder %s2992_s20, 1  ;;  %p120_p7 = scmp.eq.s32.totalorder %s117_s26, 0 }
   0xb   : > { %p3083_p8 = por %p139_p5, %p138_p3  ;;  %p169_p9 = scmp.lt.s32.totalorder %s2992_s20, 3 }
   0xc   : > { %s3089_s28 = scalar_select %p120_p7, %s2980_s17, %s122_s24  }
   0xd   : > { %p170_p10 = pnand %p2611_p6, %p169_p9 }
   0xf   : > { %173 = sbr.rel (%p170_p10) target bundleno = 1205 (0x4b5), region = 36 }
  0x14   : > { %s187_s29 = sand.u32 1, %s2976_s16   ;;  %v3095_v0 = vld [vmem:[%s4670_s0] sm:$0xff]  ;;  %v3100_v1 = vld [vmem:[%s4670_s0 + $0x8] sm:$0xff]  ;;  %v3105_v2 = vld [vmem:[%s4670_s0 + $0x10] sm:$0xff]  ;;  %p2613_p11 = scmp.ne.s32.totalorder %s2984_s18, 0 }
  0x15   : > { %4717 = vst [vmem:[#allocation5_spill] sm:$0xff] %v3095_v0  ;;  %4718 = vst [vmem:[#allocation6_spill] sm:$0xff] %v3100_v1  ;;  %s2612_s10 = sshll.u32 %s187_s29, 7  ;;  %v3112_v3 = vld [vmem:[%s4670_s0 + $0x18] sm:$0xff]  ;;  %v3117_v4 = vld [vmem:[%s4670_s0 + $0x20] sm:$0xff] }
  0x16   : > { %4719 = vst [vmem:[#allocation7_spill] sm:$0xff] %v3105_v2  ;;  %4720 = vst [vmem:[#allocation8_spill] sm:$0xff] %v3112_v3  ;;  %v3122_v5 = vld [vmem:[%s4670_s0 + $0x28] sm:$0xff]  ;;  %v3127_v6 = vld [vmem:[%s4670_s0 + $0x30] sm:$0xff]  ;;  %s3174_s8 = scalar_lea.vmem [#allocation2], %s2612_s10 }
  0x17   : > { %4721 = vst [vmem:[#allocation9_spill] sm:$0xff] %v3117_v4  ;;  %4722 = vst [vmem:[#allocation10_spill] sm:$0xff] %v3122_v5  ;;  %v3132_v7 = vld [vmem:[%s4670_s0 + $0x38] sm:$0xff]  ;;  %v3137_v8 = vld [vmem:[%s4671_s1] sm:$0xff] }
  0x18   : > { %4723 = vst [vmem:[#allocation11_spill] sm:$0xff] %v3127_v6  ;;  %4724 = vst [vmem:[#allocation12_spill] sm:$0xff] %v3132_v7  ;;  %v3142_v9 = vld [vmem:[%s4671_s1 + $0x8] sm:$0xff]  ;;  %v3147_v10 = vld [vmem:[%s4671_s1 + $0x10] sm:$0xff]  ;;  %213 = sbr.rel (%p2613_p11) target bundleno = 603 (0x25b), region = 40 }
  0x19   : > { %4725 = vst [vmem:[#allocation13_spill] sm:$0xff] %v3142_v9  ;;  %4726 = vst [vmem:[#allocation14_spill] sm:$0xff] %v3147_v10  ;;  %v3152_v11 = vld [vmem:[%s4671_s1 + $0x18] sm:$0xff]  ;;  %v3157_v12 = vld [vmem:[%s4671_s1 + $0x20] sm:$0xff] }
  0x1a   : > { %4727 = vst [vmem:[#allocation15_spill] sm:$0xff] %v3152_v11  ;;  %4728 = vst [vmem:[#allocation16_spill] sm:$0xff] %v3157_v12  ;;  %v3162_v13 = vld [vmem:[%s4671_s1 + $0x28] sm:$0xff]  ;;  %v3167_v14 = vld [vmem:[%s4671_s1 + $0x30] sm:$0xff] }
  0x1b   : > { %4729 = vst [vmem:[#allocation17_spill] sm:$0xff] %v3162_v13  ;;  %4730 = vst [vmem:[#allocation18_spill] sm:$0xff] %v3167_v14  ;;  %v3172_v15 = vld [vmem:[%s4671_s1 + $0x38] sm:$0xff] }
  0x1c   : > { %4731 = vst [vmem:[#allocation19_spill] sm:$0xff] %v3172_v15 }
  0x1d   : > { %v4675_v16 = vmov 0   ;;  %v214_v17 = vlaneseq  ;;  %v4691_v51 = vmov 683565275   ;;  %v4689_v53 = vmov 2475754826  }
  0x1e   : > { %2843 = vset.pattern.permute.xlu1 %v4675_v16  ;;  %2842 = vset.pattern.permute.xlu0 %v4675_v16  ;;  %v4687_v56 = vmov 2131351028   ;;  %v4694_v58 = vmov 2102212464   ;;  %v4682_v60 = vmov 920167782  }
  0x1f   : > { %270 = vperm.xlu1 %2843, %v3137_v8   ;;  %222 = vperm.xlu0 %2842, %v3095_v0   ;;  %v215_v18 = vand.u32 127, %v214_v17 }
  0x20   : > { %1314 = vmatprep.mubr.bf16.mxu1 %v4675_v16  ;;  %1229 = vmatprep.mubr.bf16.mxu0 %v4675_v16 }
  0x21   : > { %v218_v19 = vadd.s32 1, %v215_v18 }
  0x23   : > { %275 = vperm.xlu1 %2843, %v3142_v9   ;;  %227 = vperm.xlu0 %2842, %v3100_v1   ;;  %v3197_v20 = vcvt.s32.f32 %v218_v19 }
  0x27   : > { %237 = vperm.xlu1 %2843, %v3112_v3   ;;  %232 = vperm.xlu0 %2842, %v3105_v2  }
  0x2b   : > { %285 = vperm.xlu1 %2843, %v3152_v11   ;;  %280 = vperm.xlu0 %2842, %v3147_v10  }
  0x2f   : > { %247 = vperm.xlu1 %2843, %v3122_v5   ;;  %242 = vperm.xlu0 %2842, %v3117_v4  }
  0x33   : > { %295 = vperm.xlu1 %2843, %v3162_v13   ;;  %290 = vperm.xlu0 %2842, %v3157_v12  }
  0x37   : > { %257 = vperm.xlu1 %2843, %v3132_v7   ;;  %252 = vperm.xlu0 %2842, %v3127_v6  }
  0x3b   : > { %305 = vperm.xlu1 %2843, %v3172_v15   ;;  %300 = vperm.xlu0 %2842, %v3167_v14   ;;  %v4743_v14 = vmov 683565275  }
  0x9a   : > { %v271_v21 = vpop.permute.xlu1 %270  ;;  %v223_v22 = vpop.permute.xlu0 %222 }
  0x9b   : > { %v260_v23 = vmul.f32 %v223_v22, %v3197_v20 }
  0x9d   : > { %v3200_v24 = vadd.f32 %v271_v21, %v260_v23  ;;  %v4680_v21 = vmov 1326507024  }
  0x9e   : > { %v276_v25 = vpop.permute.xlu1 %275  ;;  %v228_v26 = vpop.permute.xlu0 %227 }
  0x9f   : > { %v4679_v27 = vand.u32 2147483647, %v3200_v24  ;;  %v319_v28 = vand.u32 2139095040, %v3200_v24  ;;  %v261_v29 = vmul.f32 %v228_v26, %v3197_v20 }
  0xa1   : > { %v320_v30 = vshrl.u32 %v319_v28, 23  ;;  %v3205_v31 = vadd.f32 %v276_v25, %v261_v29  ;;  %v323_v32 = vand.u32 8388607, %v4679_v27 }
  0xa2   : > { %v238_v33 = vpop.permute.xlu1 %237 }
  0xa3   : > { %v2614_v34 = vadd.s32 4294967169, %v320_v30  ;;  %v4678_v35 = vand.u32 2147483647, %v3205_v31  ;;  %v423_v36 = vand.u32 2139095040, %v3205_v31  ;;  %v324_v38 = vor.u32 8388608, %v323_v32 }
  0xa4   : > { %v263_v44 = vmul.f32 %v238_v33, %v3197_v20 }
  0xa5   : > { %v326_v37 = vadd.s32 1, %v2614_v34  ;;  %v424_v39 = vshrl.u32 %v423_v36, 23  ;;  %v427_v40 = vand.u32 8388607, %v4678_v35  ;;  %v3214_v47 = vshll.u32 %v324_v38, 8 }
  0xa6   : > { %v286_v41 = vpop.permute.xlu1 %285 }
  0xa7   : > { %vm327_vm0 = vcmp.gt.s32.totalorder %v326_v37, 0  ;;  %v2618_v43 = vadd.s32 4294967169, %v424_v39  ;;  %v428_v48 = vor.u32 8388608, %v427_v40  ;;  %v3216_v49 = vadd.f32 %v286_v41, %v263_v44 }
  0xa8   : > { %v328_v42 = vsel %vm327_vm0, %v326_v37, 0 }
  0xa9   : > { %v329_v45 = vshrl.u32 %v328_v42, 5  ;;  %v330_v46 = vand.u32 31, %v328_v42  ;;  %v430_v55 = vadd.s32 1, %v2618_v43 }
  0xab   : > { %v331_v50 = vsub.s32 32, %v330_v46  ;;  %v333_v52 = vshll.u32 %v4691_v51, %v330_v46  ;;  %v336_v54 = vshll.u32 %v4689_v53, %v330_v46  ;;  %v339_v57 = vshll.u32 %v4687_v56, %v330_v46 }
  0xac   : > { %v342_v59 = vshll.u32 %v4694_v58, %v330_v46  ;;  %v345_v61 = vshll.u32 %v4682_v60, %v330_v46  ;;  %vm348_vm1 = vcmp.lt.s32.totalorder %v329_v45, 1  ;;  %vm349_vm2 = vcmp.lt.s32.totalorder %v329_v45, 2 }
  0xad   : > { %v334_v62 = vshrl.u32 %v4689_v53, %v331_v50  ;;  %v337_v63 = vshrl.u32 %v4687_v56, %v331_v50  ;;  %v340_v17 = vshrl.u32 %v4694_v58, %v331_v50  ;;  %v332_v18 = vshrl.u32 %v4691_v51, %v331_v50 }
  0xae   : > { %v343_v19 = vshrl.u32 %v4682_v60, %v331_v50  ;;  %v346_v22 = vshrl.u32 %v4680_v21, %v331_v50  ;;  %vm350_vm3 = vcmp.lt.s32.totalorder %v329_v45, 3  ;;  %vm431_vm4 = vcmp.gt.s32.totalorder %v430_v55, 0 }
  0xaf   : > { %v335_v23 = vor.u32 %v334_v62, %v333_v52  ;;  %v338_v25 = vor.u32 %v337_v63, %v336_v54  ;;  %v341_v26 = vor.u32 %v340_v17, %v339_v57  ;;  %vm351_vm5 = vcmp.lt.s32.totalorder %v329_v45, 4 }
  0xb0   : > { %v344_v28 = vor.u32 %v343_v19, %v342_v59  ;;  %v347_v29 = vor.u32 %v346_v22, %v345_v61  ;;  %v432_v30 = vsel %vm431_vm4, %v430_v55, 0  ;;  %v3240_v52 = vshll.u32 %v428_v48, 8 }
  0xb1   : > { %v352_v32 = vsel %vm348_vm1, %v332_v18, %v335_v23  ;;  %v353_v33 = vsel %vm351_vm5, %v341_v26, 2102212464  ;;  %v356_v34 = vsel %vm348_vm1, %v335_v23, %v338_v25  ;;  %v360_v36 = vsel %vm348_vm1, %v338_v25, %v341_v26 }
  0xb2   : > { %v354_v37 = vsel %vm350_vm3, %v338_v25, %v353_v33  ;;  %v357_v38 = vsel %vm351_vm5, %v344_v28, 920167782  ;;  %v361_v39 = vsel %vm351_vm5, %v347_v29, 1326507024  ;;  %v3233_v40 = vshrl.u32 %v432_v30, 5  ;;  %v233_v33 = vpop.permute.xlu0 %232 }
  0xb3   : > { %v355_v41 = vsel %vm349_vm2, %v352_v32, %v354_v37  ;;  %v358_v42 = vsel %vm350_vm3, %v341_v26, %v357_v38  ;;  %v362_v43 = vsel %vm350_vm3, %v344_v28, %v361_v39  ;;  %v434_v44 = vand.u32 31, %v432_v30 }
  0xb4   : > { %v359_v46 = vsel %vm349_vm2, %v356_v34, %v358_v42  ;;  %v363_v50 = vsel %vm349_vm2, %v360_v36, %v362_v43  ;;  %v371_v61 = vmul.u32 %v3214_v47, %v355_v41  ;;  %vm452_vm6 = vcmp.lt.s32.totalorder %v3233_v40, 1 }
  0xb5   : > { %v3243_v54 = vmul.u32.u64.low %v3214_v47, %v363_v50  ;;  %v3244_v55 = vmul.u32.u64.high %v3214_v47, %v363_v50, %v3243_v54  ;;  %v3247_v57 = vmul.u32.u64.low %v3214_v47, %v359_v46  ;;  %v3248_v59 = vmul.u32.u64.high %v3214_v47, %v359_v46, %v3247_v57 }
  0xb6   : > { %v435_v62 = vsub.s32 32, %v434_v44  ;;  %v631_v63 = vand.u32 2139095040, %v3216_v49  ;;  %v437_v45 = vshll.u32 %v4691_v51, %v434_v44  ;;  %v440_v48 = vshll.u32 %v4689_v53, %v434_v44 }
  0xb7   : > { %v443_v17 = vshll.u32 %v4687_v56, %v434_v44  ;;  %v446_v18 = vshll.u32 %v4694_v58, %v434_v44  ;;  %v449_v47 = vshll.u32 %v4682_v60, %v434_v44  ;;  %vm373_vm7 = vc.u32 %v3244_v55, %v3247_v57 }
  0xb8   : > { %v438_v19 = vshrl.u32 %v4689_v53, %v435_v62  ;;  %v441_v22 = vshrl.u32 %v4687_v56, %v435_v62  ;;  %v444_v23 = vshrl.u32 %v4694_v58, %v435_v62  ;;  %v374_v25 = vadd.s32 1, %v3248_v59 }
  0xb9   : > { %v447_v26 = vshrl.u32 %v4682_v60, %v435_v62  ;;  %vm453_vm8 = vcmp.lt.s32.totalorder %v3233_v40, 2  ;;  %v450_v32 = vshrl.u32 %v4680_v21, %v435_v62  ;;  %vm455_vm9 = vcmp.lt.s32.totalorder %v3233_v40, 4 }
  0xba   : > { %v439_v28 = vor.u32 %v438_v19, %v437_v45  ;;  %v442_v29 = vor.u32 %v441_v22, %v440_v48  ;;  %v445_v30 = vor.u32 %v444_v23, %v443_v17  ;;  %v375_v34 = vsel %vm373_vm7, %v374_v25, %v3248_v59  ;;  %v281_v23 = vpop.permute.xlu0 %280 }
  0xbb   : > { %v448_v36 = vor.u32 %v447_v26, %v446_v18  ;;  %v632_v37 = vshrl.u32 %v631_v63, 23  ;;  %v376_v38 = vadd.s32 %v375_v34, %v371_v61  ;;  %v436_v39 = vshrl.u32 %v4691_v51, %v435_v62 }
  0xbc   : > { %v451_v41 = vor.u32 %v450_v32, %v449_v47  ;;  %v457_v42 = vsel %vm455_vm9, %v445_v30, 2102212464  ;;  %vm454_vm10 = vcmp.lt.s32.totalorder %v3233_v40, 3  ;;  %v460_v43 = vsel %vm452_vm6, %v439_v28, %v442_v29 }
  0xbd   : > { %v461_v44 = vsel %vm455_vm9, %v448_v36, 920167782  ;;  %v464_v46 = vsel %vm452_vm6, %v442_v29, %v445_v30  ;;  %v377_v50 = vadd.s32 536870912, %v376_v38  ;;  %v456_v54 = vsel %vm452_vm6, %v436_v39, %v439_v28 }
  0xbe   : > { %v462_v59 = vsel %vm454_vm10, %v445_v30, %v461_v44  ;;  %v465_v63 = vsel %vm455_vm9, %v451_v41, 1326507024  ;;  %v458_v61 = vsel %vm454_vm10, %v442_v29, %v457_v42  ;;  %v2626_v48 = vadd.s32 4294967169, %v632_v37 }
  0xbf   : > { %v463_v62 = vsel %vm453_vm8, %v460_v43, %v462_v59  ;;  %v466_v45 = vsel %vm454_vm10, %v448_v36, %v465_v63  ;;  %v3280_v17 = vshrl.u32 %v377_v50, 30  ;;  %v262_v26 = vmul.f32 %v233_v33, %v3197_v20 }
  0xc0   : > { %v467_v18 = vsel %vm453_vm8, %v464_v46, %v466_v45  ;;  %v3285_v19 = vmul.u32.u64.low %v3240_v52, %v463_v62  ;;  %v3286_v22 = vmul.u32.u64.high %v3240_v52, %v463_v62, %v3285_v19  ;;  %v638_v28 = vadd.s32 1, %v2626_v48 }
  0xc1   : > { %v3290_v47 = vmul.u32.u64.low %v3240_v52, %v467_v18  ;;  %v3291_v25 = vmul.u32.u64.high %v3240_v52, %v467_v18, %v3290_v47  ;;  %v379_v29 = vshll.u32 %v3280_v17, 30  ;;  %v459_v30 = vsel %vm453_vm8, %v456_v54, %v458_v61 }
  0xc2   : > { %vm639_vm11 = vcmp.gt.s32.totalorder %v638_v28, 0  ;;  %v3297_v32 = vadd.f32 %v281_v23, %v262_v26  ;;  %v478_v36 = vadd.s32 1, %v3286_v22  ;;  %v4677_v37 = vand.u32 2147483647, %v3216_v49 }
  0xc3   : > { %v3299_v34 = vsub.s32 %v376_v38, %v379_v29  ;;  %v640_v39 = vsel %vm639_vm11, %v638_v28, 0  ;;  %v475_v41 = vmul.u32 %v3240_v52, %v459_v30  ;;  %vm477_vm12 = vc.u32 %v3291_v25, %v3285_v19 }
  0xc4   : > { %v642_v33 = vand.u32 31, %v640_v39  ;;  %v479_v40 = vsel %vm477_vm12, %v478_v36, %v3286_v22  ;;  %v372_v43 = vadd.s32 %v3247_v57, %v3244_v55  ;;  %v4686_v46 = vand.u32 2147483647, %v3297_v32 }
  0xc5   : > { %v382_v42 = vsub.s32 0, %v3299_v34  ;;  %v480_v38 = vadd.s32 %v479_v40, %v475_v41  ;;  %v635_v52 = vand.u32 8388607, %v4677_v37  ;;  %v527_v59 = vand.u32 2139095040, %v3297_v32 }
  0xc6   : > { %v643_v44 = vsub.s32 32, %v642_v33  ;;  %v645_v54 = vshll.u32 %v4691_v51, %v642_v33  ;;  %v648_v62 = vshll.u32 %v4689_v53, %v642_v33  ;;  %v641_v23 = vshrl.u32 %v640_v39, 5 }
  0xc7   : > { %v2615_v50 = vmin.u32 %v382_v42, %v3299_v34  ;;  %v481_v63 = vadd.s32 536870912, %v480_v38  ;;  %v651_v47 = vshll.u32 %v4687_v56, %v642_v33  ;;  %v654_v26 = vshll.u32 %v4694_v58, %v642_v33 }
  0xc8   : > { %v646_v61 = vshrl.u32 %v4689_v53, %v643_v44  ;;  %v649_v55 = vshrl.u32 %v4687_v56, %v643_v44  ;;  %v652_v45 = vshrl.u32 %v4694_v58, %v643_v44  ;;  %v655_v48 = vshrl.u32 %v4682_v60, %v643_v44 }
  0xc9   : > { %v384_v57 = vclz %v2615_v50  ;;  %v658_v18 = vshrl.u32 %v4680_v21, %v643_v44  ;;  %v3322_v22 = vshrl.u32 %v481_v63, 30  ;;  %v657_v36 = vshll.u32 %v4682_v60, %v642_v33 }
  0xca   : > { %v647_v29 = vor.u32 %v646_v61, %v645_v54  ;;  %v650_v30 = vor.u32 %v649_v55, %v648_v62  ;;  %v636_v42 = vor.u32 8388608, %v635_v52  ;;  %v653_v40 = vor.u32 %v652_v45, %v651_v47 }
  0xcb   : > { %v2616_v28 = vadd.s32 4294967294, %v384_v57  ;;  %v483_v41 = vshll.u32 %v3322_v22, 30  ;;  %v656_v50 = vor.u32 %v655_v48, %v654_v26  ;;  %v644_v16 = vshrl.u32 %v4691_v51, %v643_v44 }
  0xcc   : > { %v659_v63 = vor.u32 %v658_v18, %v657_v36  ;;  %v528_v37 = vshrl.u32 %v527_v59, 23  ;;  %vm660_vm14 = vcmp.lt.s32.totalorder %v641_v23, 1  ;;  %vm661_vm15 = vcmp.lt.s32.totalorder %v641_v23, 2 }
  0xcd   : > { %vm2617_vm13 = vcmp.lt.s32.totalorder %v2616_v28, 0  ;;  %v3329_v35 = vsub.s32 %v480_v38, %v483_v41  ;;  %vm662_vm0 = vcmp.lt.s32.totalorder %v641_v23, 3  ;;  %vm663_vm1 = vcmp.lt.s32.totalorder %v641_v23, 4 }
  0xce   : > { %v387_v39 = vsel %vm2617_vm13, 0, %v2616_v28  ;;  %v668_v33 = vsel %vm660_vm14, %v647_v29, %v650_v30  ;;  %v665_v52 = vsel %vm663_vm1, %v653_v40, 2102212464  ;;  %v669_v61 = vsel %vm663_vm1, %v656_v50, 920167782 }
  0xcf   : > { %v392_v57 = vsub.s32 4294967266, %v387_v39  ;;  %v486_v54 = vsub.s32 0, %v3329_v35  ;;  %v672_v62 = vsel %vm660_vm14, %v650_v30, %v653_v40  ;;  %v388_v55 = vsub.s32 32, %v387_v39 }
  0xd0   : > { %v670_v59 = vsel %vm662_vm0, %v653_v40, %v669_v61  ;;  %v673_v45 = vsel %vm663_vm1, %v659_v63, 1326507024  ;;  %v676_v47 = vshll.u32 %v636_v42, 8  ;;  %v664_v28 = vsel %vm660_vm14, %v644_v16, %v647_v29 }
  0xd1   : > { %v393_v44 = vadd.s32 127, %v392_v57  ;;  %v2619_v38 = vmin.u32 %v486_v54, %v3329_v35  ;;  %v671_v48 = vsel %vm661_vm15, %v668_v33, %v670_v59  ;;  %v674_v18 = vsel %vm662_vm0, %v656_v50, %v673_v45 }
  0xd2   : > { %v675_v36 = vsel %vm661_vm15, %v672_v62, %v674_v18  ;;  %v2622_v41 = vadd.s32 4294967169, %v528_v37  ;;  %v666_v21 = vsel %vm662_vm0, %v650_v30, %v665_v52  ;;  %v390_v40 = vshrl.u32 %v372_v43, %v388_v55 }
  0xd3   : > { %v394_v26 = vshll.u32 %v393_v44, 23  ;;  %v488_v27 = vclz %v2619_v38  ;;  %v3341_v57 = vmul.u32.u64.low %v676_v47, %v675_v36  ;;  %v3342_v60 = vmul.u32.u64.high %v676_v47, %v675_v36, %v3341_v57  ;;  %v248_v38 = vpop.permute.xlu1 %247 }
  0xd4   : > { %v3344_v63 = vmul.u32.u64.low %v676_v47, %v671_v48  ;;  %v3345_v54 = vmul.u32.u64.high %v676_v47, %v671_v48, %v3344_v63  ;;  %v531_v42 = vand.u32 8388607, %v4686_v46  ;;  %v534_v50 = vadd.s32 1, %v2622_v41 }
  0xd5   : > { %v2620_v33 = vadd.s32 4294967294, %v488_v27  ;;  %v389_v16 = vshll.u32 %v3299_v34, %v387_v39  ;;  %v395_v29 = vor.u32 4788187, %v394_v26  ;;  %v667_v37 = vsel %vm661_vm15, %v664_v28, %v666_v21 }
  0xd6   : > { %vm685_vm3 = vc.u32 %v3342_v60, %v3344_v63  ;;  %vm535_vm4 = vcmp.gt.s32.totalorder %v534_v50, 0  ;;  %v686_v52 = vadd.s32 1, %v3345_v54  ;;  %v683_v55 = vmul.u32 %v676_v47, %v667_v37 }
  0xd7   : > { %vm2621_vm2 = vcmp.lt.s32.totalorder %v2620_v33, 0  ;;  %v391_v43 = vor.u32 %v390_v40, %v389_v16  ;;  %v536_v61 = vsel %vm535_vm4, %v534_v50, 0  ;;  %v532_v44 = vor.u32 8388608, %v531_v42 }
  0xd8   : > { %v491_v30 = vsel %vm2621_vm2, 0, %v2620_v33  ;;  %v396_v59 = vand.u32 2147483647, %v395_v29  ;;  %v687_v34 = vsel %vm685_vm3, %v686_v52, %v3345_v54  ;;  %v538_v39 = vand.u32 31, %v536_v61 }
  0xd9   : > { %v492_v27 = vsub.s32 32, %v491_v30  ;;  %v496_v62 = vsub.s32 4294967266, %v491_v30  ;;  %v476_v21 = vadd.s32 %v3285_v19, %v3291_v25  ;;  %v688_v45 = vadd.s32 %v687_v34, %v683_v55 }
  0xda   : > { %v398_v48 = vcvt.s32.f32 %v391_v43  ;;  %v402_v18 = vsub.s32 4, %v3280_v17  ;;  %v539_v26 = vsub.s32 32, %v538_v39  ;;  %v3359_v57 = vshll.u32 %v532_v44, 8 }
  0xdb   : > { %v497_v23 = vadd.s32 127, %v496_v62  ;;  %v494_v28 = vshrl.u32 %v476_v21, %v492_v27  ;;  %v689_v41 = vadd.s32 536870912, %v688_v45  ;;  %v493_v40 = vshll.u32 %v3329_v35, %v491_v30  ;;  %v296_v62 = vpop.permute.xlu1 %295 }
  0xdc   : > { %v399_v47 = vmul.f32 %v398_v48, %v396_v59  ;;  %v542_v54 = vshrl.u32 %v4689_v53, %v539_v26  ;;  %v545_v33 = vshrl.u32 %v4687_v56, %v539_v26  ;;  %v541_v42 = vshll.u32 %v4691_v51, %v538_v39 }
  0xdd   : > { %v498_v36 = vshll.u32 %v497_v23, 23  ;;  %v3364_v25 = vshrl.u32 %v689_v41, 30  ;;  %v544_v50 = vshll.u32 %v4689_v53, %v538_v39  ;;  %vm318_vm5 = vcmp.lt.s32.totalorder %v3200_v24, 0 }
  0xde   : > { %v537_v16 = vshrl.u32 %v536_v61, 5  ;;  %v547_v29 = vshll.u32 %v4687_v56, %v538_v39  ;;  %v548_v37 = vshrl.u32 %v4694_v58, %v539_v26  ;;  %v265_v35 = vmul.f32 %v248_v38, %v3197_v20 }
  0xdf   : > { %v499_v19 = vor.u32 4788187, %v498_v36  ;;  %v495_v43 = vor.u32 %v494_v28, %v493_v40  ;;  %v691_v30 = vshll.u32 %v3364_v25, 30  ;;  %v543_v52 = vor.u32 %v542_v54, %v541_v42 }
  0xe0   : > { %v546_v27 = vor.u32 %v545_v33, %v544_v50  ;;  %v549_v55 = vor.u32 %v548_v37, %v547_v29  ;;  %v550_v44 = vshll.u32 %v4694_v58, %v538_v39  ;;  %v4732_v59 = vmov 920167782  }
  0xe1   : > { %v551_v34 = vshrl.u32 %v4732_v59, %v539_v26  ;;  %v4733_v21 = vmov 1326507024   ;;  %v400_v61 = vxor.u32 2147483648, %v399_v47  ;;  %v500_v48 = vand.u32 2147483647, %v499_v19 }
  0xe2   : > { %v554_v23 = vshrl.u32 %v4733_v21, %v539_v26  ;;  %v3376_v36 = vsub.s32 %v688_v45, %v691_v30  ;;  %v553_v41 = vshll.u32 %v4732_v59, %v538_v39  ;;  %v4734_v38 = vand.u32 2147483647, %v3200_v24 }
  0xe3   : > { %v540_v40 = vshrl.u32 %v4691_v51, %v539_v26  ;;  %v552_v54 = vor.u32 %v551_v34, %v550_v44  ;;  %vm556_vm7 = vcmp.lt.s32.totalorder %v537_v16, 1  ;;  %v3386_v33 = vadd.f32 %v296_v62, %v265_v35 }
  0xe4   : > { %vm3381_vm6 = vcmp.le.f32.partialorder %v4734_v38, 0.7853982  ;;  %v502_v42 = vcvt.s32.f32 %v495_v43  ;;  %vm630_vm8 = vcmp.lt.s32.totalorder %v3216_v49, 0  ;;  %v694_v45 = vsub.s32 0, %v3376_v36  ;;  %v243_v43 = vpop.permute.xlu0 %242 }
  0xe5   : > { %v555_v19 = vor.u32 %v554_v23, %v553_v41  ;;  %vm559_vm9 = vcmp.lt.s32.totalorder %v537_v16, 4  ;;  %vm422_vm10 = vcmp.lt.s32.totalorder %v3205_v31, 0  ;;  %vm558_vm11 = vcmp.lt.s32.totalorder %v537_v16, 3 }
  0xe6   : > { %v561_v39 = vsel %vm559_vm9, %v549_v55, 2102212464  ;;  %v564_v50 = vsel %vm556_vm7, %v543_v52, %v546_v27  ;;  %v565_v26 = vsel %vm559_vm9, %v552_v54, 920167782  ;;  %v503_v29 = vmul.f32 %v502_v42, %v500_v48 }
  0xe7   : > { %v2627_v37 = vmin.u32 %v694_v45, %v3376_v36  ;;  %vm557_vm12 = vcmp.lt.s32.totalorder %v537_v16, 2  ;;  %v566_v35 = vsel %vm558_vm11, %v549_v55, %v565_v26  ;;  %v560_v30 = vsel %vm556_vm7, %v540_v40, %v543_v52 }
  0xe8   : > { %v562_v62 = vsel %vm558_vm11, %v546_v27, %v561_v39  ;;  %v567_v44 = vsel %vm557_vm12, %v564_v50, %v566_v35  ;;  %v568_v34 = vsel %vm556_vm7, %v546_v27, %v549_v55  ;;  %v401_v23 = vsel %vm318_vm5, %v400_v61, %v399_v47  ;;  %v2844_v50 = vld [vmem:[%s4672_s2 + $0x4] ss:$8 sps:$4 sm:$0xff]  }
  0xe9   : > { %v3405_v48 = vsel %vm318_vm5, %v402_v18, %v3280_v17  ;;  %v696_v41 = vclz %v2627_v37  ;;  %v569_v38 = vsel %vm559_vm9, %v555_v19, 1326507024  ;;  %v4737_v42 = vand.u32 2147483647, %v3205_v31  ;;  %1296 = vmatprep.subr.bf16.mxu1 %v2844_v50  ;;  %1211 = vmatprep.subr.bf16.mxu0 %v2844_v50 }
  0xea   : > { %v4740_v40 = vand.u32 2147483647, %v3216_v49  ;;  %v714_v47 = vsub.s32 4, %v3364_v25  ;;  %v570_v17 = vsel %vm558_vm11, %v552_v54, %v569_v38  ;;  %v504_v61 = vxor.u32 2147483648, %v503_v29 }
  0xeb   : > { %vm3410_vm13 = vcmp.le.f32.partialorder %v4737_v42, 0.7853982  ;;  %v3423_v18 = vmul.u32.u64.low %v3359_v57, %v567_v44  ;;  %v3424_v55 = vmul.u32.u64.high %v3359_v57, %v567_v44, %v3423_v18  ;;  %v2628_v45 = vadd.s32 4294967294, %v696_v41  ;;  %v2846_v44 = vld [vmem:[%s4672_s2] ss:$8 sps:$4 sm:$0xff]  }
  0xec   : > { %vm3416_vm14 = vcmp.le.f32.partialorder %v4740_v40, 0.7853982  ;;  %v563_v19 = vsel %vm557_vm12, %v560_v30, %v562_v62  ;;  %v571_v39 = vsel %vm557_vm12, %v568_v34, %v570_v17  ;;  %v4685_v54 = vand.u32 2147483647, %v3386_v33  ;;  %v291_v34 = vpop.permute.xlu0 %290  ;;  %v258_v17 = vpop.permute.xlu1 %257  ;;  %1297 = vmatpush1.bf16.msra.mxu1 %v2846_v44  ;;  %1212 = vmatpush1.bf16.msra.mxu0 %v2846_v44 }
  0xed   : > { %v3433_v26 = vmul.u32.u64.low %v3359_v57, %v571_v39  ;;  %v3434_v37 = vmul.u32.u64.high %v3359_v57, %v571_v39, %v3433_v26  ;;  %v839_v35 = vand.u32 2139095040, %v3386_v33  ;;  %v404_v16 = vsel %vm3381_vm6, %v3200_v24, %v401_v23 }
  0xee   : > { %v684_v30 = vadd.s32 %v3344_v63, %v3342_v60  ;;  %vm2629_vm15 = vcmp.lt.s32.totalorder %v2628_v45, 0  ;;  %v264_v62 = vmul.f32 %v243_v43, %v3197_v20  ;;  %v715_v38 = vsel %vm630_vm8, %v714_v47, %v3364_v25 }
  0xef   : > { %v699_v41 = vsel %vm2629_vm15, 0, %v2628_v45  ;;  %v582_v42 = vadd.s32 1, %v3424_v55  ;;  %v840_v40 = vshrl.u32 %v839_v35, 23  ;;  %v505_v60 = vsel %vm422_vm10, %v504_v61, %v503_v29 }
  0xf0   : > { %v700_v63 = vsub.s32 32, %v699_v41  ;;  %v704_v23 = vsub.s32 4294967266, %v699_v41  ;;  %v579_v43 = vmul.u32 %v3359_v57, %v563_v19  ;;  %vm581_vm0 = vc.u32 %v3434_v37, %v3423_v18 }
  0xf1   : > { %v2634_v45 = vadd.s32 4294967169, %v840_v40  ;;  %v843_v25 = vand.u32 8388607, %v4685_v54  ;;  %v3458_v47 = vadd.f32 %v291_v34, %v264_v62  ;;  %v506_v39 = vsub.s32 4, %v3322_v22  ;;  %v306_v40 = vpop.permute.xlu1 %305 }
  0xf2   : > { %v702_v50 = vshrl.u32 %v684_v30, %v700_v63  ;;  %v705_v26 = vadd.s32 127, %v704_v23  ;;  %v583_v35 = vsel %vm581_vm0, %v582_v42, %v3424_v55  ;;  %2847 = vcosq.f32 %v404_v16  ;;  %v253_v42 = vpop.permute.xlu0 %252 }
  0xf3   : > { %v584_v29 = vadd.s32 %v583_v35, %v579_v43  ;;  %v846_v61 = vadd.s32 1, %v2634_v45  ;;  %v267_v57 = vmul.f32 %v258_v17, %v3197_v20  ;;  %2849 = vsinq.f32 %v404_v16 }
  0xf4   : > { %v508_v19 = vsel %vm3410_vm13, %v3205_v31, %v505_v60  ;;  %v701_v44 = vshll.u32 %v3376_v36, %v699_v41  ;;  %v717_v62 = vsel %vm3416_vm14, 0, %v715_v38  ;;  %v844_v30 = vor.u32 8388608, %v843_v25 }
  0xf5   : > { %v585_v34 = vadd.s32 536870912, %v584_v29  ;;  %vm847_vm1 = vcmp.gt.s32.totalorder %v846_v61, 0  ;;  %v4684_v55 = vand.u32 2147483647, %v3458_v47  ;;  %v706_v17 = vshll.u32 %v705_v26, 23 }
  0xf6   : > { %v3470_v63 = vor.u32 %v702_v50, %v701_v44  ;;  %v848_v16 = vsel %vm847_vm1, %v846_v61, 0  ;;  %v735_v23 = vand.u32 2139095040, %v3458_v47  ;;  %v3476_v36 = vsel %vm422_vm10, %v506_v39, %v3322_v22 }
  0xf7   : > { %2851 = vcosq.f32 %v508_v19  ;;  %v3478_v41 = vshrl.u32 %v585_v34, 30  ;;  %v850_v38 = vand.u32 31, %v848_v16  ;;  %v3480_v60 = vadd.s32 3, %v717_v62 }
  0xf8   : > { %2853 = vsinq.f32 %v508_v19  ;;  %v3483_v43 = vmul.f32 %v253_v42, %v3197_v20  ;;  %v3485_v45 = vadd.f32 %v306_v40, %v267_v57  ;;  %v3489_v25 = vadd.s32 %v3423_v18, %v3434_v37 }
  0xf9   : > { %v587_v50 = vshll.u32 %v3478_v41, 30  ;;  %v851_v22 = vsub.s32 32, %v850_v38  ;;  %v3494_v39 = vand.u32 8388607, %v4684_v55  ;;  %v707_v26 = vor.u32 4788187, %v706_v17 }
  0xfa   : > { %v710_v35 = vcvt.s32.f32 %v3470_v63  ;;  %v3497_v61 = vshll.u32 %v844_v30, 8  ;;  %v736_v20 = vshrl.u32 %v735_v23, 23  ;;  %v849_v57 = vshrl.u32 %v848_v16, 5 }
  0xfb   : > { %v3499_v19 = vsub.s32 %v584_v29, %v587_v50  ;;  %v853_v44 = vshll.u32 %v4691_v51, %v850_v38  ;;  %v854_v18 = vshrl.u32 %v4689_v53, %v851_v22  ;;  %v856_v37 = vshll.u32 %v4689_v53, %v850_v38 }
  0xfc   : > { %v857_v62 = vshrl.u32 %v4687_v56, %v851_v22  ;;  %v859_v34 = vshll.u32 %v4687_v56, %v850_v38  ;;  %v860_v42 = vshrl.u32 %v4694_v58, %v851_v22  ;;  %v862_v30 = vshll.u32 %v4694_v58, %v850_v38 }
  0xfd   : > { %v590_v40 = vsub.s32 0, %v3499_v19  ;;  %v863_v29 = vshrl.u32 %v4732_v59, %v851_v22  ;;  %v855_v17 = vor.u32 %v854_v18, %v853_v44  ;;  %v2630_v50 = vadd.s32 4294967169, %v736_v20 }
  0xfe   : > { %v858_v16 = vor.u32 %v857_v62, %v856_v37  ;;  %v861_v23 = vor.u32 %v860_v42, %v859_v34  ;;  %v865_v46 = vshll.u32 %v4732_v59, %v850_v38  ;;  %v866_v56 = vshrl.u32 %v4733_v21, %v851_v22 }
  0xff   : > { %v2623_v55 = vmin.u32 %v590_v40, %v3499_v19  ;;  %v864_v54 = vor.u32 %v863_v29, %v862_v30  ;;  %v3514_v53 = vpop.eup %2847  ;;  %v708_v51 = vand.u32 2147483647, %v707_v26  ;;  %v852_v58 = vshrl.u32 %v4743_v14, %v851_v22 }
 0x100   : > { %vm868_vm2 = vcmp.lt.s32.totalorder %v849_v57, 1  ;;  %v3518_v63 = vpop.eup %2849  ;;  %v867_v18 = vor.u32 %v866_v56, %v865_v46  ;;  %vm869_vm3 = vcmp.lt.s32.totalorder %v849_v57, 2  ;;  %vm871_vm4 = vcmp.lt.s32.totalorder %v849_v57, 4 }
 0x101   : > { %v592_v44 = vclz %v2623_v55  ;;  %vm870_vm5 = vcmp.lt.s32.totalorder %v849_v57, 3  ;;  %v873_v20 = vsel %vm871_vm4, %v861_v23, 2102212464  ;;  %v876_v37 = vsel %vm868_vm2, %v855_v17, %v858_v16 }
 0x102   : > { %v877_v38 = vsel %vm871_vm4, %v864_v54, 920167782  ;;  %v872_v34 = vsel %vm868_vm2, %v852_v58, %v855_v17  ;;  %v880_v40 = vsel %vm868_vm2, %v858_v16, %v861_v23  ;;  %v874_v22 = vsel %vm870_vm5, %v858_v16, %v873_v20 }
 0x103   : > { %v2624_v62 = vadd.s32 4294967294, %v592_v44  ;;  %v878_v42 = vsel %vm870_vm5, %v861_v23, %v877_v38  ;;  %v881_v29 = vsel %vm871_vm4, %v867_v18, 1326507024  ;;  %v742_v15 = vadd.s32 1, %v2630_v50 }
 0x104   : > { %v3520_v26 = vpop.eup %2851  ;;  %v879_v30 = vsel %vm869_vm3, %v876_v37, %v878_v42  ;;  %v882_v56 = vsel %vm870_vm5, %v864_v54, %v881_v29  ;;  %v711_v44 = vmul.f32 %v710_v35, %v708_v51  ;;  %v875_v20 = vsel %vm869_vm3, %v872_v34, %v874_v22 }
 0x105   : > { %v3523_v6 = vpop.eup %2853  ;;  %vm2625_vm7 = vcmp.lt.s32.totalorder %v2624_v62, 0  ;;  %v3526_v46 = vmul.u32.u64.low %v3497_v61, %v879_v30  ;;  %v3527_v55 = vmul.u32.u64.high %v3497_v61, %v879_v30, %v3526_v46  ;;  %v883_v17 = vsel %vm869_vm3, %v880_v40, %v882_v56 }
 0x106   : > { %v595_v58 = vsel %vm2625_vm7, 0, %v2624_v62  ;;  %vm743_vm9 = vcmp.gt.s32.totalorder %v742_v15, 0  ;;  %vm526_vm10 = vcmp.lt.s32.totalorder %v3297_v32, 0  ;;  %v610_v50 = vsub.s32 4, %v3478_v41 }
 0x107   : > { %v596_v23 = vsub.s32 32, %v595_v58  ;;  %v600_v16 = vsub.s32 4294967266, %v595_v58  ;;  %v744_v18 = vsel %vm743_vm9, %v742_v15, 0  ;;  %v597_v51 = vshll.u32 %v3499_v19, %v595_v58 }
 0x108   : > { %v3535_v54 = vmul.u32.u64.low %v3497_v61, %v883_v17  ;;  %v3536_v37 = vmul.u32.u64.high %v3497_v61, %v883_v17, %v3535_v54  ;;  %v746_v38 = vand.u32 31, %v744_v18  ;;  %v894_v42 = vadd.s32 1, %v3527_v55 }
 0x109   : > { %v598_v35 = vshrl.u32 %v3489_v25, %v596_v23  ;;  %v601_v62 = vadd.s32 127, %v600_v16  ;;  %v712_v40 = vxor.u32 2147483648, %v711_v44  ;;  %v891_v57 = vmul.u32 %v3497_v61, %v875_v20 }
 0x10a   : > { %v3542_v15 = vshrl.u32 %v744_v18, 5  ;;  %v747_v34 = vsub.s32 32, %v746_v38  ;;  %v749_v29 = vshll.u32 %v4743_v14, %v746_v38  ;;  %v4744_v56 = vmov 2475754826  }
 0x10b   : > { %v599_v22 = vor.u32 %v598_v35, %v597_v51  ;;  %v602_v30 = vshll.u32 %v601_v62, 23  ;;  %v752_v17 = vshll.u32 %v4744_v56, %v746_v38  ;;  %vm893_vm11 = vc.u32 %v3536_v37, %v3526_v46 }
 0x10c   : > { %v750_v25 = vshrl.u32 %v4744_v56, %v747_v34  ;;  %v4745_v19 = vmov 2131351028   ;;  %v4746_v23 = vmov 2102212464   ;;  %v4747_v61 = vand.u32 2147483647, %v3297_v32 }
 0x10d   : > { %v755_v58 = vshll.u32 %v4745_v19, %v746_v38  ;;  %v758_v16 = vshll.u32 %v4746_v23, %v746_v38  ;;  %v603_v18 = vor.u32 4788187, %v602_v30  ;;  %v895_v54 = vsel %vm893_vm11, %v894_v42, %v3527_v55 }
 0x10e   : > { %vm3553_vm12 = vcmp.le.f32.partialorder %v4747_v61, 0.7853982  ;;  %v753_v51 = vshrl.u32 %v4745_v19, %v747_v34  ;;  %v761_v35 = vshll.u32 %v4732_v59, %v746_v38  ;;  %v606_v62 = vcvt.s32.f32 %v599_v22 }
 0x10f   : > { %v896_v7 = vadd.s32 %v895_v54, %v891_v57  ;;  %v756_v12 = vshrl.u32 %v4746_v23, %v747_v34  ;;  %v759_v13 = vshrl.u32 %v4732_v59, %v747_v34  ;;  %v604_v4 = vand.u32 2147483647, %v603_v18 }
 0x110   : > { %v751_v5 = vor.u32 %v750_v25, %v749_v29  ;;  %v754_v10 = vor.u32 %v753_v51, %v752_v17  ;;  %v762_v61 = vshrl.u32 %v4733_v21, %v747_v34  ;;  %v4706_v55 = vand.u32 2147483647, %v3485_v45 }
 0x111   : > { %v897_v11 = vadd.s32 536870912, %v896_v7  ;;  %v757_v2 = vor.u32 %v756_v12, %v755_v58  ;;  %v760_v30 = vor.u32 %v759_v13, %v758_v16  ;;  %v607_v42 = vmul.f32 %v606_v62, %v604_v4 }
 0x112   : > { %v611_v38 = vsel %vm526_vm10, %v610_v50, %v3478_v41  ;;  %v763_v57 = vor.u32 %v762_v61, %v761_v35  ;;  %v4750_v22 = vor.u32 8388608, %v3494_v39  ;;  %v713_v29 = vsel %vm630_vm8, %v712_v40, %v711_v44 }
 0x113   : > { %v898_v17 = vshrl.u32 %v897_v11, 30  ;;  %vm764_vm15 = vcmp.lt.s32.totalorder %v3542_v15, 1  ;;  %vm767_vm0 = vcmp.lt.s32.totalorder %v3542_v15, 4  ;;  %vm766_vm1 = vcmp.lt.s32.totalorder %v3542_v15, 3 }
 0x114   : > { %v780_v54 = vshll.u32 %v4750_v22, 8  ;;  %v772_v4 = vsel %vm764_vm15, %v751_v5, %v754_v10  ;;  %v773_v12 = vsel %vm767_vm0, %v760_v30, 920167782  ;;  %v4751_v13 = vand.u32 2139095040, %v3485_v45 }
 0x115   : > { %v608_v50 = vxor.u32 2147483648, %v607_v42  ;;  %v899_v39 = vshll.u32 %v898_v17, 30  ;;  %v774_v25 = vsel %vm766_vm1, %v757_v2, %v773_v12  ;;  %v776_v11 = vsel %vm764_vm15, %v754_v10, %v757_v2 }
 0x116   : > { %v1048_v41 = vshrl.u32 %v4751_v13, 23  ;;  %v748_v44 = vshrl.u32 %v4743_v14, %v747_v34  ;;  %vm765_vm8 = vcmp.lt.s32.totalorder %v3542_v15, 2  ;;  %v769_v40 = vsel %vm767_vm0, %v757_v2, 2102212464  ;;  %v301_v13 = vpop.permute.xlu0 %300 }
 0x117   : > { %v777_v58 = vsel %vm767_vm0, %v763_v57, 1326507024  ;;  %v613_v16 = vsel %vm3553_vm12, 0, %v611_v38  ;;  %v3586_v18 = vsub.s32 %v896_v7, %v899_v39  ;;  %v775_v51 = vsel %vm765_vm8, %v772_v4, %v774_v25 }
 0x118   : > { %v778_v35 = vsel %vm766_vm1, %v760_v30, %v777_v58  ;;  %v716_v62 = vsel %vm3416_vm14, %v3216_v49, %v713_v29  ;;  %v768_v34 = vsel %vm764_vm15, %v748_v44, %v751_v5  ;;  %v2642_v61 = vadd.s32 4294967169, %v1048_v41 }
 0x119   : > { %v779_v2 = vsel %vm765_vm8, %v776_v11, %v778_v35  ;;  %v609_v7 = vsel %vm526_vm10, %v608_v50, %v607_v42  ;;  %v902_v38 = vsub.s32 0, %v3586_v18  ;;  %v770_v57 = vsel %vm766_vm1, %v754_v10, %v769_v40 }
 0x11a   : > { %v1051_v30 = vand.u32 8388607, %v4706_v55  ;;  %v3606_v27 = vmul.u32.u64.low %v780_v54, %v779_v2  ;;  %v3607_v22 = vmul.u32.u64.high %v780_v54, %v779_v2, %v3606_v27  ;;  %v3613_v4 = vadd.s32 3, %v613_v16 }
 0x11b   : > { %v3609_v29 = vmul.u32.u64.low %v780_v54, %v775_v51  ;;  %v3610_v5 = vmul.u32.u64.high %v780_v54, %v775_v51, %v3609_v29  ;;  %vm838_vm14 = vcmp.lt.s32.totalorder %v3386_v33, 0  ;;  %v2635_v42 = vmin.u32 %v902_v38, %v3586_v18 }
 0x11c   : > { %v1054_v12 = vadd.s32 1, %v2642_v61  ;;  %2855 = vcosq.f32 %v716_v62  ;;  %v612_v10 = vsel %vm3553_vm12, %v3297_v32, %v609_v7  ;;  %v922_v41 = vsub.s32 4, %v898_v17 }
 0x11d   : > { %v771_v50 = vsel %vm765_vm8, %v768_v34, %v770_v57  ;;  %2857 = vsinq.f32 %v716_v62  ;;  %v904_v39 = vclz %v2635_v42  ;;  %v1052_v25 = vor.u32 8388608, %v1051_v30 }
 0x11e   : > { %vm1055_vm2 = vcmp.gt.s32.totalorder %v1054_v12, 0  ;;  %vm789_vm3 = vc.u32 %v3607_v22, %v3609_v29  ;;  %v790_v11 = vadd.s32 1, %v3610_v5  ;;  %v3626_v40 = vadd.f32 %v301_v13, %v3483_v43 }
 0x11f   : > { %v1056_v44 = vsel %vm1055_vm2, %v1054_v12, 0  ;;  %2859 = vcosq.f32 %v612_v10  ;;  %v2636_v20 = vadd.s32 4294967294, %v904_v39  ;;  %v787_v58 = vmul.u32 %v780_v54, %v771_v50 }
 0x120   : > { %v1058_v16 = vand.u32 31, %v1056_v44  ;;  %2861 = vsinq.f32 %v612_v10  ;;  %v892_v15 = vadd.s32 %v3526_v46, %v3536_v37  ;;  %v3632_v51 = vsel %vm838_vm14, %v922_v41, %v898_v17 }
 0x121   : > { %v791_v35 = vsel %vm789_vm3, %v790_v11, %v3610_v5  ;;  %vm2637_vm4 = vcmp.lt.s32.totalorder %v2636_v20, 0  ;;  %v3639_v61 = vshll.u32 %v1052_v25, 8  ;;  %v1057_v41 = vshrl.u32 %v1056_v44, 5 }
 0x122   : > { %v792_v62 = vadd.s32 %v791_v35, %v787_v58  ;;  %v1059_v34 = vsub.s32 32, %v1058_v16  ;;  %v907_v2 = vsel %vm2637_vm4, 0, %v2636_v20  ;;  %v1061_v54 = vshll.u32 %v4743_v14, %v1058_v16 }
 0x123   : > { %v908_v37 = vsub.s32 32, %v907_v2  ;;  %v912_v7 = vsub.s32 4294967266, %v907_v2  ;;  %v1064_v38 = vshll.u32 %v4744_v56, %v1058_v16  ;;  %v909_v57 = vshll.u32 %v3586_v18, %v907_v2 }
 0x124   : > { %v793_v17 = vadd.s32 536870912, %v792_v62  ;;  %v1062_v30 = vshrl.u32 %v4744_v56, %v1059_v34  ;;  %v1065_v27 = vshrl.u32 %v4745_v19, %v1059_v34  ;;  %v1068_v5 = vshrl.u32 %v4746_v23, %v1059_v34 }
 0x125   : > { %v910_v42 = vshrl.u32 %v892_v15, %v908_v37  ;;  %v913_v12 = vadd.s32 127, %v912_v7  ;;  %v1071_v10 = vshrl.u32 %v4732_v59, %v1059_v34  ;;  %v1067_v39 = vshll.u32 %v4745_v19, %v1058_v16 }
 0x126   : > { %v794_v13 = vshrl.u32 %v793_v17, 30  ;;  %v1063_v50 = vor.u32 %v1062_v30, %v1061_v54  ;;  %v1070_v25 = vshll.u32 %v4746_v23, %v1058_v16  ;;  %v1066_v58 = vor.u32 %v1065_v27, %v1064_v38 }
 0x127   : > { %v911_v11 = vor.u32 %v910_v42, %v909_v57  ;;  %v914_v20 = vshll.u32 %v913_v12, 23  ;;  %v1069_v35 = vor.u32 %v1068_v5, %v1067_v39  ;;  %v1073_v55 = vshll.u32 %v4732_v59, %v1058_v16 }
 0x128   : > { %v795_v18 = vshll.u32 %v794_v13, 30  ;;  %v1072_v2 = vor.u32 %v1071_v10, %v1070_v25  ;;  %v1074_v15 = vshrl.u32 %v4733_v21, %v1059_v34  ;;  %vm734_vm5 = vcmp.lt.s32.totalorder %v3458_v47, 0 }
 0x129   : > { %v3652_v37 = vpop.eup %2855  ;;  %v915_v7 = vor.u32 4788187, %v914_v20  ;;  %v1060_v54 = vshrl.u32 %v4743_v14, %v1059_v34  ;;  %v943_v17 = vand.u32 2139095040, %v3626_v40  ;;  %v818_v38 = vsub.s32 4, %v794_v13 }
 0x12a   : > { %v3655_v44 = vsub.s32 %v792_v62, %v795_v18  ;;  %v3659_v57 = vpop.eup %2857  ;;  %v1075_v30 = vor.u32 %v1074_v15, %v1073_v55  ;;  %vm1076_vm7 = vcmp.lt.s32.totalorder %v1057_v41, 1  ;;  %vm1077_vm9 = vcmp.lt.s32.totalorder %v1057_v41, 2 }
 0x12b   : > { %v916_v16 = vand.u32 2147483647, %v915_v7  ;;  %v918_v27 = vcvt.s32.f32 %v911_v11  ;;  %vm1079_vm10 = vcmp.lt.s32.totalorder %v1057_v41, 4  ;;  %v4752_v62 = vand.u32 2147483647, %v3386_v33 }
 0x12c   : > { %v798_v5 = vsub.s32 0, %v3655_v44  ;;  %v3662_v42 = vpop.eup %2859  ;;  %v4755_v34 = vand.u32 2147483647, %v3458_v47  ;;  %vm1078_vm15 = vcmp.lt.s32.totalorder %v1057_v41, 3  ;;  %v1081_v55 = vsel %vm1079_vm10, %v1069_v35, 2102212464 }
 0x12d   : > { %vm3666_vm11 = vcmp.le.f32.partialorder %v4752_v62, 0.7853982  ;;  %v1084_v39 = vsel %vm1076_vm7, %v1063_v50, %v1066_v58  ;;  %v1085_v25 = vsel %vm1079_vm10, %v1072_v2, 920167782  ;;  %v3677_v11 = vpop.eup %2861  ;;  %v919_v20 = vmul.f32 %v918_v27, %v916_v16 }
 0x12e   : > { %vm3672_vm12 = vcmp.le.f32.partialorder %v4755_v34, 0.7853982  ;;  %v2631_v18 = vmin.u32 %v798_v5, %v3655_v44  ;;  %v1086_v15 = vsel %vm1078_vm15, %v1069_v35, %v1085_v25  ;;  %v1088_v7 = vsel %vm1076_vm7, %v1066_v58, %v1069_v35 }
 0x12f   : > { %v1080_v62 = vsel %vm1076_vm7, %v1060_v54, %v1063_v50  ;;  %v1087_v34 = vsel %vm1077_vm9, %v1084_v39, %v1086_v15  ;;  %v1089_v43 = vsel %vm1079_vm10, %v1075_v30, 1326507024  ;;  %v944_v46 = vshrl.u32 %v943_v17, 23 }
 0x130   : > { %v920_v3 = vxor.u32 2147483648, %v919_v20  ;;  %v800_v1 = vclz %v2631_v18  ;;  %v1082_v9 = vsel %vm1078_vm15, %v1066_v58, %v1081_v55  ;;  %v1090_v0 = vsel %vm1078_vm15, %v1072_v2, %v1089_v43 }
 0x131   : > { %v1091_v16 = vsel %vm1077_vm9, %v1088_v7, %v1090_v0  ;;  %v3688_v27 = vmul.u32.u64.low %v3639_v61, %v1087_v34  ;;  %v3689_v5 = vmul.u32.u64.high %v3639_v61, %v1087_v34, %v3688_v27  ;;  %v2638_v35 = vadd.s32 4294967169, %v944_v46 }
 0x132   : > { %v2632_v25 = vadd.s32 4294967294, %v800_v1  ;;  %v3693_v50 = vmul.u32.u64.low %v3639_v61, %v1091_v16  ;;  %v3694_v54 = vmul.u32.u64.high %v3639_v61, %v1091_v16, %v3693_v50  ;;  %v413_v17 = vxor.u32 2147483648, %v3518_v63 }
 0x133   : > { %v921_v58 = vsel %vm838_vm14, %v920_v3, %v919_v20  ;;  %v3701_v43 = vsel %vm734_vm5, %v818_v38, %v794_v13  ;;  %v4758_v0 = vand.u32 2147483647, %v3626_v40  ;;  %v950_v30 = vadd.s32 1, %v2638_v35 }
 0x134   : > { %vm2633_vm0 = vcmp.lt.s32.totalorder %v2632_v25, 0  ;;  %v1083_v1 = vsel %vm1077_vm9, %v1080_v62, %v1082_v9  ;;  %v416_v46 = vxor.u32 2147483648, %v3514_v53  ;;  %v509_v55 = vsel %vm3410_vm13, 0, %v3476_v36 }
 0x135   : > { %v947_v2 = vand.u32 8388607, %v4758_v0  ;;  %v788_v3 = vadd.s32 %v3609_v29, %v3607_v22  ;;  %v803_v39 = vsel %vm2633_vm0, 0, %v2632_v25  ;;  %v1102_v13 = vadd.s32 1, %v3689_v5 }
 0x136   : > { %vm951_vm1 = vcmp.gt.s32.totalorder %v950_v30, 0  ;;  %v924_v38 = vsel %vm3666_vm11, %v3386_v33, %v921_v58  ;;  %v804_v20 = vsub.s32 32, %v803_v39  ;;  %v808_v41 = vsub.s32 4294967266, %v803_v39 }
 0x137   : > { %v821_v9 = vsel %vm3672_vm12, 0, %v3701_v43  ;;  %v1099_v52 = vmul.u32 %v3639_v61, %v1083_v1  ;;  %vm1101_vm13 = vc.u32 %v3694_v54, %v3688_v27  ;;  %v948_v36 = vor.u32 8388608, %v947_v2 }
 0x138   : > { %v952_v22 = vsel %vm951_vm1, %v950_v30, 0  ;;  %v805_v29 = vshll.u32 %v3655_v44, %v803_v39  ;;  %v806_v18 = vshrl.u32 %v788_v3, %v804_v20  ;;  %v809_v15 = vadd.s32 127, %v808_v41 }
 0x139   : > { %v1103_v7 = vsel %vm1101_vm13, %v1102_v13, %v3689_v5  ;;  %2863 = vcosq.f32 %v924_v38  ;;  %v954_v34 = vand.u32 31, %v952_v22  ;;  %v4759_v16 = vsel %vm3381_vm6, 0, %v3405_v48 }
 0x13a   : > { %v1104_v62 = vadd.s32 %v1103_v7, %v1099_v52  ;;  %v409_v35 = vadd.s32 3, %v4759_v16  ;;  %v807_v61 = vor.u32 %v806_v18, %v805_v29  ;;  %v810_v25 = vshll.u32 %v809_v15, 23 }
 0x13b   : > { %v3728_v50 = vadd.s32 3, %v509_v55  ;;  %v517_v58 = vxor.u32 2147483648, %v3523_v6  ;;  %2865 = vsinq.f32 %v924_v38  ;;  %v953_v0 = vshrl.u32 %v952_v22, 5 }
 0x13c   : > { %v1105_v44 = vadd.s32 536870912, %v1104_v62  ;;  %v955_v2 = vsub.s32 32, %v954_v34  ;;  %v811_v30 = vor.u32 4788187, %v810_v25  ;;  %v814_v5 = vcvt.s32.f32 %v807_v61 }
 0x13d   : > { %v957_v1 = vshll.u32 %v4743_v14, %v954_v34  ;;  %v960_v3 = vshll.u32 %v4744_v56, %v954_v34  ;;  %v963_v55 = vshll.u32 %v4745_v19, %v954_v34  ;;  %v966_v20 = vshll.u32 %v4746_v23, %v954_v34 }
 0x13e   : > { %v3733_v28 = vshrl.u32 %v1105_v44, 30  ;;  %v958_v48 = vshrl.u32 %v4744_v56, %v955_v2  ;;  %v961_v39 = vshrl.u32 %v4745_v19, %v955_v2  ;;  %v812_v13 = vand.u32 2147483647, %v811_v30 }
 0x13f   : > { %v964_v38 = vshrl.u32 %v4746_v23, %v955_v2  ;;  %v967_v41 = vshrl.u32 %v4732_v59, %v955_v2  ;;  %v969_v18 = vshll.u32 %v4732_v59, %v954_v34  ;;  %v970_v16 = vshrl.u32 %v4733_v21, %v955_v2 }
 0x140   : > { %v1107_v52 = vshll.u32 %v3733_v28, 30  ;;  %v959_v22 = vor.u32 %v958_v48, %v957_v1  ;;  %v962_v29 = vor.u32 %v961_v39, %v960_v3  ;;  %v815_v15 = vmul.f32 %v814_v5, %v812_v13 }
 0x141   : > { %v965_v7 = vor.u32 %v964_v38, %v963_v55  ;;  %v968_v56 = vor.u32 %v967_v41, %v966_v20  ;;  %vm972_vm6 = vcmp.lt.s32.totalorder %v953_v0, 1  ;;  %v3746_v19 = vshll.u32 %v948_v36, 8 }
 0x142   : > { %v3744_v61 = vsub.s32 %v1104_v62, %v1107_v52  ;;  %v410_v25 = vand.u32 3, %v409_v35  ;;  %v816_v23 = vxor.u32 2147483648, %v815_v15  ;;  %v956_v44 = vshrl.u32 %v4743_v14, %v955_v2 }
 0x143   : > { %v971_v30 = vor.u32 %v970_v16, %v969_v18  ;;  %vm975_vm8 = vcmp.lt.s32.totalorder %v953_v0, 4  ;;  %vm974_vm14 = vcmp.lt.s32.totalorder %v953_v0, 3  ;;  %v980_v34 = vsel %vm972_vm6, %v959_v22, %v962_v29 }
 0x144   : > { %v1110_v1 = vsub.s32 0, %v3744_v61  ;;  %v977_v59 = vsel %vm975_vm8, %v965_v7, 2102212464  ;;  %v817_v21 = vsel %vm734_vm5, %v816_v23, %v815_v15  ;;  %v976_v62 = vsel %vm972_vm6, %v956_v44, %v959_v22 }
 0x145   : > { %v978_v36 = vsel %vm974_vm14, %v962_v29, %v977_v59  ;;  %v981_v35 = vsel %vm975_vm8, %v968_v56, 920167782  ;;  %vm973_vm2 = vcmp.lt.s32.totalorder %v953_v0, 2  ;;  %v984_v5 = vsel %vm972_vm6, %v962_v29, %v965_v7 }
 0x146   : > { %v2643_v14 = vmin.u32 %v1110_v1, %v3744_v61  ;;  %v982_v2 = vsel %vm974_vm14, %v965_v7, %v981_v35  ;;  %v3760_v3 = vpop.eup %2863  ;;  %v820_v48 = vsel %vm3672_vm12, %v3458_v47, %v817_v21  ;;  %v985_v55 = vsel %vm975_vm8, %v971_v30, 1326507024 }
 0x147   : > { %v983_v39 = vsel %vm973_vm2, %v980_v34, %v982_v2  ;;  %vm412_vm3 = vcmp.eq.s32.totalorder %v410_v25, 0  ;;  %v979_v38 = vsel %vm973_vm2, %v976_v62, %v978_v36  ;;  %v986_v20 = vsel %vm974_vm14, %v968_v56, %v985_v55 }
 0x148   : > { %v1112_v13 = vclz %v2643_v14  ;;  %v414_v41 = vsel %vm412_vm3, %v3514_v53, %v413_v17  ;;  %v3770_v52 = vpop.eup %2865  ;;  %v987_v22 = vsel %vm973_vm2, %v984_v5, %v986_v20  ;;  %vm408_vm4 = vweird.f32 %v3200_v24 }
 0x149   : > { %v3773_v29 = vmul.u32.u64.low %v3746_v19, %v983_v39  ;;  %v3774_v18 = vmul.u32.u64.high %v3746_v19, %v983_v39, %v3773_v29  ;;  %vm415_vm5 = vcmp.eq.s32.totalorder %v410_v25, 2  ;;  %vm512_vm7 = vweird.f32 %v3205_v31 }
 0x14a   : > { %v2644_v15 = vadd.s32 4294967294, %v1112_v13  ;;  %v3780_v0 = vmul.u32.u64.low %v3746_v19, %v987_v22  ;;  %v3781_v7 = vmul.u32.u64.high %v3746_v19, %v987_v22, %v3780_v0  ;;  %v417_v17 = vsel %vm415_vm5, %v416_v46, %v3518_v63 }
 0x14b   : > { %2867 = vcosq.f32 %v820_v48  ;;  %v1100_v56 = vadd.s32 %v3688_v27, %v3694_v54  ;;  %vm411_vm9 = vcmp.lt.s32.totalorder %v410_v25, 2  ;;  %v514_v16 = vand.u32 3, %v3728_v50 }
 0x14c   : > { %2869 = vsinq.f32 %v820_v48  ;;  %vm2645_vm10 = vcmp.lt.s32.totalorder %v2644_v15, 0  ;;  %v995_v23 = vmul.u32 %v3746_v19, %v979_v38  ;;  %v520_v44 = vxor.u32 2147483648, %v3520_v26 }
 0x14d   : > { %v1115_v30 = vsel %vm2645_vm10, 0, %v2644_v15  ;;  %v998_v1 = vadd.s32 1, %v3774_v18  ;;  %v418_v59 = vsel %vm411_vm9, %v414_v41, %v417_v17  ;;  %vm1184_vm15 = vcmask 130048  }
 0x14e   : > { %v1116_v53 = vsub.s32 32, %v1115_v30  ;;  %v1120_v63 = vsub.s32 4294967266, %v1115_v30  ;;  %vm516_vm0 = vcmp.eq.s32.totalorder %v514_v16, 0  ;;  %v618_v46 = vand.u32 3, %v3613_v4 }
 0x14f   : > { %vm997_vm1 = vc.u32 %v3781_v7, %v3773_v29  ;;  %vm515_vm13 = vcmp.lt.s32.totalorder %v514_v16, 2  ;;  %v518_v27 = vsel %vm516_vm0, %v3520_v26, %v517_v58  ;;  %vm519_vm6 = vcmp.eq.s32.totalorder %v514_v16, 2 }
 0x150   : > { %v1118_v54 = vshrl.u32 %v1100_v56, %v1116_v53  ;;  %v1121_v50 = vadd.s32 127, %v1120_v63  ;;  %v999_v19 = vsel %vm997_vm1, %v998_v1, %v3774_v18  ;;  %v521_v25 = vsel %vm519_vm6, %v520_v44, %v3523_v6 }
 0x151   : > { %v1117_v34 = vshll.u32 %v3744_v61, %v1115_v30  ;;  %v1000_v21 = vadd.s32 %v999_v19, %v995_v23  ;;  %v522_v62 = vsel %vm515_vm13, %v518_v27, %v521_v25  ;;  %v621_v4 = vxor.u32 2147483648, %v3677_v11 }
 0x152   : > { %v1122_v36 = vshll.u32 %v1121_v50, 23  ;;  %v419_v35 = vsel %vm408_vm4, nan, %v418_v59  ;;  %v523_v26 = vsel %vm512_vm7, nan, %v522_v62  ;;  %vm620_vm8 = vcmp.eq.s32.totalorder %v618_v46, 0 }
 0x153   : > { %v1119_v58 = vor.u32 %v1118_v54, %v1117_v34  ;;  %v1001_v14 = vadd.s32 536870912, %v1000_v21  ;;  %v1150_v2 = vpack.c.bf16 %v523_v26, %v419_v35  ;;  %v624_v5 = vxor.u32 2147483648, %v3662_v42 }
 0x154   : > { %v1123_v6 = vor.u32 4788187, %v1122_v36  ;;  %v622_v61 = vsel %vm620_vm8, %v3662_v42, %v621_v4  ;;  %vm623_vm14 = vcmp.eq.s32.totalorder %v618_v46, 2  ;;  %v722_v48 = vand.u32 3, %v3480_v60 }
 0x155   : > { %v3809_v39 = vshrl.u32 %v1001_v14, 30  ;;  %2652 = vmatmul.mubr.msk.bf16.vlgmr.msra.gmra.mxu1 %vm1184_vm15, %v1150_v2  ;;  %v1154_v24 = vunpack.c.l.bf16 %v1150_v2  ;;  %v1155_v55 = vunpack.c.h.bf16 %v1150_v2  ;;  %v625_v31 = vsel %vm623_vm14, %v624_v5, %v3677_v11 }
 0x156   : > { %v825_v13 = vadd.s32 3, %v821_v9  ;;  %v1124_v38 = vand.u32 2147483647, %v1123_v6  ;;  %v4760_v20 = vmov 0   ;;  %vm619_vm2 = vcmp.lt.s32.totalorder %v618_v46, 2 }
 0x157   : > { %1324 = vmatprep.mubr.bf16.mxu1 %v4760_v20  ;;  %v1126_v42 = vcvt.s32.f32 %v1119_v58  ;;  %v1003_v60 = vshll.u32 %v3809_v39, 30  ;;  %v1162_v41 = vsub.f32 %v419_v35, %v1154_v24  ;;  %v1163_v22 = vsub.f32 %v523_v26, %v1155_v55 }
 0x158   : > { %v2868_v18 = vpop.eup %2867  ;;  %v925_v15 = vsel %vm3666_vm11, 0, %v3632_v51  ;;  %vm1046_vm3 = vcmp.lt.s32.totalorder %v3485_v45, 0  ;;  %v626_v10 = vsel %vm619_vm2, %v622_v61, %v625_v31  ;;  %vm724_vm4 = vcmp.eq.s32.totalorder %v722_v48, 0 }
 0x159   : > { %v725_v11 = vxor.u32 2147483648, %v3659_v57  ;;  %v2870_v43 = vpop.eup %2869  ;;  %v1127_v9 = vmul.f32 %v1126_v42, %v1124_v38  ;;  %v3824_v0 = vsub.s32 %v1000_v21, %v1003_v60  ;;  %v1170_v17 = vpack.c.bf16 %v1163_v22, %v1162_v41 }
 0x15a   : > { %v728_v56 = vxor.u32 2147483648, %v3652_v37  ;;  %vm616_vm12 = vweird.f32 %v3297_v32  ;;  %vm723_vm5 = vcmp.lt.s32.totalorder %v722_v48, 2  ;;  %vm727_vm7 = vcmp.eq.s32.totalorder %v722_v48, 2 }
 0x15b   : > { %v726_v16 = vsel %vm724_vm4, %v3652_v37, %v725_v11  ;;  %v1006_v51 = vsub.s32 0, %v3824_v0  ;;  %2648 = vmatmul.mubr.msk.bf16.vlgmr.msra.gmra.mxu0 %vm1184_vm15, %v1170_v17  ;;  %v627_v12 = vsel %vm616_vm12, nan, %v626_v10  ;;  %v826_v44 = vand.u32 3, %v825_v13 }
 0x15c   : > { %v729_v23 = vsel %vm727_vm7, %v728_v56, %v3659_v57  ;;  %vm720_vm11 = vweird.f32 %v3216_v49  ;;  %1239 = vmatprep.mubr.bf16.mxu0 %v4760_v20  ;;  %v829_v1 = vxor.u32 2147483648, %v2870_v43  ;;  %v832_v59 = vxor.u32 2147483648, %v2868_v18 }
 0x15d   : > { %v730_v30 = vsel %vm723_vm5, %v726_v16, %v729_v23  ;;  %v929_v32 = vadd.s32 3, %v925_v15  ;;  %v1128_v53 = vxor.u32 2147483648, %v1127_v9  ;;  %v2639_v37 = vmin.u32 %v1006_v51, %v3824_v0 }
 0x15e   : > { %v731_v63 = vsel %vm720_vm11, nan, %v730_v30  ;;  %v996_v46 = vadd.s32 %v3773_v29, %v3781_v7  ;;  %vm828_vm9 = vcmp.eq.s32.totalorder %v826_v44, 0  ;;  %vm831_vm10 = vcmp.eq.s32.totalorder %v826_v44, 2 }
 0x15f   : > { %v1151_v27 = vpack.c.bf16 %v731_v63, %v627_v12  ;;  %v1008_v57 = vclz %v2639_v37  ;;  %vm827_vm0 = vcmp.lt.s32.totalorder %v826_v44, 2  ;;  %v830_v54 = vsel %vm828_vm9, %v2868_v18, %v829_v1 }
 0x160   : > { %v833_v49 = vsel %vm831_vm10, %v832_v59, %v2870_v43  ;;  %vm824_vm1 = vweird.f32 %v3458_v47  ;;  %v1129_v34 = vsel %vm1046_vm3, %v1128_v53, %v1127_v9  ;;  %v930_v29 = vand.u32 3, %v929_v32 }
 0x161   : > { %2653 = vmatmul.mubr.msk.bf16.gmra.mxu1 %vm1184_vm15, %v1151_v27  ;;  %v1156_v50 = vunpack.c.l.bf16 %v1151_v27  ;;  %v1157_v19 = vunpack.c.h.bf16 %v1151_v27  ;;  %v834_v25 = vsel %vm827_vm0, %v830_v54, %v833_v49  ;;  %v2640_v21 = vadd.s32 4294967294, %v1008_v57 }
 0x162   : > { %1334 = vmatprep.mubr.bf16.mxu1 %v4760_v20  ;;  %v933_v7 = vxor.u32 2147483648, %v3770_v52  ;;  %v835_v36 = vsel %vm824_vm1, nan, %v834_v25  ;;  %v936_v35 = vxor.u32 2147483648, %v3760_v3  ;;  %vm931_vm6 = vcmp.lt.s32.totalorder %v930_v29, 2 }
 0x163   : > { %v1164_v62 = vsub.f32 %v627_v12, %v1156_v50  ;;  %v1165_v4 = vsub.f32 %v731_v63, %v1157_v19  ;;  %vm2641_vm13 = vcmp.lt.s32.totalorder %v2640_v21, 0  ;;  %vm932_vm8 = vcmp.eq.s32.totalorder %v930_v29, 0 }
 0x164   : > { %vm935_vm14 = vcmp.eq.s32.totalorder %v930_v29, 2  ;;  %v1011_v47 = vsel %vm2641_vm13, 0, %v2640_v21  ;;  %v934_v58 = vsel %vm932_vm8, %v3760_v3, %v933_v7  ;;  %vm928_vm2 = vweird.f32 %v3386_v33 }
 0x165   : > { %v1171_v26 = vpack.c.bf16 %v1165_v4, %v1164_v62  ;;  %v937_v14 = vsel %vm935_vm14, %v936_v35, %v3770_v52  ;;  %v1012_v2 = vsub.s32 32, %v1011_v47  ;;  %v1016_v5 = vsub.s32 4294967266, %v1011_v47 }
 0x166   : > { %v938_v6 = vsel %vm931_vm6, %v934_v58, %v937_v14  ;;  %v4761_v61 = vand.u32 2147483647, %v3485_v45  ;;  %v1013_v55 = vshll.u32 %v3824_v0, %v1011_v47  ;;  %v1130_v15 = vsub.s32 4, %v3733_v28 }
 0x167   : > { %2649 = vmatmul.mubr.msk.bf16.gmra.mxu0 %vm1184_vm15, %v1171_v26  ;;  %v939_v24 = vsel %vm928_vm2, nan, %v938_v6  ;;  %v1014_v31 = vshrl.u32 %v996_v46, %v1012_v2  ;;  %v1017_v3 = vadd.s32 127, %v1016_v5  ;;  %vm942_vm12 = vcmp.lt.s32.totalorder %v3626_v40, 0 }
 0x168   : > { %vm3849_vm4 = vcmp.le.f32.partialorder %v4761_v61, 0.7853982  ;;  %v1152_v13 = vpack.c.bf16 %v939_v24, %v835_v36  ;;  %1249 = vmatprep.mubr.bf16.mxu0 %v4760_v20  ;;  %v1131_v0 = vsel %vm1046_vm3, %v1130_v15, %v3733_v28  ;;  %v1026_v56 = vsub.s32 4, %v3809_v39 }
 0x169   : > { %v1132_v33 = vsel %vm3849_vm4, %v3485_v45, %v1129_v34  ;;  %v1015_v52 = vor.u32 %v1014_v31, %v1013_v55  ;;  %v1018_v38 = vshll.u32 %v1017_v3, 23  ;;  %v4764_v16 = vand.u32 2147483647, %v3626_v40 }
 0x16a   : > { %2654 = vmatmul.mubr.msk.bf16.gmra.mxu1 %vm1184_vm15, %v1152_v13  ;;  %v1158_v42 = vunpack.c.l.bf16 %v1152_v13  ;;  %v1159_v60 = vunpack.c.h.bf16 %v1152_v13  ;;  %2871 = vcosq.f32 %v1132_v33  ;;  %v1133_v12 = vsel %vm3849_vm4, 0, %v1131_v0 }
 0x16b   : > { %1344 = vmatprep.mubr.bf16.mxu1 %v4760_v20  ;;  %v1019_v41 = vor.u32 4788187, %v1018_v38  ;;  %2873 = vsinq.f32 %v1132_v33  ;;  %v1022_v11 = vcvt.s32.f32 %v1015_v52  ;;  %vm941_vm5 = vcmp.le.f32.partialorder %v4764_v16, 0.7853982 }
 0x16c   : > { %v1166_v22 = vsub.f32 %v835_v36, %v1158_v42  ;;  %v1167_v18 = vsub.f32 %v939_v24, %v1159_v60  ;;  %v1137_v44 = vadd.s32 3, %v1133_v12  ;;  %vm1136_vm0 = vweird.f32 %v3485_v45 }
 0x16d   : > { %v1020_v10 = vand.u32 2147483647, %v1019_v41  ;;  %vm1032_vm13 = vweird.f32 %v3626_v40 }
 0x16e   : > { %v1172_v43 = vpack.c.bf16 %v1167_v18, %v1166_v22  ;;  %v1138_v59 = vand.u32 3, %v1137_v44 }
 0x16f   : > { %v1023_v9 = vmul.f32 %v1022_v11, %v1020_v10 }
 0x170   : > { %2650 = vmatmul.mubr.msk.bf16.gmra.mxu0 %vm1184_vm15, %v1172_v43  ;;  %vm1140_vm3 = vcmp.eq.s32.totalorder %v1138_v59, 0  ;;  %vm1143_vm7 = vcmp.eq.s32.totalorder %v1138_v59, 2  ;;  %vm1139_vm11 = vcmp.lt.s32.totalorder %v1138_v59, 2 }
 0x171   : > { %1259 = vmatprep.mubr.bf16.mxu0 %v4760_v20  ;;  %v1024_v17 = vxor.u32 2147483648, %v1023_v9  ;;  %v1027_v20 = vsel %vm942_vm12, %v1026_v56, %v3809_v39 }
 0x172   : > { %v1029_v1 = vsel %vm941_vm5, 0, %v1027_v20 }
 0x173   : > { %v1025_v51 = vsel %vm942_vm12, %v1024_v17, %v1023_v9  ;;  %v1033_v32 = vadd.s32 3, %v1029_v1 }
 0x174   : > { %v1028_v23 = vsel %vm941_vm5, %v3626_v40, %v1025_v51 }
 0x175   : > { %2875 = vcosq.f32 %v1028_v23  ;;  %v1034_v63 = vand.u32 3, %v1033_v32 }
 0x176   : > { %2877 = vsinq.f32 %v1028_v23 }
 0x177   : > { %v2872_v28 = vpop.eup %2871  ;;  %vm1039_vm9 = vcmp.eq.s32.totalorder %v1034_v63, 2  ;;  %vm1036_vm10 = vcmp.eq.s32.totalorder %v1034_v63, 0  ;;  %vm1035_vm1 = vcmp.lt.s32.totalorder %v1034_v63, 2 }
 0x178   : > { %v2874_v30 = vpop.eup %2873  ;;  %v1144_v37 = vxor.u32 2147483648, %v2872_v28 }
 0x179   : > { %v1141_v53 = vxor.u32 2147483648, %v2874_v30 }
 0x17a   : > { %v1145_v27 = vsel %vm1143_vm7, %v1144_v37, %v2874_v30 }
 0x17b   : > { %v1142_v46 = vsel %vm1140_vm3, %v2872_v28, %v1141_v53 }
 0x17c   : > { %v1146_v50 = vsel %vm1139_vm11, %v1142_v46, %v1145_v27 }
 0x17d   : > { %v1147_v34 = vsel %vm1136_vm0, nan, %v1146_v50 }
 0x182   : > { %v2876_v57 = vpop.eup %2875 }
 0x183   : > { %v2878_v54 = vpop.eup %2877  ;;  %v1040_v49 = vxor.u32 2147483648, %v2876_v57 }
 0x184   : > { %v1037_v39 = vxor.u32 2147483648, %v2878_v54 }
 0x185   : > { %v1041_v19 = vsel %vm1039_vm9, %v1040_v49, %v2878_v54 }
 0x186   : > { %v1038_v25 = vsel %vm1036_vm10, %v2876_v57, %v1037_v39 }
 0x187   : > { %v1042_v21 = vsel %vm1035_vm1, %v1038_v25, %v1041_v19 }
 0x188   : > { %v1043_v29 = vsel %vm1032_vm13, nan, %v1042_v21 }
 0x189   : > { %v1153_v7 = vpack.c.bf16 %v1147_v34, %v1043_v29 }
 0x18b   : > { %2655 = vmatmul.mubr.msk.bf16.gmra.mxu1 %vm1184_vm15, %v1153_v7  ;;  %v1160_v62 = vunpack.c.l.bf16 %v1153_v7  ;;  %v1161_v4 = vunpack.c.h.bf16 %v1153_v7 }
 0x18d   : > { %v1168_v36 = vsub.f32 %v1043_v29, %v1160_v62  ;;  %v1169_v35 = vsub.f32 %v1147_v34, %v1161_v4 }
 0x18f   : > { %v1173_v47 = vpack.c.bf16 %v1169_v35, %v1168_v36 }
 0x191   : > { %2651 = vmatmul.mubr.msk.bf16.gmra.mxu0 %vm1184_vm15, %v1173_v47 }
 0x215   : > { %v1316_v45 = vpop.f32.mrf.mxu1 }
 0x217   : > { %v1318_v26 = vpop.f32.mrf.mxu1 }
 0x219   : > { %v1320_v58 = vpop.f32.mrf.mxu1 }
 0x21b   : > { %v1231_v40 = vpop.f32.mrf.mxu0  ;;  %v1322_v2 = vpop.f32.mrf.mxu1 }
 0x21c   : > { %v1317_v14 = vadd.f32 %v1316_v45, %v1231_v40 }
 0x21d   : > { %v1233_v5 = vpop.f32.mrf.mxu0 }
 0x21e   : > { %1355 = vst [vmem:[%s3174_s8] sm:$0xff] %v1317_v14  ;;  %v1319_v6 = vadd.f32 %v1318_v26, %v1233_v5 }
 0x21f   : > { %v1235_v61 = vpop.f32.mrf.mxu0 }
 0x220   : > { %1356 = vst [vmem:[%s3174_s8 + $0x8] sm:$0xff] %v1319_v6  ;;  %v1321_v24 = vadd.f32 %v1320_v58, %v1235_v61 }
 0x221   : > { %v1326_v48 = vpop.f32.mrf.mxu1  ;;  %v1237_v55 = vpop.f32.mrf.mxu0 }
 0x222   : > { %1357 = vst [vmem:[%s3174_s8 + $0x10] sm:$0xff] %v1321_v24  ;;  %v1323_v3 = vadd.f32 %v1322_v2, %v1237_v55 }
 0x223   : > { %v1328_v31 = vpop.f32.mrf.mxu1 }
 0x224   : > { %1358 = vst [vmem:[%s3174_s8 + $0x18] sm:$0xff] %v1323_v3 }
 0x225   : > { %v1330_v13 = vpop.f32.mrf.mxu1 }
 0x227   : > { %v1241_v33 = vpop.f32.mrf.mxu0  ;;  %v1332_v52 = vpop.f32.mrf.mxu1 }
 0x228   : > { %v1327_v38 = vadd.f32 %v1326_v48, %v1241_v33 }
 0x229   : > { %v1243_v42 = vpop.f32.mrf.mxu0 }
 0x22a   : > { %1359 = vst [vmem:[%s3174_s8 + $0x20] sm:$0xff] %v1327_v38  ;;  %v1329_v60 = vadd.f32 %v1328_v31, %v1243_v42  ;;  %v1336_v41 = vpop.f32.mrf.mxu1 }
 0x22b   : > { %v1245_v22 = vpop.f32.mrf.mxu0 }
 0x22c   : > { %1360 = vst [vmem:[%s3174_s8 + $0x28] sm:$0xff] %v1329_v60  ;;  %v1331_v18 = vadd.f32 %v1330_v13, %v1245_v22  ;;  %v1338_v10 = vpop.f32.mrf.mxu1 }
 0x22d   : > { %v1247_v15 = vpop.f32.mrf.mxu0 }
 0x22e   : > { %1361 = vst [vmem:[%s3174_s8 + $0x30] sm:$0xff] %v1331_v18  ;;  %v1333_v11 = vadd.f32 %v1332_v52, %v1247_v15  ;;  %v1340_v0 = vpop.f32.mrf.mxu1 }
 0x230   : > { %1362 = vst [vmem:[%s3174_s8 + $0x38] sm:$0xff] %v1333_v11  ;;  %v1251_v43 = vpop.f32.mrf.mxu0  ;;  %v1342_v12 = vpop.f32.mrf.mxu1 }
 0x231   : > { %v1337_v9 = vadd.f32 %v1336_v41, %v1251_v43 }
 0x232   : > { %v1253_v17 = vpop.f32.mrf.mxu0 }
 0x233   : > { %1363 = vst [vmem:[%s3174_s8 + $0x40] sm:$0xff] %v1337_v9  ;;  %v1339_v56 = vadd.f32 %v1338_v10, %v1253_v17 }
 0x234   : > { %v1255_v16 = vpop.f32.mrf.mxu0 }
 0x235   : > { %1364 = vst [vmem:[%s3174_s8 + $0x48] sm:$0xff] %v1339_v56  ;;  %v1341_v51 = vadd.f32 %v1340_v0, %v1255_v16 }
 0x236   : > { %v1257_v23 = vpop.f32.mrf.mxu0 }
 0x237   : > { %1365 = vst [vmem:[%s3174_s8 + $0x50] sm:$0xff] %v1341_v51  ;;  %v1343_v20 = vadd.f32 %v1342_v12, %v1257_v23 }
 0x239   : > { %1366 = vst [vmem:[%s3174_s8 + $0x58] sm:$0xff] %v1343_v20 }
 0x24b   : > { %v1346_v44 = vpop.f32.mrf.mxu1 }
 0x24d   : > { %v1348_v28 = vpop.f32.mrf.mxu1 }
 0x24f   : > { %v1350_v59 = vpop.f32.mrf.mxu1 }
 0x251   : > { %v1261_v30 = vpop.f32.mrf.mxu0  ;;  %v1352_v46 = vpop.f32.mrf.mxu1 }
 0x252   : > { %v1347_v1 = vadd.f32 %v1346_v44, %v1261_v30 }
 0x253   : > { %v1263_v32 = vpop.f32.mrf.mxu0 }
 0x254   : > { %1367 = vst [vmem:[%s3174_s8 + $0x60] sm:$0xff] %v1347_v1  ;;  %v1349_v53 = vadd.f32 %v1348_v28, %v1263_v32 }
 0x255   : > { %v1265_v37 = vpop.f32.mrf.mxu0 }
 0x256   : > { %1368 = vst [vmem:[%s3174_s8 + $0x68] sm:$0xff] %v1349_v53  ;;  %v1351_v63 = vadd.f32 %v1350_v59, %v1265_v37 }
 0x257   : > { %v1267_v27 = vpop.f32.mrf.mxu0 }
 0x258   : > { %1369 = vst [vmem:[%s3174_s8 + $0x70] sm:$0xff] %v1351_v63  ;;  %v1353_v57 = vadd.f32 %v1352_v46, %v1267_v27 }
 0x25a   : > { %1370 = vst [vmem:[%s3174_s8 + $0x78] sm:$0xff] %v1353_v57 }
 0x25b PF: > { %p2656_p12 = scmp.ne.s32.totalorder %s2984_s18, 1 }
 0x25d   : > { %1374 = sbr.rel (%p2656_p12) target bundleno = 1181 (0x49d), region = 44 }
 0x262   : > { %v4712_v54 = vmov 0   ;;  %v4765_v49 = vld [vmem:[#allocation5_spill] sm:$0xff]  ;;  %v4767_v39 = vld [vmem:[#allocation6_spill] sm:$0xff]  ;;  %v4768_v19 = vld [vmem:[#allocation8_spill] sm:$0xff]  ;;  %v1375_v45 = vlaneseq  ;;  %v3002_v23 = vmov 683565275  }
 0x263   : > { %2880 = vset.pattern.permute.xlu1 %v4712_v54  ;;  %2879 = vset.pattern.permute.xlu0 %v4712_v54  ;;  %v4766_v50 = vld [vmem:[#allocation13_spill] sm:$0xff]  ;;  %v4769_v25 = vld [vmem:[#allocation7_spill] sm:$0xff]  ;;  %v4771_v21 = vld [vmem:[#allocation14_spill] sm:$0xff]  ;;  %v3003_v44 = vmov 2475754826  }
 0x264   : > { %1429 = vperm.xlu1 %2880, %v3137_v8   ;;  %1381 = vperm.xlu0 %2879, %v4765_v49   ;;  %v4770_v34 = vld [vmem:[#allocation15_spill] sm:$0xff]  ;;  %v4772_v29 = vld [vmem:[#allocation10_spill] sm:$0xff]  ;;  %v4773_v8 = vld [vmem:[#allocation9_spill] sm:$0xff]  ;;  %v1376_v26 = vand.u32 127, %v1375_v45  ;;  %v3004_v1 = vmov 2131351028  }
 0x265   : > { %2473 = vmatprep.mubr.bf16.mxu1 %v4712_v54  ;;  %2388 = vmatprep.mubr.bf16.mxu0 %v4712_v54  ;;  %v4774_v7 = vld [vmem:[#allocation17_spill] sm:$0xff]  ;;  %v4775_v62 = vld [vmem:[#allocation16_spill] sm:$0xff]  ;;  %v4777_v36 = vld [vmem:[#allocation11_spill] sm:$0xff]  ;;  %v3005_v32 = vmov 2102212464  }
 0x266   : > { %v4776_v4 = vld [vmem:[#allocation12_spill] sm:$0xff]  ;;  %v4778_v35 = vld [vmem:[#allocation19_spill] sm:$0xff]  ;;  %v4779_v47 = vld [vmem:[#allocation18_spill] sm:$0xff]  ;;  %v1377_v58 = vadd.s32 1, %v1376_v26  ;;  %v3006_v37 = vmov 920167782  }
 0x268   : > { %1434 = vperm.xlu1 %2880, %v4766_v50   ;;  %1386 = vperm.xlu0 %2879, %v4767_v39   ;;  %v3916_v40 = vcvt.s32.f32 %v1377_v58  ;;  %v4714_v39 = vmov 1326507024  }
 0x26c   : > { %1396 = vperm.xlu1 %2880, %v4768_v19   ;;  %1391 = vperm.xlu0 %2879, %v4769_v25  }
 0x270   : > { %1444 = vperm.xlu1 %2880, %v4770_v34   ;;  %1439 = vperm.xlu0 %2879, %v4771_v21  }
 0x274   : > { %1406 = vperm.xlu1 %2880, %v4772_v29   ;;  %1401 = vperm.xlu0 %2879, %v4773_v8  }
 0x278   : > { %1454 = vperm.xlu1 %2880, %v4774_v7   ;;  %1449 = vperm.xlu0 %2879, %v4775_v62  }
 0x27c   : > { %1416 = vperm.xlu1 %2880, %v4776_v4   ;;  %1411 = vperm.xlu0 %2879, %v4777_v36  }
 0x280   : > { %1464 = vperm.xlu1 %2880, %v4778_v35   ;;  %1459 = vperm.xlu0 %2879, %v4779_v47  }
 0x2df   : > { %v1430_v14 = vpop.permute.xlu1 %1429  ;;  %v1382_v2 = vpop.permute.xlu0 %1381 }
 0x2e0   : > { %v1419_v5 = vmul.f32 %v1382_v2, %v3916_v40 }
 0x2e2   : > { %v3919_v6 = vadd.f32 %v1430_v14, %v1419_v5 }
 0x2e3   : > { %v1435_v61 = vpop.permute.xlu1 %1434  ;;  %v1387_v48 = vpop.permute.xlu0 %1386 }
 0x2e4   : > { %v1475_v24 = vand.u32 2147483647, %v3919_v6  ;;  %v1478_v55 = vand.u32 2139095040, %v3919_v6  ;;  %v1420_v31 = vmul.f32 %v1387_v48, %v3916_v40 }
 0x2e6   : > { %v1479_v3 = vshrl.u32 %v1478_v55, 23  ;;  %v3924_v13 = vadd.f32 %v1435_v61, %v1420_v31  ;;  %v1482_v33 = vand.u32 8388607, %v1475_v24 }
 0x2e7   : > { %v1397_v52 = vpop.permute.xlu1 %1396 }
 0x2e8   : > { %v2657_v38 = vadd.s32 4294967169, %v1479_v3  ;;  %v1579_v42 = vand.u32 2147483647, %v3924_v13  ;;  %v1582_v60 = vand.u32 2139095040, %v3924_v13  ;;  %v1483_v22 = vor.u32 8388608, %v1482_v33 }
 0x2e9   : > { %v1422_v9 = vmul.f32 %v1397_v52, %v3916_v40 }
 0x2ea   : > { %v1485_v41 = vadd.s32 1, %v2657_v38  ;;  %v1583_v18 = vshrl.u32 %v1582_v60, 23  ;;  %v1586_v15 = vand.u32 8388607, %v1579_v42  ;;  %v3933_v56 = vshll.u32 %v1483_v22, 8 }
 0x2eb   : > { %v1445_v10 = vpop.permute.xlu1 %1444 }
 0x2ec   : > { %vm1486_vm15 = vcmp.gt.s32.totalorder %v1485_v41, 0  ;;  %v2661_v43 = vadd.s32 4294967169, %v1583_v18  ;;  %v1587_v16 = vor.u32 8388608, %v1586_v15  ;;  %v3935_v51 = vadd.f32 %v1445_v10, %v1422_v9 }
 0x2ed   : > { %v1487_v11 = vsel %vm1486_vm15, %v1485_v41, 0 }
 0x2ee   : > { %v1488_v0 = vshrl.u32 %v1487_v11, 5  ;;  %v1489_v17 = vand.u32 31, %v1487_v11  ;;  %v1589_v30 = vadd.s32 1, %v2661_v43  ;;  %v3959_v31 = vshll.u32 %v1587_v16, 8 }
 0x2ef   : > { %v1790_v22 = vand.u32 2139095040, %v3935_v51 }
 0x2f0   : > { %v1490_v12 = vsub.s32 32, %v1489_v17  ;;  %v1492_v20 = vshll.u32 %v3002_v23, %v1489_v17  ;;  %v1495_v28 = vshll.u32 %v3003_v44, %v1489_v17  ;;  %v1498_v59 = vshll.u32 %v3004_v1, %v1489_v17 }
 0x2f1   : > { %v1501_v53 = vshll.u32 %v3005_v32, %v1489_v17  ;;  %v1504_v63 = vshll.u32 %v3006_v37, %v1489_v17  ;;  %vm1507_vm6 = vcmp.lt.s32.totalorder %v1488_v0, 1  ;;  %vm1508_vm8 = vcmp.lt.s32.totalorder %v1488_v0, 2 }
 0x2f2   : > { %v1493_v46 = vshrl.u32 %v3003_v44, %v1490_v12  ;;  %v1496_v27 = vshrl.u32 %v3004_v1, %v1490_v12  ;;  %v1499_v57 = vshrl.u32 %v3005_v32, %v1490_v12  ;;  %v1491_v49 = vshrl.u32 %v3002_v23, %v1490_v12 }
 0x2f3   : > { %v1502_v50 = vshrl.u32 %v3006_v37, %v1490_v12  ;;  %v1505_v19 = vshrl.u32 %v4714_v39, %v1490_v12  ;;  %vm1509_vm14 = vcmp.lt.s32.totalorder %v1488_v0, 3  ;;  %vm1590_vm2 = vcmp.gt.s32.totalorder %v1589_v30, 0 }
 0x2f4   : > { %v1494_v25 = vor.u32 %v1493_v46, %v1492_v20  ;;  %v1497_v34 = vor.u32 %v1496_v27, %v1495_v28  ;;  %v1500_v21 = vor.u32 %v1499_v57, %v1498_v59  ;;  %vm1510_vm4 = vcmp.lt.s32.totalorder %v1488_v0, 4  ;;  %v1392_v59 = vpop.permute.xlu0 %1391 }
 0x2f5   : > { %v1503_v29 = vor.u32 %v1502_v50, %v1501_v53  ;;  %v1506_v8 = vor.u32 %v1505_v19, %v1504_v63  ;;  %v1591_v7 = vsel %vm1590_vm2, %v1589_v30, 0  ;;  %v1791_v46 = vshrl.u32 %v1790_v22, 23 }
 0x2f6   : > { %v1511_v62 = vsel %vm1507_vm6, %v1491_v49, %v1494_v25  ;;  %v1512_v4 = vsel %vm1510_vm4, %v1500_v21, 2102212464  ;;  %v1515_v36 = vsel %vm1507_vm6, %v1494_v25, %v1497_v34  ;;  %v1519_v35 = vsel %vm1507_vm6, %v1497_v34, %v1500_v21 }
 0x2f7   : > { %v1513_v47 = vsel %vm1509_vm14, %v1497_v34, %v1512_v4  ;;  %v1516_v45 = vsel %vm1510_vm4, %v1503_v29, 920167782  ;;  %v1520_v26 = vsel %vm1510_vm4, %v1506_v8, 1326507024  ;;  %v3952_v58 = vshrl.u32 %v1591_v7, 5 }
 0x2f8   : > { %v1514_v14 = vsel %vm1508_vm8, %v1511_v62, %v1513_v47  ;;  %v1517_v2 = vsel %vm1509_vm14, %v1500_v21, %v1516_v45  ;;  %v1521_v5 = vsel %vm1509_vm14, %v1503_v29, %v1520_v26  ;;  %v1593_v61 = vand.u32 31, %v1591_v7 }
 0x2f9   : > { %v1518_v48 = vsel %vm1508_vm8, %v1515_v36, %v1517_v2  ;;  %v1522_v55 = vsel %vm1508_vm8, %v1519_v35, %v1521_v5  ;;  %v1530_v60 = vmul.u32 %v3933_v56, %v1514_v14  ;;  %vm1611_vm12 = vcmp.lt.s32.totalorder %v3952_v58, 1  ;;  %v1440_v2 = vpop.permute.xlu0 %1439 }
 0x2fa   : > { %v3962_v3 = vmul.u32.u64.low %v3933_v56, %v1522_v55  ;;  %v3963_v33 = vmul.u32.u64.high %v3933_v56, %v1522_v55, %v3962_v3  ;;  %v3966_v52 = vmul.u32.u64.low %v3933_v56, %v1518_v48  ;;  %v3967_v38 = vmul.u32.u64.high %v3933_v56, %v1518_v48, %v3966_v52 }
 0x2fb   : > { %v1594_v41 = vsub.s32 32, %v1593_v61  ;;  %v1596_v18 = vshll.u32 %v3002_v23, %v1593_v61  ;;  %v1599_v15 = vshll.u32 %v3003_v44, %v1593_v61  ;;  %v1602_v10 = vshll.u32 %v3004_v1, %v1593_v61 }
 0x2fc   : > { %v1605_v11 = vshll.u32 %v3005_v32, %v1593_v61  ;;  %v1608_v17 = vshll.u32 %v3006_v37, %v1593_v61  ;;  %vm1532_vm5 = vc.u32 %v3963_v33, %v3966_v52  ;;  %v1533_v56 = vadd.s32 1, %v3967_v38 }
 0x2fd   : > { %v1597_v43 = vshrl.u32 %v3003_v44, %v1594_v41  ;;  %v1600_v9 = vshrl.u32 %v3004_v1, %v1594_v41  ;;  %v1603_v0 = vshrl.u32 %v3005_v32, %v1594_v41  ;;  %v1606_v16 = vshrl.u32 %v3006_v37, %v1594_v41 }
 0x2fe   : > { %vm1612_vm3 = vcmp.lt.s32.totalorder %v3952_v58, 2  ;;  %v1609_v30 = vshrl.u32 %v4714_v39, %v1594_v41  ;;  %v1534_v53 = vsel %vm1532_vm5, %v1533_v56, %v3967_v38  ;;  %vm1614_vm7 = vcmp.lt.s32.totalorder %v3952_v58, 4 }
 0x2ff   : > { %v1598_v12 = vor.u32 %v1597_v43, %v1596_v18  ;;  %v1601_v20 = vor.u32 %v1600_v9, %v1599_v15  ;;  %v1604_v28 = vor.u32 %v1603_v0, %v1602_v10  ;;  %v1607_v63 = vor.u32 %v1606_v16, %v1605_v11 }
 0x300   : > { %v1535_v27 = vadd.s32 %v1534_v53, %v1530_v60  ;;  %v1595_v57 = vshrl.u32 %v3002_v23, %v1594_v41  ;;  %v1610_v49 = vor.u32 %v1609_v30, %v1608_v17  ;;  %vm1613_vm11 = vcmp.lt.s32.totalorder %v3952_v58, 3 }
 0x301   : > { %v1616_v50 = vsel %vm1614_vm7, %v1604_v28, 2102212464  ;;  %v1619_v19 = vsel %vm1611_vm12, %v1598_v12, %v1601_v20  ;;  %v1620_v25 = vsel %vm1614_vm7, %v1607_v63, 920167782  ;;  %v1623_v34 = vsel %vm1611_vm12, %v1601_v20, %v1604_v28 }
 0x302   : > { %v1536_v21 = vadd.s32 536870912, %v1535_v27  ;;  %v1615_v29 = vsel %vm1611_vm12, %v1595_v57, %v1598_v12  ;;  %v1621_v8 = vsel %vm1613_vm11, %v1604_v28, %v1620_v25  ;;  %v1624_v7 = vsel %vm1614_vm7, %v1610_v49, 1326507024 }
 0x303   : > { %v1617_v62 = vsel %vm1613_vm11, %v1601_v20, %v1616_v50  ;;  %v1622_v4 = vsel %vm1612_vm3, %v1619_v19, %v1621_v8  ;;  %v1625_v36 = vsel %vm1613_vm11, %v1607_v63, %v1624_v7  ;;  %v2669_v35 = vadd.s32 4294967169, %v1791_v46 }
 0x304   : > { %v3999_v47 = vshrl.u32 %v1536_v21, 30  ;;  %v1626_v45 = vsel %vm1612_vm3, %v1623_v34, %v1625_v36  ;;  %v4004_v26 = vmul.u32.u64.low %v3959_v31, %v1622_v4  ;;  %v4005_v14 = vmul.u32.u64.high %v3959_v31, %v1622_v4, %v4004_v26 }
 0x305   : > { %v4009_v5 = vmul.u32.u64.low %v3959_v31, %v1626_v45  ;;  %v4010_v61 = vmul.u32.u64.high %v3959_v31, %v1626_v45, %v4009_v5  ;;  %v1421_v48 = vmul.f32 %v1392_v59, %v3916_v40  ;;  %v1797_v55 = vadd.s32 1, %v2669_v35 }
 0x306   : > { %v1538_v3 = vshll.u32 %v3999_v47, 30  ;;  %v1618_v38 = vsel %vm1612_vm3, %v1615_v29, %v1617_v62  ;;  %v1637_v22 = vadd.s32 1, %v4005_v14  ;;  %v1787_v18 = vand.u32 2147483647, %v3935_v51 }
 0x307   : > { %vm1798_vm9 = vcmp.gt.s32.totalorder %v1797_v55, 0  ;;  %v4016_v60 = vadd.f32 %v1440_v2, %v1421_v48  ;;  %v1634_v10 = vmul.u32 %v3959_v31, %v1618_v38  ;;  %vm1636_vm10 = vc.u32 %v4010_v61, %v4004_v26 }
 0x308   : > { %v4018_v41 = vsub.s32 %v1535_v27, %v1538_v3  ;;  %v1799_v15 = vsel %vm1798_vm9, %v1797_v55, 0  ;;  %v1638_v58 = vsel %vm1636_vm10, %v1637_v22, %v4005_v14  ;;  %v1531_v9 = vadd.s32 %v3966_v52, %v3963_v33 }
 0x309   : > { %v1801_v11 = vand.u32 31, %v1799_v15  ;;  %v1639_v0 = vadd.s32 %v1638_v58, %v1634_v10  ;;  %v1683_v56 = vand.u32 2147483647, %v4016_v60  ;;  %v1794_v31 = vand.u32 8388607, %v1787_v18 }
 0x30a   : > { %v1541_v43 = vsub.s32 0, %v4018_v41  ;;  %v1686_v20 = vand.u32 2139095040, %v4016_v60  ;;  %v1800_v57 = vshrl.u32 %v1799_v15, 5  ;;  %vm1477_vm4 = vcmp.lt.s32.totalorder %v3919_v6, 0 }
 0x30b   : > { %v1802_v17 = vsub.s32 32, %v1801_v11  ;;  %v1804_v12 = vshll.u32 %v3002_v23, %v1801_v11  ;;  %v1640_v28 = vadd.s32 536870912, %v1639_v0  ;;  %v1807_v59 = vshll.u32 %v3003_v44, %v1801_v11 }
 0x30c   : > { %v2658_v16 = vmin.u32 %v1541_v43, %v4018_v41  ;;  %v1810_v49 = vshll.u32 %v3004_v1, %v1801_v11  ;;  %v1813_v50 = vshll.u32 %v3005_v32, %v1801_v11  ;;  %v1816_v21 = vshll.u32 %v3006_v37, %v1801_v11 }
 0x30d   : > { %v1805_v30 = vshrl.u32 %v3003_v44, %v1802_v17  ;;  %v1808_v33 = vshrl.u32 %v3004_v1, %v1802_v17  ;;  %v1811_v53 = vshrl.u32 %v3005_v32, %v1802_v17  ;;  %v1814_v63 = vshrl.u32 %v3006_v37, %v1802_v17 }
 0x30e   : > { %v1543_v52 = vclz %v2658_v16  ;;  %v1817_v46 = vshrl.u32 %v4714_v39, %v1802_v17  ;;  %v4041_v27 = vshrl.u32 %v1640_v28, 30  ;;  %v1795_v8 = vor.u32 8388608, %v1794_v31 }
 0x30f   : > { %v1806_v25 = vor.u32 %v1805_v30, %v1804_v12  ;;  %v1809_v34 = vor.u32 %v1808_v33, %v1807_v59  ;;  %v1812_v7 = vor.u32 %v1811_v53, %v1810_v49  ;;  %v1815_v62 = vor.u32 %v1814_v63, %v1813_v50 }
 0x310   : > { %v2659_v19 = vadd.s32 4294967294, %v1543_v52  ;;  %v1642_v29 = vshll.u32 %v4041_v27, 30  ;;  %v1803_v4 = vshrl.u32 %v3002_v23, %v1802_v17  ;;  %v1818_v36 = vor.u32 %v1817_v46, %v1816_v21 }
 0x311   : > { %v1687_v35 = vshrl.u32 %v1686_v20, 23  ;;  %vm1819_vm1 = vcmp.lt.s32.totalorder %v1800_v57, 1  ;;  %vm1820_vm13 = vcmp.lt.s32.totalorder %v1800_v57, 2  ;;  %vm1821_vm15 = vcmp.lt.s32.totalorder %v1800_v57, 3 }
 0x312   : > { %vm2660_vm0 = vcmp.lt.s32.totalorder %v2659_v19, 0  ;;  %v4048_v14 = vsub.s32 %v1639_v0, %v1642_v29  ;;  %vm1822_vm6 = vcmp.lt.s32.totalorder %v1800_v57, 4  ;;  %v1827_v5 = vsel %vm1819_vm1, %v1806_v25, %v1809_v34 }
 0x313   : > { %v1546_v45 = vsel %vm2660_vm0, 0, %v2659_v19  ;;  %v1824_v55 = vsel %vm1822_vm6, %v1812_v7, 2102212464  ;;  %v1828_v3 = vsel %vm1822_vm6, %v1815_v62, 920167782  ;;  %v1831_v38 = vsel %vm1819_vm1, %v1809_v34, %v1812_v7 }
 0x314   : > { %v1551_v2 = vsub.s32 4294967266, %v1546_v45  ;;  %v1645_v48 = vsub.s32 0, %v4048_v14  ;;  %v1547_v22 = vsub.s32 32, %v1546_v45  ;;  %v1829_v10 = vsel %vm1821_vm15, %v1812_v7, %v1828_v3 }
 0x315   : > { %v1832_v11 = vsel %vm1822_vm6, %v1818_v36, 1326507024  ;;  %v1830_v58 = vsel %vm1820_vm13, %v1827_v5, %v1829_v10  ;;  %v1835_v17 = vshll.u32 %v1795_v8, 8  ;;  %v1823_v31 = vsel %vm1819_vm1, %v1803_v4, %v1806_v25 }
 0x316   : > { %v1552_v15 = vadd.s32 127, %v1551_v2  ;;  %v2662_v43 = vmin.u32 %v1645_v48, %v4048_v14  ;;  %v1833_v0 = vsel %vm1821_vm15, %v1815_v62, %v1832_v11  ;;  %v2665_v20 = vadd.s32 4294967169, %v1687_v35  ;;  %v1407_v48 = vpop.permute.xlu1 %1406 }
 0x317   : > { %v1834_v12 = vsel %vm1820_vm13, %v1831_v38, %v1833_v0  ;;  %v1825_v30 = vsel %vm1821_vm15, %v1809_v34, %v1824_v55  ;;  %v1549_v52 = vshrl.u32 %v1531_v9, %v1547_v22  ;;  %v1690_v49 = vand.u32 8388607, %v1683_v56 }
 0x318   : > { %v1553_v16 = vshll.u32 %v1552_v15, 23  ;;  %v1647_v28 = vclz %v2662_v43  ;;  %v4060_v59 = vmul.u32.u64.low %v1835_v17, %v1834_v12  ;;  %v4061_v33 = vmul.u32.u64.high %v1835_v17, %v1834_v12, %v4060_v59 }
 0x319   : > { %v4063_v53 = vmul.u32.u64.low %v1835_v17, %v1830_v58  ;;  %v4064_v63 = vmul.u32.u64.high %v1835_v17, %v1830_v58, %v4063_v53  ;;  %v1693_v50 = vadd.s32 1, %v2665_v20  ;;  %v1548_v19 = vshll.u32 %v4018_v41, %v1546_v45 }
 0x31a   : > { %v2663_v46 = vadd.s32 4294967294, %v1647_v28  ;;  %v1554_v25 = vor.u32 4788187, %v1553_v16  ;;  %v1826_v21 = vsel %vm1820_vm13, %v1823_v31, %v1825_v30  ;;  %v1691_v36 = vor.u32 8388608, %v1690_v49 }
 0x31b   : > { %vm1844_vm14 = vc.u32 %v4061_v33, %v4063_v53  ;;  %vm1694_vm2 = vcmp.gt.s32.totalorder %v1693_v50, 0  ;;  %v1550_v9 = vor.u32 %v1549_v52, %v1548_v19  ;;  %v1845_v29 = vadd.s32 1, %v4064_v63 }
 0x31c   : > { %vm2664_vm8 = vcmp.lt.s32.totalorder %v2663_v46, 0  ;;  %v1695_v8 = vsel %vm1694_vm2, %v1693_v50, 0  ;;  %v1842_v4 = vmul.u32 %v1835_v17, %v1826_v21  ;;  %v1555_v35 = vand.u32 2147483647, %v1554_v25 }
 0x31d   : > { %v1650_v34 = vsel %vm2664_vm8, 0, %v2663_v46  ;;  %v1846_v41 = vsel %vm1844_vm14, %v1845_v29, %v4064_v63  ;;  %v1697_v45 = vand.u32 31, %v1695_v8  ;;  %v1635_v57 = vadd.s32 %v4004_v26, %v4010_v61  ;;  %v1455_v46 = vpop.permute.xlu1 %1454 }
 0x31e   : > { %v1651_v7 = vsub.s32 32, %v1650_v34  ;;  %v1655_v62 = vsub.s32 4294967266, %v1650_v34  ;;  %v1847_v5 = vadd.s32 %v1846_v41, %v1842_v4  ;;  %v1557_v55 = vcvt.s32.f32 %v1550_v9 }
 0x31f   : > { %v1561_v3 = vsub.s32 4, %v3999_v47  ;;  %v1698_v38 = vsub.s32 32, %v1697_v45  ;;  %v4078_v11 = vshll.u32 %v1691_v36, 8  ;;  %v1652_v58 = vshll.u32 %v4048_v14, %v1650_v34 }
 0x320   : > { %v1656_v2 = vadd.s32 127, %v1655_v62  ;;  %v1653_v22 = vshrl.u32 %v1635_v57, %v1651_v7  ;;  %v1848_v10 = vadd.s32 536870912, %v1847_v5  ;;  %v1558_v43 = vmul.f32 %v1557_v55, %v1555_v35  ;;  %v1402_v55 = vpop.permute.xlu0 %1401 }
 0x321   : > { %v1701_v0 = vshrl.u32 %v3003_v44, %v1698_v38  ;;  %v1704_v17 = vshrl.u32 %v3004_v1, %v1698_v38  ;;  %v1700_v16 = vshll.u32 %v3002_v23, %v1697_v45  ;;  %v1703_v31 = vshll.u32 %v3003_v44, %v1697_v45 }
 0x322   : > { %v1657_v15 = vshll.u32 %v1656_v2, 23  ;;  %v4083_v61 = vshrl.u32 %v1848_v10, 30  ;;  %v1696_v12 = vshrl.u32 %v1695_v8, 5  ;;  %v1706_v20 = vshll.u32 %v3004_v1, %v1697_v45 }
 0x323   : > { %v1707_v28 = vshrl.u32 %v3005_v32, %v1698_v38  ;;  %v1424_v14 = vmul.f32 %v1407_v48, %v3916_v40  ;;  %v1654_v30 = vor.u32 %v1653_v22, %v1652_v58  ;;  %v1702_v52 = vor.u32 %v1701_v0, %v1700_v16 }
 0x324   : > { %v1658_v26 = vor.u32 4788187, %v1657_v15  ;;  %v1850_v59 = vshll.u32 %v4083_v61, 30  ;;  %v1705_v63 = vor.u32 %v1704_v17, %v1703_v31  ;;  %v1709_v50 = vshll.u32 %v3005_v32, %v1697_v45 }
 0x325   : > { %v1708_v49 = vor.u32 %v1707_v28, %v1706_v20  ;;  %v1710_v19 = vshrl.u32 %v3006_v37, %v1698_v38  ;;  %v1713_v25 = vshrl.u32 %v4714_v39, %v1698_v38  ;;  %v1559_v21 = vxor.u32 2147483648, %v1558_v43 }
 0x326   : > { %v1659_v9 = vand.u32 2147483647, %v1658_v26  ;;  %v4095_v34 = vsub.s32 %v1847_v5, %v1850_v59  ;;  %v1712_v29 = vshll.u32 %v3006_v37, %v1697_v45  ;;  %vm4100_vm12 = vcmp.le.f32.partialorder %v1475_v24, 0.7853982 }
 0x327   : > { %v1699_v7 = vshrl.u32 %v3002_v23, %v1698_v38  ;;  %v1711_v62 = vor.u32 %v1710_v19, %v1709_v50  ;;  %vm1715_vm5 = vcmp.lt.s32.totalorder %v1696_v12, 1  ;;  %v4105_v4 = vadd.f32 %v1455_v46, %v1424_v14 }
 0x328   : > { %v1661_v36 = vcvt.s32.f32 %v1654_v30  ;;  %vm1789_vm3 = vcmp.lt.s32.totalorder %v3935_v51, 0  ;;  %v1853_v35 = vsub.s32 0, %v4095_v34  ;;  %v1714_v41 = vor.u32 %v1713_v25, %v1712_v29  ;;  %v1450_v25 = vpop.permute.xlu0 %1449 }
 0x329   : > { %vm1718_vm7 = vcmp.lt.s32.totalorder %v1696_v12, 4  ;;  %vm1581_vm11 = vcmp.lt.s32.totalorder %v3924_v13, 0  ;;  %vm1717_vm9 = vcmp.lt.s32.totalorder %v1696_v12, 3  ;;  %v1723_v45 = vsel %vm1715_vm5, %v1702_v52, %v1705_v63 }
 0x32a   : > { %v1720_v24 = vsel %vm1718_vm7, %v1708_v49, 2102212464  ;;  %v1724_v57 = vsel %vm1718_vm7, %v1711_v62, 920167782  ;;  %v1662_v2 = vmul.f32 %v1661_v36, %v1659_v9  ;;  %v2670_v5 = vmin.u32 %v1853_v35, %v4095_v34 }
 0x32b   : > { %vm1716_vm10 = vcmp.lt.s32.totalorder %v1696_v12, 2  ;;  %v1725_v48 = vsel %vm1717_vm9, %v1708_v49, %v1724_v57  ;;  %v1719_v38 = vsel %vm1715_vm5, %v1699_v7, %v1702_v52  ;;  %v1721_v22 = vsel %vm1717_vm9, %v1705_v63, %v1720_v24 }
 0x32c   : > { %v1726_v15 = vsel %vm1716_vm10, %v1723_v45, %v1725_v48  ;;  %v1727_v10 = vsel %vm1715_vm5, %v1705_v63, %v1708_v49  ;;  %v1560_v58 = vsel %vm1477_vm4, %v1559_v21, %v1558_v43  ;;  %v4124_v0 = vsel %vm1477_vm4, %v1561_v3, %v3999_v47  ;;  %v2883_v49 = vld [vmem:[%s4673_s3] ss:$8 sps:$4 sm:$0xff]  }
 0x32d   : > { %v1855_v17 = vclz %v2670_v5  ;;  %v1728_v26 = vsel %vm1718_vm7, %v1714_v41, 1326507024  ;;  %vm4129_vm0 = vcmp.le.f32.partialorder %v1579_v42, 0.7853982  ;;  %vm4135_vm1 = vcmp.le.f32.partialorder %v1787_v18, 0.7853982 }
 0x32e   : > { %v1873_v43 = vsub.s32 4, %v4083_v61  ;;  %v1729_v47 = vsel %vm1717_vm9, %v1711_v62, %v1728_v26  ;;  %v4142_v3 = vmul.u32.u64.low %v4078_v11, %v1726_v15  ;;  %v4143_v20 = vmul.u32.u64.high %v4078_v11, %v1726_v15, %v4142_v3  ;;  %v2881_v18 = vld [vmem:[%s4673_s3 + $0x4] ss:$8 sps:$4 sm:$0xff]   ;;  %v1417_v62 = vpop.permute.xlu1 %1416  ;;  %v1412_v26 = vpop.permute.xlu0 %1411 }
 0x32f   : > { %v1663_v28 = vxor.u32 2147483648, %v1662_v2  ;;  %v2671_v42 = vadd.s32 4294967294, %v1855_v17  ;;  %v1722_v14 = vsel %vm1716_vm10, %v1719_v38, %v1721_v22  ;;  %v1730_v30 = vsel %vm1716_vm10, %v1727_v10, %v1729_v47  ;;  %2455 = vmatprep.subr.bf16.mxu1 %v2881_v18  ;;  %2370 = vmatprep.subr.bf16.mxu0 %v2881_v18 }
 0x330   : > { %v4152_v59 = vmul.u32.u64.low %v4078_v11, %v1730_v30  ;;  %v4153_v52 = vmul.u32.u64.high %v4078_v11, %v1730_v30, %v4152_v59  ;;  %v1995_v63 = vand.u32 2147483647, %v4105_v4  ;;  %v1998_v46 = vand.u32 2139095040, %v4105_v4  ;;  %2456 = vmatpush1.bf16.msra.mxu1 %v2883_v49  ;;  %2371 = vmatpush1.bf16.msra.mxu0 %v2883_v49 }
 0x331   : > { %v1563_v12 = vsel %vm4100_vm12, %v3919_v6, %v1560_v58  ;;  %v1843_v50 = vadd.s32 %v4063_v53, %v4061_v33  ;;  %vm2672_vm13 = vcmp.lt.s32.totalorder %v2671_v42, 0  ;;  %v1423_v19 = vmul.f32 %v1402_v55, %v3916_v40 }
 0x332   : > { %v1858_v21 = vsel %vm2672_vm13, 0, %v2671_v42  ;;  %v1874_v9 = vsel %vm1789_vm3, %v1873_v43, %v4083_v61  ;;  %v1741_v29 = vadd.s32 1, %v4143_v20  ;;  %v1999_v7 = vshrl.u32 %v1998_v46, 23  ;;  %v1465_v43 = vpop.permute.xlu1 %1464 }
 0x333   : > { %v1664_v33 = vsel %vm1581_vm11, %v1663_v28, %v1662_v2  ;;  %v1859_v53 = vsub.s32 32, %v1858_v21  ;;  %v1863_v36 = vsub.s32 4294967266, %v1858_v21  ;;  %v1738_v35 = vmul.u32 %v4078_v11, %v1722_v14 }
 0x334   : > { %vm1740_vm15 = vc.u32 %v4153_v52, %v4142_v3  ;;  %v2677_v41 = vadd.s32 4294967169, %v1999_v7  ;;  %v2002_v61 = vand.u32 8388607, %v1995_v63  ;;  %v4177_v24 = vadd.f32 %v1450_v25, %v1423_v19 }
 0x335   : > { %v1665_v45 = vsub.s32 4, %v4041_v27  ;;  %v1861_v57 = vshrl.u32 %v1843_v50, %v1859_v53  ;;  %v1864_v5 = vadd.s32 127, %v1863_v36  ;;  %v1742_v48 = vsel %vm1740_vm15, %v1741_v29, %v4143_v20 }
 0x336   : > { %2884 = vcosq.f32 %v1563_v12  ;;  %v1743_v2 = vadd.s32 %v1742_v48, %v1738_v35  ;;  %v2005_v55 = vadd.s32 1, %v2677_v41  ;;  %v1426_v11 = vmul.f32 %v1417_v62, %v3916_v40 }
 0x337   : > { %2886 = vsinq.f32 %v1563_v12  ;;  %v1667_v38 = vsel %vm4129_vm0, %v3924_v13, %v1664_v33  ;;  %v1860_v22 = vshll.u32 %v4095_v34, %v1858_v21  ;;  %v1876_v15 = vsel %vm4135_vm1, 0, %v1874_v9 }
 0x338   : > { %v1744_v10 = vadd.s32 536870912, %v1743_v2  ;;  %v2003_v58 = vor.u32 8388608, %v2002_v61  ;;  %vm2006_vm6 = vcmp.gt.s32.totalorder %v2005_v55, 0  ;;  %v1891_v17 = vand.u32 2147483647, %v4177_v24 }
 0x339   : > { %v4189_v47 = vor.u32 %v1861_v57, %v1860_v22  ;;  %v1865_v20 = vshll.u32 %v1864_v5, 23  ;;  %v2007_v28 = vsel %vm2006_vm6, %v2005_v55, 0  ;;  %v1894_v42 = vand.u32 2139095040, %v4177_v24 }
 0x33a   : > { %v4195_v34 = vsel %vm1581_vm11, %v1665_v45, %v4041_v27  ;;  %2888 = vcosq.f32 %v1667_v38  ;;  %v4197_v14 = vshrl.u32 %v1744_v10, 30  ;;  %v2009_v30 = vand.u32 31, %v2007_v28 }
 0x33b   : > { %2890 = vsinq.f32 %v1667_v38  ;;  %v4199_v18 = vadd.s32 3, %v1876_v15  ;;  %v4202_v59 = vmul.f32 %v1412_v26, %v3916_v40  ;;  %v4204_v46 = vadd.f32 %v1465_v43, %v1426_v11 }
 0x33c   : > { %v4208_v49 = vadd.s32 %v4142_v3, %v4153_v52  ;;  %v1746_v12 = vshll.u32 %v4197_v14, 30  ;;  %v2010_v27 = vsub.s32 32, %v2009_v30  ;;  %v4213_v50 = vand.u32 8388607, %v1891_v17 }
 0x33d   : > { %v1866_v19 = vor.u32 4788187, %v1865_v20  ;;  %v1869_v25 = vcvt.s32.f32 %v4189_v47  ;;  %v4216_v21 = vshll.u32 %v2003_v58, 8  ;;  %v1895_v40 = vshrl.u32 %v1894_v42, 23 }
 0x33e   : > { %v4218_v9 = vsub.s32 %v1743_v2, %v1746_v12  ;;  %v2008_v29 = vshrl.u32 %v2007_v28, 5  ;;  %v2012_v7 = vshll.u32 %v3002_v23, %v2009_v30  ;;  %v2013_v3 = vshrl.u32 %v3003_v44, %v2010_v27 }
 0x33f   : > { %v2015_v52 = vshll.u32 %v3003_v44, %v2009_v30  ;;  %v2016_v62 = vshrl.u32 %v3004_v1, %v2010_v27  ;;  %v2018_v33 = vshll.u32 %v3004_v1, %v2009_v30  ;;  %v2019_v53 = vshrl.u32 %v3005_v32, %v2010_v27 }
 0x340   : > { %v1749_v36 = vsub.s32 0, %v4218_v9  ;;  %v2021_v35 = vshll.u32 %v3005_v32, %v2009_v30  ;;  %v2022_v41 = vshrl.u32 %v3006_v37, %v2010_v27  ;;  %v1899_v61 = vor.u32 8388608, %v4213_v50 }
 0x341   : > { %v2014_v45 = vor.u32 %v2013_v3, %v2012_v7  ;;  %v2017_v57 = vor.u32 %v2016_v62, %v2015_v52  ;;  %v2020_v5 = vor.u32 %v2019_v53, %v2018_v33  ;;  %v2673_v48 = vadd.s32 4294967169, %v1895_v40 }
 0x342   : > { %v2666_v2 = vmin.u32 %v1749_v36, %v4218_v9  ;;  %v2023_v55 = vor.u32 %v2022_v41, %v2021_v35  ;;  %v2024_v11 = vshll.u32 %v3006_v37, %v2009_v30  ;;  %v2025_v38 = vshrl.u32 %v4714_v39, %v2010_v27 }
 0x343   : > { %v4233_v22 = vpop.eup %2884  ;;  %v1867_v15 = vand.u32 2147483647, %v1866_v19  ;;  %v2011_v10 = vshrl.u32 %v3002_v23, %v2010_v27  ;;  %vm2027_vm8 = vcmp.lt.s32.totalorder %v2008_v29, 1  ;;  %v2206_v58 = vand.u32 2139095040, %v4204_v46 }
 0x344   : > { %v4237_v26 = vpop.eup %2886  ;;  %v1751_v43 = vclz %v2666_v2  ;;  %v2026_v47 = vor.u32 %v2025_v38, %v2024_v11  ;;  %vm2028_vm14 = vcmp.lt.s32.totalorder %v2008_v29, 2  ;;  %vm2030_vm2 = vcmp.lt.s32.totalorder %v2008_v29, 4 }
 0x345   : > { %vm2029_vm4 = vcmp.lt.s32.totalorder %v2008_v29, 3  ;;  %v2032_v20 = vsel %vm2030_vm2, %v2020_v5, 2102212464  ;;  %v2035_v28 = vsel %vm2027_vm8, %v2014_v45, %v2017_v57  ;;  %v2036_v42 = vsel %vm2030_vm2, %v2023_v55, 920167782 }
 0x346   : > { %v2667_v30 = vadd.s32 4294967294, %v1751_v43  ;;  %v2031_v12 = vsel %vm2027_vm8, %v2011_v10, %v2014_v45  ;;  %v2037_v40 = vsel %vm2029_vm4, %v2020_v5, %v2036_v42  ;;  %v2039_v7 = vsel %vm2027_vm8, %v2017_v57, %v2020_v5 }
 0x347   : > { %v4239_v19 = vpop.eup %2888  ;;  %v2033_v27 = vsel %vm2029_vm4, %v2017_v57, %v2032_v20  ;;  %v2038_v3 = vsel %vm2028_vm14, %v2035_v28, %v2037_v40  ;;  %v2040_v52 = vsel %vm2030_vm2, %v2026_v47, 1326507024  ;;  %v1901_v62 = vadd.s32 1, %v2673_v48 }
 0x348   : > { %v4242_v33 = vpop.eup %2890  ;;  %vm2668_vm5 = vcmp.lt.s32.totalorder %v2667_v30, 0  ;;  %v2041_v53 = vsel %vm2029_vm4, %v2023_v55, %v2040_v52  ;;  %v4245_v36 = vmul.u32.u64.low %v4216_v21, %v2038_v3  ;;  %v4246_v35 = vmul.u32.u64.high %v4216_v21, %v2038_v3, %v4245_v36 }
 0x349   : > { %v1870_v41 = vmul.f32 %v1869_v25, %v1867_v15  ;;  %v1754_v45 = vsel %vm2668_vm5, 0, %v2667_v30  ;;  %v2042_v5 = vsel %vm2028_vm14, %v2039_v7, %v2041_v53  ;;  %vm1902_vm7 = vcmp.gt.s32.totalorder %v1901_v62, 0 }
 0x34a   : > { %v1755_v2 = vsub.s32 32, %v1754_v45  ;;  %v1759_v57 = vsub.s32 4294967266, %v1754_v45  ;;  %v2034_v11 = vsel %vm2028_vm14, %v2031_v12, %v2033_v27  ;;  %v1903_v38 = vsel %vm1902_vm7, %v1901_v62, 0 }
 0x34b   : > { %vm1685_vm11 = vcmp.lt.s32.totalorder %v4016_v60, 0  ;;  %v1769_v48 = vsub.s32 4, %v4197_v14  ;;  %v4254_v55 = vmul.u32.u64.low %v4216_v21, %v2042_v5  ;;  %v4255_v10 = vmul.u32.u64.high %v4216_v21, %v2042_v5, %v4254_v55 }
 0x34c   : > { %v1905_v43 = vand.u32 31, %v1903_v38  ;;  %v1756_v25 = vshll.u32 %v4218_v9, %v1754_v45  ;;  %v1757_v15 = vshrl.u32 %v4208_v49, %v1755_v2  ;;  %v1760_v47 = vadd.s32 127, %v1759_v57 }
 0x34d   : > { %v2053_v20 = vadd.s32 1, %v4246_v35  ;;  %v1871_v28 = vxor.u32 2147483648, %v1870_v41  ;;  %v2050_v29 = vmul.u32 %v4216_v21, %v2034_v11  ;;  %v4261_v42 = vshrl.u32 %v1903_v38, 5 }
 0x34e   : > { %v1906_v30 = vsub.s32 32, %v1905_v43  ;;  %v1758_v12 = vor.u32 %v1757_v15, %v1756_v25  ;;  %v1761_v40 = vshll.u32 %v1760_v47, 23  ;;  %v1908_v7 = vshll.u32 %v3002_v23, %v1905_v43 }
 0x34f   : > { %v1911_v27 = vshll.u32 %v3003_v44, %v1905_v43  ;;  %vm2052_vm9 = vc.u32 %v4255_v10, %v4245_v36  ;;  %v1914_v9 = vshll.u32 %v3004_v1, %v1905_v43  ;;  %v1917_v3 = vshll.u32 %v3005_v32, %v1905_v43 }
 0x350   : > { %v1909_v49 = vshrl.u32 %v3003_v44, %v1906_v30  ;;  %vm4272_vm10 = vcmp.le.f32.partialorder %v1683_v56, 0.7853982  ;;  %v1762_v52 = vor.u32 4788187, %v1761_v40  ;;  %v2054_v62 = vsel %vm2052_vm9, %v2053_v20, %v4246_v35 }
 0x351   : > { %v1912_v53 = vshrl.u32 %v3004_v1, %v1906_v30  ;;  %v1920_v45 = vshll.u32 %v3006_v37, %v1905_v43  ;;  %v1765_v5 = vcvt.s32.f32 %v1758_v12  ;;  %v2055_v2 = vadd.s32 %v2054_v62, %v2050_v29 }
 0x352   : > { %v1915_v57 = vshrl.u32 %v3005_v32, %v1906_v30  ;;  %v1918_v11 = vshrl.u32 %v3006_v37, %v1906_v30  ;;  %v1763_v38 = vand.u32 2147483647, %v1762_v52  ;;  %v1910_v55 = vor.u32 %v1909_v49, %v1908_v7 }
 0x353   : > { %v1913_v25 = vor.u32 %v1912_v53, %v1911_v27  ;;  %v1921_v56 = vshrl.u32 %v4714_v39, %v1906_v30  ;;  %v2056_v15 = vadd.s32 536870912, %v2055_v2  ;;  %v4711_v35 = vand.u32 2147483647, %v4204_v46 }
 0x354   : > { %v1916_v47 = vor.u32 %v1915_v57, %v1914_v9  ;;  %v1919_v40 = vor.u32 %v1918_v11, %v1917_v3  ;;  %v1766_v20 = vmul.f32 %v1765_v5, %v1763_v38  ;;  %v1770_v43 = vsel %vm1685_vm11, %v1769_v48, %v4197_v14 }
 0x355   : > { %v1922_v29 = vor.u32 %v1921_v56, %v1920_v45  ;;  %v1939_v12 = vshll.u32 %v1899_v61, 8  ;;  %v1872_v7 = vsel %vm1789_vm3, %v1871_v28, %v1870_v41  ;;  %v2057_v27 = vshrl.u32 %v2056_v15, 30 }
 0x356   : > { %vm1923_vm13 = vcmp.lt.s32.totalorder %v4261_v42, 1  ;;  %vm1926_vm15 = vcmp.lt.s32.totalorder %v4261_v42, 4  ;;  %vm1925_vm6 = vcmp.lt.s32.totalorder %v4261_v42, 3  ;;  %v2207_v14 = vshrl.u32 %v2206_v58, 23 }
 0x357   : > { %v1931_v49 = vsel %vm1923_vm13, %v1910_v55, %v1913_v25  ;;  %v1932_v9 = vsel %vm1926_vm15, %v1919_v40, 920167782  ;;  %v1767_v48 = vxor.u32 2147483648, %v1766_v20  ;;  %v2058_v50 = vshll.u32 %v2057_v27, 30 }
 0x358   : > { %v1933_v61 = vsel %vm1925_vm6, %v1916_v47, %v1932_v9  ;;  %v1935_v41 = vsel %vm1923_vm13, %v1913_v25, %v1916_v47  ;;  %v1907_v28 = vshrl.u32 %v3002_v23, %v1906_v30  ;;  %vm1924_vm3 = vcmp.lt.s32.totalorder %v4261_v42, 2 }
 0x359   : > { %v1928_v3 = vsel %vm1926_vm15, %v1916_v47, 2102212464  ;;  %v1936_v52 = vsel %vm1926_vm15, %v1922_v29, 1326507024  ;;  %v1772_v62 = vsel %vm4272_vm10, 0, %v1770_v43  ;;  %v4305_v53 = vsub.s32 %v2055_v2, %v2058_v50 }
 0x35a   : > { %v1934_v58 = vsel %vm1924_vm3, %v1931_v49, %v1933_v61  ;;  %v1937_v45 = vsel %vm1925_vm6, %v1919_v40, %v1936_v52  ;;  %v1875_v5 = vsel %vm4135_vm1, %v3935_v51, %v1872_v7  ;;  %v1927_v30 = vsel %vm1923_vm13, %v1907_v28, %v1910_v55  ;;  %v1460_v7 = vpop.permute.xlu0 %1459 }
 0x35b   : > { %v1938_v57 = vsel %vm1924_vm3, %v1935_v41, %v1937_v45  ;;  %v2685_v11 = vadd.s32 4294967169, %v2207_v14  ;;  %v1768_v2 = vsel %vm1685_vm11, %v1767_v48, %v1766_v20  ;;  %v2061_v38 = vsub.s32 0, %v4305_v53 }
 0x35c   : > { %v1929_v56 = vsel %vm1925_vm6, %v1913_v25, %v1928_v3  ;;  %v2210_v15 = vand.u32 8388607, %v4711_v35  ;;  %v4325_v31 = vmul.u32.u64.low %v1939_v12, %v1938_v57  ;;  %v4326_v47 = vmul.u32.u64.high %v1939_v12, %v1938_v57, %v4325_v31 }
 0x35d   : > { %v4328_v40 = vmul.u32.u64.low %v1939_v12, %v1934_v58  ;;  %v4329_v55 = vmul.u32.u64.high %v1939_v12, %v1934_v58, %v4328_v40  ;;  %v4332_v43 = vadd.s32 3, %v1772_v62  ;;  %vm1997_vm1 = vcmp.lt.s32.totalorder %v4105_v4, 0 }
 0x35e   : > { %v2678_v20 = vmin.u32 %v2061_v38, %v4305_v53  ;;  %v2213_v29 = vadd.s32 1, %v2685_v11  ;;  %2892 = vcosq.f32 %v1875_v5  ;;  %v1771_v25 = vsel %vm4272_vm10, %v4016_v60, %v1768_v2 }
 0x35f   : > { %v2081_v49 = vsub.s32 4, %v2057_v27  ;;  %v1930_v9 = vsel %vm1924_vm3, %v1927_v30, %v1929_v56  ;;  %2894 = vsinq.f32 %v1875_v5  ;;  %v2211_v48 = vor.u32 8388608, %v2210_v15 }
 0x360   : > { %v2063_v14 = vclz %v2678_v20  ;;  %vm2214_vm8 = vcmp.gt.s32.totalorder %v2213_v29, 0  ;;  %vm1948_vm14 = vc.u32 %v4326_v47, %v4328_v40  ;;  %v1949_v50 = vadd.s32 1, %v4329_v55 }
 0x361   : > { %v2215_v61 = vsel %vm2214_vm8, %v2213_v29, 0  ;;  %v4345_v41 = vadd.f32 %v1460_v7, %v4202_v59  ;;  %2896 = vcosq.f32 %v1771_v25  ;;  %v1946_v28 = vmul.u32 %v1939_v12, %v1930_v9 }
 0x362   : > { %v2679_v21 = vadd.s32 4294967294, %v2063_v14  ;;  %v2217_v3 = vand.u32 31, %v2215_v61  ;;  %2898 = vsinq.f32 %v1771_v25  ;;  %v2051_v42 = vadd.s32 %v4245_v36, %v4255_v10 }
 0x363   : > { %v4351_v52 = vsel %vm1997_vm1, %v2081_v49, %v2057_v27  ;;  %v1950_v62 = vsel %vm1948_vm14, %v1949_v50, %v4329_v55  ;;  %v1564_v59 = vsel %vm4100_vm12, 0, %v4124_v0  ;;  %v4358_v30 = vshll.u32 %v2211_v48, 8 }
 0x364   : > { %vm2680_vm2 = vcmp.lt.s32.totalorder %v2679_v21, 0  ;;  %v1951_v58 = vadd.s32 %v1950_v62, %v1946_v28  ;;  %v2218_v45 = vsub.s32 32, %v2217_v3  ;;  %v2220_v12 = vshll.u32 %v3002_v23, %v2217_v3 }
 0x365   : > { %v2066_v5 = vsel %vm2680_vm2, 0, %v2679_v21  ;;  %v2099_v36 = vand.u32 2147483647, %v4345_v41  ;;  %v2223_v11 = vshll.u32 %v3003_v44, %v2217_v3  ;;  %v2216_v7 = vshrl.u32 %v2215_v61, 5 }
 0x366   : > { %v2067_v10 = vsub.s32 32, %v2066_v5  ;;  %v2071_v57 = vsub.s32 4294967266, %v2066_v5  ;;  %v1952_v27 = vadd.s32 536870912, %v1951_v58  ;;  %v2068_v2 = vshll.u32 %v4305_v53, %v2066_v5 }
 0x367   : > { %v2221_v38 = vshrl.u32 %v3003_v44, %v2218_v45  ;;  %v2224_v56 = vshrl.u32 %v3004_v1, %v2218_v45  ;;  %v2227_v15 = vshrl.u32 %v3005_v32, %v2218_v45  ;;  %v2230_v29 = vshrl.u32 %v3006_v37, %v2218_v45 }
 0x368   : > { %v2069_v31 = vshrl.u32 %v2051_v42, %v2067_v10  ;;  %v2072_v55 = vadd.s32 127, %v2071_v57  ;;  %v1953_v20 = vshrl.u32 %v1952_v27, 30  ;;  %v2226_v49 = vshll.u32 %v3004_v1, %v2217_v3 }
 0x369   : > { %v2222_v25 = vor.u32 %v2221_v38, %v2220_v12  ;;  %v2229_v9 = vshll.u32 %v3005_v32, %v2217_v3  ;;  %v2225_v50 = vor.u32 %v2224_v56, %v2223_v11  ;;  %v2232_v62 = vshll.u32 %v3006_v37, %v2217_v3 }
 0x36a   : > { %v2070_v14 = vor.u32 %v2069_v31, %v2068_v2  ;;  %v2073_v48 = vshll.u32 %v2072_v55, 23  ;;  %v1954_v53 = vshll.u32 %v1953_v20, 30  ;;  %v2228_v21 = vor.u32 %v2227_v15, %v2226_v49 }
 0x36b   : > { %v2231_v28 = vor.u32 %v2230_v29, %v2229_v9  ;;  %v2233_v42 = vshrl.u32 %v4714_v39, %v2218_v45  ;;  %v4371_v5 = vpop.eup %2892  ;;  %vm1893_vm4 = vcmp.lt.s32.totalorder %v4177_v24, 0  ;;  %v2219_v12 = vshrl.u32 %v3002_v23, %v2218_v45 }
 0x36c   : > { %v2074_v10 = vor.u32 4788187, %v2073_v48  ;;  %v4374_v61 = vsub.s32 %v1951_v58, %v1954_v53  ;;  %v2102_v57 = vand.u32 2139095040, %v4345_v41  ;;  %v4378_v27 = vpop.eup %2894  ;;  %v1977_v11 = vsub.s32 4, %v1953_v20 }
 0x36d   : > { %v2234_v2 = vor.u32 %v2233_v42, %v2232_v62  ;;  %vm2235_vm5 = vcmp.lt.s32.totalorder %v2216_v7, 1  ;;  %vm2236_vm7 = vcmp.lt.s32.totalorder %v2216_v7, 2  ;;  %v2077_v38 = vcvt.s32.f32 %v2070_v14 }
 0x36e   : > { %v2075_v3 = vand.u32 2147483647, %v2074_v10  ;;  %v1957_v56 = vsub.s32 0, %v4374_v61  ;;  %vm2238_vm11 = vcmp.lt.s32.totalorder %v2216_v7, 4  ;;  %v4381_v15 = vpop.eup %2896  ;;  %vm4385_vm9 = vcmp.le.f32.partialorder %v1995_v63, 0.7853982 }
 0x36f   : > { %vm4391_vm10 = vcmp.le.f32.partialorder %v1891_v17, 0.7853982  ;;  %vm2237_vm13 = vcmp.lt.s32.totalorder %v2216_v7, 3  ;;  %v2240_v31 = vsel %vm2238_vm11, %v2228_v21, 2102212464  ;;  %v2243_v55 = vsel %vm2235_vm5, %v2222_v25, %v2225_v50  ;;  %v4396_v49 = vpop.eup %2898 }
 0x370   : > { %v2244_v29 = vsel %vm2238_vm11, %v2231_v28, 920167782  ;;  %v2078_v9 = vmul.f32 %v2077_v38, %v2075_v3  ;;  %v2674_v14 = vmin.u32 %v1957_v56, %v4374_v61  ;;  %v2247_v48 = vsel %vm2235_vm5, %v2225_v50, %v2228_v21 }
 0x371   : > { %v2245_v63 = vsel %vm2237_vm13, %v2228_v21, %v2244_v29  ;;  %v2239_v53 = vsel %vm2235_vm5, %v2219_v12, %v2222_v25  ;;  %v2248_v62 = vsel %vm2238_vm11, %v2234_v2, 1326507024  ;;  %v2103_v42 = vshrl.u32 %v2102_v57, 23 }
 0x372   : > { %v2246_v17 = vsel %vm2236_vm7, %v2243_v55, %v2245_v63  ;;  %v2079_v10 = vxor.u32 2147483648, %v2078_v9  ;;  %v1959_v35 = vclz %v2674_v14  ;;  %v2241_v54 = vsel %vm2237_vm13, %v2225_v50, %v2240_v31 }
 0x373   : > { %v2249_v39 = vsel %vm2237_vm13, %v2231_v28, %v2248_v62  ;;  %v4407_v38 = vmul.u32.u64.low %v4358_v30, %v2246_v17  ;;  %v4408_v56 = vmul.u32.u64.high %v4358_v30, %v2246_v17, %v4407_v38  ;;  %v2681_v21 = vadd.s32 4294967169, %v2103_v42 }
 0x374   : > { %v2250_v3 = vsel %vm2236_vm7, %v2247_v48, %v2249_v39  ;;  %v2675_v29 = vadd.s32 4294967294, %v1959_v35  ;;  %v1572_v57 = vxor.u32 2147483648, %v4237_v26  ;;  %v2080_v50 = vsel %vm1997_vm1, %v2079_v10, %v2078_v9 }
 0x375   : > { %v4412_v25 = vmul.u32.u64.low %v4358_v30, %v2250_v3  ;;  %v4413_v12 = vmul.u32.u64.high %v4358_v30, %v2250_v3, %v4412_v25  ;;  %v4420_v28 = vsel %vm1893_vm4, %v1977_v11, %v1953_v20  ;;  %v2106_v39 = vand.u32 8388607, %v2099_v36 }
 0x376   : > { %v2109_v2 = vadd.s32 1, %v2681_v21  ;;  %vm2676_vm15 = vcmp.lt.s32.totalorder %v2675_v29, 0  ;;  %v2242_v35 = vsel %vm2236_vm7, %v2239_v53, %v2241_v54  ;;  %v1575_v31 = vxor.u32 2147483648, %v4233_v22 }
 0x377   : > { %v1668_v55 = vsel %vm4129_vm0, 0, %v4195_v34  ;;  %v1947_v9 = vadd.s32 %v4328_v40, %v4326_v47  ;;  %v1962_v14 = vsel %vm2676_vm15, 0, %v2675_v29  ;;  %v2261_v20 = vadd.s32 1, %v4408_v56 }
 0x378   : > { %vm2110_vm6 = vcmp.gt.s32.totalorder %v2109_v2, 0  ;;  %v2083_v11 = vsel %vm4385_vm9, %v4105_v4, %v2080_v50  ;;  %v1963_v63 = vsub.s32 32, %v1962_v14  ;;  %v1967_v7 = vsub.s32 4294967266, %v1962_v14 }
 0x379   : > { %v1980_v54 = vsel %vm4391_vm10, 0, %v4420_v28  ;;  %v2258_v16 = vmul.u32 %v4358_v30, %v2242_v35  ;;  %vm2260_vm0 = vc.u32 %v4413_v12, %v4407_v38  ;;  %v2107_v34 = vor.u32 8388608, %v2106_v39 }
 0x37a   : > { %v2111_v47 = vsel %vm2110_vm6, %v2109_v2, 0  ;;  %v1964_v40 = vshll.u32 %v4374_v61, %v1962_v14  ;;  %v1965_v48 = vshrl.u32 %v1947_v9, %v1963_v63  ;;  %v1968_v53 = vadd.s32 127, %v1967_v7 }
 0x37b   : > { %v2262_v17 = vsel %vm2260_vm0, %v2261_v20, %v4408_v56  ;;  %2900 = vcosq.f32 %v2083_v11  ;;  %v2113_v42 = vand.u32 31, %v2111_v47  ;;  %v1568_v10 = vadd.s32 3, %v1564_v59 }
 0x37c   : > { %v2263_v62 = vadd.s32 %v2262_v17, %v2258_v16  ;;  %v1966_v30 = vor.u32 %v1965_v48, %v1964_v40  ;;  %v1969_v3 = vshll.u32 %v1968_v53, 23  ;;  %v4447_v21 = vadd.s32 3, %v1668_v55 }
 0x37d   : > { %v1676_v29 = vxor.u32 2147483648, %v4242_v33  ;;  %2902 = vsinq.f32 %v2083_v11  ;;  %v2112_v25 = vshrl.u32 %v2111_v47, 5  ;;  %v2114_v50 = vsub.s32 32, %v2113_v42 }
 0x37e   : > { %v2264_v61 = vadd.s32 536870912, %v2263_v62  ;;  %v1970_v39 = vor.u32 4788187, %v1969_v3  ;;  %v1973_v56 = vcvt.s32.f32 %v1966_v30  ;;  %v2116_v2 = vshll.u32 %v3002_v23, %v2113_v42 }
 0x37f   : > { %v2119_v35 = vshll.u32 %v3003_v44, %v2113_v42  ;;  %v2117_v0 = vshrl.u32 %v3003_v44, %v2114_v50  ;;  %v2120_v59 = vshrl.u32 %v3004_v1, %v2114_v50  ;;  %v2122_v55 = vshll.u32 %v3004_v1, %v2113_v42 }
 0x380   : > { %v4452_v8 = vshrl.u32 %v2264_v61, 30  ;;  %v1971_v9 = vand.u32 2147483647, %v1970_v39  ;;  %v2123_v14 = vshrl.u32 %v3005_v32, %v2114_v50  ;;  %v2125_v20 = vshll.u32 %v3005_v32, %v2113_v42 }
 0x381   : > { %v2126_v11 = vshrl.u32 %v3006_v37, %v2114_v50  ;;  %v2118_v7 = vor.u32 %v2117_v0, %v2116_v2  ;;  %v2121_v16 = vor.u32 %v2120_v59, %v2119_v35  ;;  %v2128_v47 = vshll.u32 %v3006_v37, %v2113_v42 }
 0x382   : > { %v2266_v63 = vshll.u32 %v4452_v8, 30  ;;  %v1974_v40 = vmul.f32 %v1973_v56, %v1971_v9  ;;  %v2124_v48 = vor.u32 %v2123_v14, %v2122_v55  ;;  %v4792_v53 = vmov 1326507024  }
 0x383   : > { %v2127_v44 = vor.u32 %v2126_v11, %v2125_v20  ;;  %v2129_v17 = vshrl.u32 %v4792_v53, %v2114_v50  ;;  %vm2131_vm12 = vcmp.lt.s32.totalorder %v2112_v25, 1  ;;  %v4465_v1 = vshll.u32 %v2107_v34, 8 }
 0x384   : > { %v4463_v30 = vsub.s32 %v2263_v62, %v2266_v63  ;;  %v1569_v3 = vand.u32 3, %v1568_v10  ;;  %v1975_v32 = vxor.u32 2147483648, %v1974_v40  ;;  %v2115_v61 = vshrl.u32 %v3002_v23, %v2114_v50 }
 0x385   : > { %v2130_v39 = vor.u32 %v2129_v17, %v2128_v47  ;;  %vm2134_vm3 = vcmp.lt.s32.totalorder %v2112_v25, 4  ;;  %vm2133_vm1 = vcmp.lt.s32.totalorder %v2112_v25, 3  ;;  %v2139_v42 = vsel %vm2131_vm12, %v2118_v7, %v2121_v16 }
 0x386   : > { %v2269_v2 = vsub.s32 0, %v4463_v30  ;;  %v2136_v37 = vsel %vm2134_vm3, %v2124_v48, 2102212464  ;;  %v1976_v62 = vsel %vm1893_vm4, %v1975_v32, %v1974_v40  ;;  %v2135_v56 = vsel %vm2131_vm12, %v2115_v61, %v2118_v7 }
 0x387   : > { %v2137_v34 = vsel %vm2133_vm1, %v2121_v16, %v2136_v37  ;;  %v2140_v10 = vsel %vm2134_vm3, %v2127_v44, 920167782  ;;  %vm2132_vm8 = vcmp.lt.s32.totalorder %v2112_v25, 2  ;;  %v2143_v35 = vsel %vm2131_vm12, %v2121_v16, %v2124_v48 }
 0x388   : > { %v2686_v23 = vmin.u32 %v2269_v2, %v4463_v30  ;;  %v2141_v50 = vsel %vm2133_vm1, %v2124_v48, %v2140_v10  ;;  %v4479_v0 = vpop.eup %2900  ;;  %v1979_v59 = vsel %vm4391_vm10, %v4177_v24, %v1976_v62  ;;  %v2144_v9 = vsel %vm2134_vm3, %v2130_v39, 1326507024 }
 0x389   : > { %v2142_v55 = vsel %vm2132_vm8, %v2139_v42, %v2141_v50  ;;  %vm1571_vm14 = vcmp.eq.s32.totalorder %v1569_v3, 0  ;;  %v2138_v20 = vsel %vm2132_vm8, %v2135_v56, %v2137_v34  ;;  %v2145_v11 = vsel %vm2133_vm1, %v2127_v44, %v2144_v9 }
 0x38a   : > { %v2271_v14 = vclz %v2686_v23  ;;  %v1573_v63 = vsel %vm1571_vm14, %v4233_v22, %v1572_v57  ;;  %v4489_v7 = vpop.eup %2902  ;;  %v2146_v16 = vsel %vm2132_vm8, %v2143_v35, %v2145_v11  ;;  %vm1567_vm2 = vweird.f32 %v3919_v6 }
 0x38b   : > { %v4492_v47 = vmul.u32.u64.low %v4465_v1, %v2142_v55  ;;  %v4493_v40 = vmul.u32.u64.high %v4465_v1, %v2142_v55, %v4492_v47  ;;  %vm1574_vm4 = vcmp.eq.s32.totalorder %v1569_v3, 2  ;;  %vm1671_vm5 = vweird.f32 %v3924_v13 }
 0x38c   : > { %v2687_v48 = vadd.s32 4294967294, %v2271_v14  ;;  %v4499_v25 = vmul.u32.u64.low %v4465_v1, %v2146_v16  ;;  %v4500_v44 = vmul.u32.u64.high %v4465_v1, %v2146_v16, %v4499_v25  ;;  %v1576_v57 = vsel %vm1574_vm4, %v1575_v31, %v4237_v26 }
 0x38d   : > { %2904 = vcosq.f32 %v1979_v59  ;;  %v2259_v53 = vadd.s32 %v4407_v38, %v4413_v12  ;;  %vm1570_vm7 = vcmp.lt.s32.totalorder %v1569_v3, 2  ;;  %v1673_v17 = vand.u32 3, %v4447_v21 }
 0x38e   : > { %2906 = vsinq.f32 %v1979_v59  ;;  %vm2688_vm11 = vcmp.lt.s32.totalorder %v2687_v48, 0  ;;  %v2154_v32 = vmul.u32 %v4465_v1, %v2138_v20  ;;  %v1679_v61 = vxor.u32 2147483648, %v4239_v19 }
 0x38f   : > { %v2274_v39 = vsel %vm2688_vm11, 0, %v2687_v48  ;;  %v2157_v2 = vadd.s32 1, %v4493_v40  ;;  %v1577_v37 = vsel %vm1570_vm7, %v1573_v63, %v1576_v57  ;;  %vm2343_vm13 = vcmask 130048  }
 0x390   : > { %v2275_v22 = vsub.s32 32, %v2274_v39  ;;  %v2279_v26 = vsub.s32 4294967266, %v2274_v39  ;;  %vm1675_vm15 = vcmp.eq.s32.totalorder %v1673_v17, 0  ;;  %v1777_v31 = vand.u32 3, %v4332_v43 }
 0x391   : > { %vm2156_vm6 = vc.u32 %v4500_v44, %v4492_v47  ;;  %vm1674_vm0 = vcmp.lt.s32.totalorder %v1673_v17, 2  ;;  %v1677_v38 = vsel %vm1675_vm15, %v4239_v19, %v1676_v29  ;;  %vm1678_vm12 = vcmp.eq.s32.totalorder %v1673_v17, 2 }
 0x392   : > { %v2277_v12 = vshrl.u32 %v2259_v53, %v2275_v22  ;;  %v2280_v21 = vadd.s32 127, %v2279_v26  ;;  %v2158_v1 = vsel %vm2156_vm6, %v2157_v2, %v4493_v40  ;;  %v1680_v3 = vsel %vm1678_vm12, %v1679_v61, %v4242_v33 }
 0x393   : > { %v2276_v42 = vshll.u32 %v4463_v30, %v2274_v39  ;;  %v2159_v62 = vadd.s32 %v2158_v1, %v2154_v32  ;;  %v1681_v56 = vsel %vm1674_vm0, %v1677_v38, %v1680_v3  ;;  %v1780_v43 = vxor.u32 2147483648, %v4396_v49 }
 0x394   : > { %v2281_v34 = vshll.u32 %v2280_v21, 23  ;;  %v1578_v10 = vsel %vm1567_vm2, nan, %v1577_v37  ;;  %v1682_v19 = vsel %vm1671_vm5, nan, %v1681_v56  ;;  %vm1779_vm3 = vcmp.eq.s32.totalorder %v1777_v31, 0 }
 0x395   : > { %v2278_v29 = vor.u32 %v2277_v12, %v2276_v42  ;;  %v2160_v23 = vadd.s32 536870912, %v2159_v62  ;;  %v2309_v50 = vpack.c.bf16 %v1682_v19, %v1578_v10  ;;  %v1783_v35 = vxor.u32 2147483648, %v4381_v15 }
 0x396   : > { %v2282_v33 = vor.u32 4788187, %v2281_v34  ;;  %v1781_v30 = vsel %vm1779_vm3, %v4381_v15, %v1780_v43  ;;  %vm1782_vm1 = vcmp.eq.s32.totalorder %v1777_v31, 2  ;;  %v1881_v59 = vand.u32 3, %v4199_v18 }
 0x397   : > { %v4528_v55 = vshrl.u32 %v2160_v23, 30  ;;  %2695 = vmatmul.mubr.msk.bf16.vlgmr.msra.gmra.mxu1 %vm2343_vm13, %v2309_v50  ;;  %v2313_v6 = vunpack.c.l.bf16 %v2309_v50  ;;  %v2314_v9 = vunpack.c.h.bf16 %v2309_v50  ;;  %v1784_v13 = vsel %vm1782_vm1, %v1783_v35, %v4396_v49 }
 0x398   : > { %v1984_v14 = vadd.s32 3, %v1980_v54  ;;  %v2283_v20 = vand.u32 2147483647, %v2282_v33  ;;  %v4793_v11 = vmov 0   ;;  %vm1778_vm8 = vcmp.lt.s32.totalorder %v1777_v31, 2 }
 0x399   : > { %2483 = vmatprep.mubr.bf16.mxu1 %v4793_v11  ;;  %v2285_v15 = vcvt.s32.f32 %v2278_v29  ;;  %v2162_v18 = vshll.u32 %v4528_v55, 30  ;;  %v2321_v63 = vsub.f32 %v1578_v10, %v2313_v6  ;;  %v2322_v16 = vsub.f32 %v1682_v19, %v2314_v9 }
 0x39a   : > { %v2905_v40 = vpop.eup %2904  ;;  %v2084_v48 = vsel %vm4385_vm9, 0, %v4351_v52  ;;  %vm2205_vm14 = vcmp.lt.s32.totalorder %v4204_v46, 0  ;;  %v1785_v45 = vsel %vm1778_vm8, %v1781_v30, %v1784_v13  ;;  %vm1883_vm2 = vcmp.eq.s32.totalorder %v1881_v59, 0 }
 0x39b   : > { %v1884_v49 = vxor.u32 2147483648, %v4378_v27  ;;  %v2907_v28 = vpop.eup %2906  ;;  %v2286_v54 = vmul.f32 %v2285_v15, %v2283_v20  ;;  %v4543_v25 = vsub.s32 %v2159_v62, %v2162_v18  ;;  %v2329_v57 = vpack.c.bf16 %v2322_v16, %v2321_v63 }
 0x39c   : > { %v1887_v53 = vxor.u32 2147483648, %v4371_v5  ;;  %vm1775_vm10 = vweird.f32 %v4016_v60  ;;  %vm1882_vm4 = vcmp.lt.s32.totalorder %v1881_v59, 2  ;;  %vm1886_vm5 = vcmp.eq.s32.totalorder %v1881_v59, 2 }
 0x39d   : > { %v1885_v17 = vsel %vm1883_vm2, %v4371_v5, %v1884_v49  ;;  %v2165_v52 = vsub.s32 0, %v4543_v25  ;;  %2691 = vmatmul.mubr.msk.bf16.vlgmr.msra.gmra.mxu0 %vm2343_vm13, %v2329_v57  ;;  %v1786_v58 = vsel %vm1775_vm10, nan, %v1785_v45  ;;  %v1985_v61 = vand.u32 3, %v1984_v14 }
 0x39e   : > { %v1888_v32 = vsel %vm1886_vm5, %v1887_v53, %v4378_v27  ;;  %vm1879_vm9 = vweird.f32 %v3935_v51  ;;  %2398 = vmatprep.mubr.bf16.mxu0 %v4793_v11  ;;  %v1988_v2 = vxor.u32 2147483648, %v2907_v28  ;;  %v1991_v37 = vxor.u32 2147483648, %v2905_v40 }
 0x39f   : > { %v1889_v39 = vsel %vm1882_vm4, %v1885_v17, %v1888_v32  ;;  %v2088_v60 = vadd.s32 3, %v2084_v48  ;;  %v2287_v22 = vxor.u32 2147483648, %v2286_v54  ;;  %v2682_v5 = vmin.u32 %v2165_v52, %v4543_v25 }
 0x3a0   : > { %v1890_v26 = vsel %vm1879_vm9, nan, %v1889_v39  ;;  %v2155_v31 = vadd.s32 %v4492_v47, %v4500_v44  ;;  %vm1987_vm7 = vcmp.eq.s32.totalorder %v1985_v61, 0  ;;  %vm1990_vm11 = vcmp.eq.s32.totalorder %v1985_v61, 2 }
 0x3a1   : > { %v2310_v38 = vpack.c.bf16 %v1890_v26, %v1786_v58  ;;  %v2167_v27 = vclz %v2682_v5  ;;  %vm1986_vm15 = vcmp.lt.s32.totalorder %v1985_v61, 2  ;;  %v1989_v12 = vsel %vm1987_vm7, %v2905_v40, %v1988_v2 }
 0x3a2   : > { %v1992_v51 = vsel %vm1990_vm11, %v1991_v37, %v2907_v28  ;;  %vm1983_vm6 = vweird.f32 %v4177_v24  ;;  %v2288_v42 = vsel %vm2205_vm14, %v2287_v22, %v2286_v54  ;;  %v2089_v47 = vand.u32 3, %v2088_v60 }
 0x3a3   : > { %2696 = vmatmul.mubr.msk.bf16.gmra.mxu1 %vm2343_vm13, %v2310_v38  ;;  %v2315_v21 = vunpack.c.l.bf16 %v2310_v38  ;;  %v2316_v1 = vunpack.c.h.bf16 %v2310_v38  ;;  %v1993_v3 = vsel %vm1986_vm15, %v1989_v12, %v1992_v51  ;;  %v2683_v62 = vadd.s32 4294967294, %v2167_v27 }
 0x3a4   : > { %2493 = vmatprep.mubr.bf16.mxu1 %v4793_v11  ;;  %v2092_v44 = vxor.u32 2147483648, %v4489_v7  ;;  %v1994_v34 = vsel %vm1983_vm6, nan, %v1993_v3  ;;  %v2095_v10 = vxor.u32 2147483648, %v4479_v0  ;;  %vm2090_vm12 = vcmp.lt.s32.totalorder %v2089_v47, 2 }
 0x3a5   : > { %v2323_v56 = vsub.f32 %v1786_v58, %v2315_v21  ;;  %v2324_v43 = vsub.f32 %v1890_v26, %v2316_v1  ;;  %vm2684_vm0 = vcmp.lt.s32.totalorder %v2683_v62, 0  ;;  %vm2091_vm3 = vcmp.eq.s32.totalorder %v2089_v47, 0 }
 0x3a6   : > { %vm2094_vm1 = vcmp.eq.s32.totalorder %v2089_v47, 2  ;;  %v2170_v24 = vsel %vm2684_vm0, 0, %v2683_v62  ;;  %v2093_v29 = vsel %vm2091_vm3, %v4479_v0, %v2092_v44  ;;  %vm2087_vm8 = vweird.f32 %v4105_v4 }
 0x3a7   : > { %v2330_v19 = vpack.c.bf16 %v2324_v43, %v2323_v56  ;;  %v2096_v23 = vsel %vm2094_vm1, %v2095_v10, %v4489_v7  ;;  %v2171_v50 = vsub.s32 32, %v2170_v24  ;;  %v2175_v35 = vsub.s32 4294967266, %v2170_v24 }
 0x3a8   : > { %v2097_v33 = vsel %vm2090_vm12, %v2093_v29, %v2096_v23  ;;  %v4794_v30 = vand.u32 2147483647, %v4204_v46  ;;  %v2172_v9 = vshll.u32 %v4543_v25, %v2170_v24  ;;  %v2289_v48 = vsub.s32 4, %v4452_v8 }
 0x3a9   : > { %2692 = vmatmul.mubr.msk.bf16.gmra.mxu0 %vm2343_vm13, %v2330_v19  ;;  %v2098_v6 = vsel %vm2087_vm8, nan, %v2097_v33  ;;  %v2173_v13 = vshrl.u32 %v2155_v31, %v2171_v50  ;;  %v2176_v0 = vadd.s32 127, %v2175_v35  ;;  %vm2101_vm10 = vcmp.lt.s32.totalorder %v4345_v41, 0 }
 0x3aa   : > { %vm4568_vm2 = vcmp.le.f32.partialorder %v4794_v30, 0.7853982  ;;  %v2311_v14 = vpack.c.bf16 %v2098_v6, %v1994_v34  ;;  %2408 = vmatprep.mubr.bf16.mxu0 %v4793_v11  ;;  %v2290_v25 = vsel %vm2205_vm14, %v2289_v48, %v4452_v8  ;;  %v2185_v53 = vsub.s32 4, %v4528_v55 }
 0x3ab   : > { %v2291_v4 = vsel %vm4568_vm2, %v4204_v46, %v2288_v42  ;;  %v2174_v7 = vor.u32 %v2173_v13, %v2172_v9  ;;  %v2177_v20 = vshll.u32 %v2176_v0, 23  ;;  %vm2100_vm4 = vcmp.le.f32.partialorder %v2099_v36, 0.7853982 }
 0x3ac   : > { %2697 = vmatmul.mubr.msk.bf16.gmra.mxu1 %vm2343_vm13, %v2311_v14  ;;  %v2317_v15 = vunpack.c.l.bf16 %v2311_v14  ;;  %v2318_v18 = vunpack.c.h.bf16 %v2311_v14  ;;  %2908 = vcosq.f32 %v2291_v4  ;;  %v2292_v52 = vsel %vm4568_vm2, 0, %v2290_v25 }
 0x3ad   : > { %2503 = vmatprep.mubr.bf16.mxu1 %v4793_v11  ;;  %v2178_v63 = vor.u32 4788187, %v2177_v20  ;;  %2910 = vsinq.f32 %v2291_v4  ;;  %v2181_v49 = vcvt.s32.f32 %v2174_v7  ;;  %v2296_v32 = vadd.s32 3, %v2292_v52 }
 0x3ae   : > { %v2325_v16 = vsub.f32 %v1994_v34, %v2317_v15  ;;  %v2326_v40 = vsub.f32 %v2098_v6, %v2318_v18  ;;  %vm2295_vm15 = vweird.f32 %v4204_v46  ;;  %vm2191_vm0 = vweird.f32 %v4345_v41 }
 0x3af   : > { %v2179_v45 = vand.u32 2147483647, %v2178_v63  ;;  %v2297_v2 = vand.u32 3, %v2296_v32 }
 0x3b0   : > { %v2331_v28 = vpack.c.bf16 %v2326_v40, %v2325_v16 }
 0x3b1   : > { %v2182_v54 = vmul.f32 %v2181_v49, %v2179_v45  ;;  %vm2299_vm14 = vcmp.eq.s32.totalorder %v2297_v2, 0  ;;  %vm2302_vm5 = vcmp.eq.s32.totalorder %v2297_v2, 2  ;;  %vm2298_vm9 = vcmp.lt.s32.totalorder %v2297_v2, 2 }
 0x3b2   : > { %2693 = vmatmul.mubr.msk.bf16.gmra.mxu0 %vm2343_vm13, %v2331_v28 }
 0x3b3   : > { %2418 = vmatprep.mubr.bf16.mxu0 %v4793_v11  ;;  %v2183_v57 = vxor.u32 2147483648, %v2182_v54  ;;  %v2186_v11 = vsel %vm2101_vm10, %v2185_v53, %v4528_v55 }
 0x3b4   : > { %v2188_v39 = vsel %vm2100_vm4, 0, %v2186_v11 }
 0x3b5   : > { %v2184_v17 = vsel %vm2101_vm10, %v2183_v57, %v2182_v54  ;;  %v2192_v37 = vadd.s32 3, %v2188_v39 }
 0x3b6   : > { %v2187_v58 = vsel %vm2100_vm4, %v4345_v41, %v2184_v17 }
 0x3b7   : > { %2912 = vcosq.f32 %v2187_v58  ;;  %v2193_v36 = vand.u32 3, %v2192_v37 }
 0x3b8   : > { %2914 = vsinq.f32 %v2187_v58 }
 0x3b9   : > { %v2909_v8 = vpop.eup %2908  ;;  %vm2198_vm7 = vcmp.eq.s32.totalorder %v2193_v36, 2  ;;  %vm2195_vm11 = vcmp.eq.s32.totalorder %v2193_v36, 0  ;;  %vm2194_vm6 = vcmp.lt.s32.totalorder %v2193_v36, 2 }
 0x3ba   : > { %v2911_v61 = vpop.eup %2910  ;;  %v2303_v22 = vxor.u32 2147483648, %v2909_v8 }
 0x3bb   : > { %v2300_v60 = vxor.u32 2147483648, %v2911_v61 }
 0x3bc   : > { %v2304_v26 = vsel %vm2302_vm5, %v2303_v22, %v2911_v61 }
 0x3bd   : > { %v2301_v5 = vsel %vm2299_vm14, %v2909_v8, %v2300_v60 }
 0x3be   : > { %v2305_v12 = vsel %vm2298_vm9, %v2301_v5, %v2304_v26 }
 0x3bf   : > { %v2306_v1 = vsel %vm2295_vm15, nan, %v2305_v12 }
 0x3c4   : > { %v2913_v31 = vpop.eup %2912 }
 0x3c5   : > { %v2915_v38 = vpop.eup %2914  ;;  %v2199_v27 = vxor.u32 2147483648, %v2913_v31 }
 0x3c6   : > { %v2196_v55 = vxor.u32 2147483648, %v2915_v38 }
 0x3c7   : > { %v2200_v51 = vsel %vm2198_vm7, %v2199_v27, %v2915_v38 }
 0x3c8   : > { %v2197_v21 = vsel %vm2195_vm11, %v2913_v31, %v2196_v55 }
 0x3c9   : > { %v2201_v3 = vsel %vm2194_vm6, %v2197_v21, %v2200_v51 }
 0x3ca   : > { %v2202_v42 = vsel %vm2191_vm0, nan, %v2201_v3 }
 0x3cb   : > { %v2312_v62 = vpack.c.bf16 %v2306_v1, %v2202_v42 }
 0x3cd   : > { %2698 = vmatmul.mubr.msk.bf16.gmra.mxu1 %vm2343_vm13, %v2312_v62  ;;  %v2319_v47 = vunpack.c.l.bf16 %v2312_v62  ;;  %v2320_v44 = vunpack.c.h.bf16 %v2312_v62 }
 0x3cf   : > { %v2327_v56 = vsub.f32 %v2202_v42, %v2319_v47  ;;  %v2328_v43 = vsub.f32 %v2306_v1, %v2320_v44 }
 0x3d1   : > { %v2332_v34 = vpack.c.bf16 %v2328_v43, %v2327_v56 }
 0x3d3   : > { %2694 = vmatmul.mubr.msk.bf16.gmra.mxu0 %vm2343_vm13, %v2332_v34 }
 0x457   : > { %v2475_v46 = vpop.f32.mrf.mxu1 }
 0x459   : > { %v2477_v10 = vpop.f32.mrf.mxu1 }
 0x45b   : > { %v2479_v24 = vpop.f32.mrf.mxu1 }
 0x45d   : > { %v2390_v41 = vpop.f32.mrf.mxu0  ;;  %v2481_v29 = vpop.f32.mrf.mxu1 }
 0x45e   : > { %v2476_v19 = vadd.f32 %v2475_v46, %v2390_v41 }
 0x45f   : > { %v2392_v23 = vpop.f32.mrf.mxu0 }
 0x460   : > { %2514 = vst [vmem:[%s3174_s8] sm:$0xff] %v2476_v19  ;;  %v2478_v50 = vadd.f32 %v2477_v10, %v2392_v23 }
 0x461   : > { %v2394_v35 = vpop.f32.mrf.mxu0 }
 0x462   : > { %2515 = vst [vmem:[%s3174_s8 + $0x8] sm:$0xff] %v2478_v50  ;;  %v2480_v30 = vadd.f32 %v2479_v24, %v2394_v35 }
 0x463   : > { %v2485_v33 = vpop.f32.mrf.mxu1  ;;  %v2396_v59 = vpop.f32.mrf.mxu0 }
 0x464   : > { %2516 = vst [vmem:[%s3174_s8 + $0x10] sm:$0xff] %v2480_v30  ;;  %v2482_v9 = vadd.f32 %v2481_v29, %v2396_v59 }
 0x465   : > { %v2487_v6 = vpop.f32.mrf.mxu1 }
 0x466   : > { %2517 = vst [vmem:[%s3174_s8 + $0x18] sm:$0xff] %v2482_v9 }
 0x467   : > { %v2489_v13 = vpop.f32.mrf.mxu1 }
 0x469   : > { %v2400_v0 = vpop.f32.mrf.mxu0  ;;  %v2491_v14 = vpop.f32.mrf.mxu1 }
 0x46a   : > { %v2486_v4 = vadd.f32 %v2485_v33, %v2400_v0 }
 0x46b   : > { %v2402_v7 = vpop.f32.mrf.mxu0 }
 0x46c   : > { %2518 = vst [vmem:[%s3174_s8 + $0x20] sm:$0xff] %v2486_v4  ;;  %v2488_v20 = vadd.f32 %v2487_v6, %v2402_v7  ;;  %v2495_v15 = vpop.f32.mrf.mxu1 }
 0x46d   : > { %v2404_v18 = vpop.f32.mrf.mxu0 }
 0x46e   : > { %2519 = vst [vmem:[%s3174_s8 + $0x28] sm:$0xff] %v2488_v20  ;;  %v2490_v63 = vadd.f32 %v2489_v13, %v2404_v18  ;;  %v2497_v40 = vpop.f32.mrf.mxu1 }
 0x46f   : > { %v2406_v16 = vpop.f32.mrf.mxu0 }
 0x470   : > { %2520 = vst [vmem:[%s3174_s8 + $0x30] sm:$0xff] %v2490_v63  ;;  %v2492_v48 = vadd.f32 %v2491_v14, %v2406_v16  ;;  %v2499_v28 = vpop.f32.mrf.mxu1 }
 0x472   : > { %2521 = vst [vmem:[%s3174_s8 + $0x38] sm:$0xff] %v2492_v48  ;;  %v2410_v45 = vpop.f32.mrf.mxu0  ;;  %v2501_v17 = vpop.f32.mrf.mxu1 }
 0x473   : > { %v2496_v49 = vadd.f32 %v2495_v15, %v2410_v45 }
 0x474   : > { %v2412_v54 = vpop.f32.mrf.mxu0 }
 0x475   : > { %2522 = vst [vmem:[%s3174_s8 + $0x40] sm:$0xff] %v2496_v49  ;;  %v2498_v25 = vadd.f32 %v2497_v40, %v2412_v54 }
 0x476   : > { %v2414_v57 = vpop.f32.mrf.mxu0 }
 0x477   : > { %2523 = vst [vmem:[%s3174_s8 + $0x48] sm:$0xff] %v2498_v25  ;;  %v2500_v53 = vadd.f32 %v2499_v28, %v2414_v57 }
 0x478   : > { %v2416_v52 = vpop.f32.mrf.mxu0 }
 0x479   : > { %2524 = vst [vmem:[%s3174_s8 + $0x50] sm:$0xff] %v2500_v53  ;;  %v2502_v58 = vadd.f32 %v2501_v17, %v2416_v52 }
 0x47b   : > { %2525 = vst [vmem:[%s3174_s8 + $0x58] sm:$0xff] %v2502_v58 }
 0x48d   : > { %v2505_v11 = vpop.f32.mrf.mxu1 }
 0x48f   : > { %v2507_v32 = vpop.f32.mrf.mxu1 }
 0x491   : > { %v2509_v39 = vpop.f32.mrf.mxu1 }
 0x493   : > { %v2420_v8 = vpop.f32.mrf.mxu0  ;;  %v2511_v36 = vpop.f32.mrf.mxu1 }
 0x494   : > { %v2506_v61 = vadd.f32 %v2505_v11, %v2420_v8 }
 0x495   : > { %v2422_v2 = vpop.f32.mrf.mxu0 }
 0x496   : > { %2526 = vst [vmem:[%s3174_s8 + $0x60] sm:$0xff] %v2506_v61  ;;  %v2508_v37 = vadd.f32 %v2507_v32, %v2422_v2 }
 0x497   : > { %v2424_v60 = vpop.f32.mrf.mxu0 }
 0x498   : > { %2527 = vst [vmem:[%s3174_s8 + $0x68] sm:$0xff] %v2508_v37  ;;  %v2510_v22 = vadd.f32 %v2509_v39, %v2424_v60 }
 0x499   : > { %v2426_v5 = vpop.f32.mrf.mxu0 }
 0x49a   : > { %2528 = vst [vmem:[%s3174_s8 + $0x70] sm:$0xff] %v2510_v22  ;;  %v2512_v26 = vadd.f32 %v2511_v36, %v2426_v5 }
 0x49c   : > { %2529 = vst [vmem:[%s3174_s8 + $0x78] sm:$0xff] %v2512_v26 }
 0x49d PF: > { %s2706_s24 = sshll.u32 %s2984_s18, 11  ;;  %s2547_s6 = sshll.u32 %s3174_s8, 4  ;;  %s4621_s6 = int_to_ptr.vmem [resolvable:$true] %s2547_s6 }
 0x49e   : > { %s4618_s5 = scalar_lea.hbm %s4674_s4, %s2706_s24  ;;  %s4625_s7 = scalar_lea.sflag [#allocation3], %s187_s29 }
 0x49f   : > { %s2916_s10 = scalar_lea.vmem %s4621_s6, 2048  ;;  %s3008_s18 = smov [#allocation2]  }
 0x4a0   : > { %p2917_p13 = scmp.ne.s32.totalorder %s4621_s6, %s2916_s10  ;;  %s2920_s9 = sshll.u32 %s3008_s18, 4  ;;  %s2921_s9 = int_to_ptr.vmem [resolvable:$false] %s2920_s9 }
 0x4a1   : > { %s2922_s11 = scalar_lea.vmem %s2921_s9, 4096  ;;  %p2923_p2 = scmp.lt.s32.totalorder %s4621_s6, %s2921_s9 }
 0x4a2   : > { %p2918_p0 = pnand %p2917_p13, %p3076_p4  ;;  %p2924_p3 = scmp.lt.s32.totalorder %s2922_s11, %s2916_s10 }
 0x4a4   : > { %p2919_p1 = pneg %p2918_p0  ;;  %p2925_p5 = por %p2924_p3, %p2923_p2 }
 0x4a6   : > { %p2926_p6 = pnand %p2925_p5, %p2919_p1 }
 0x4a8   : > { %2929 = shalt.err (!%p2926_p6)
}
 0x4a9   : > { %s2930_s29 = scalar_lea.hbm %s4618_s5, 2048  ;;  %s2934_s13 = scalar_lea.hbm %s4674_s4, 4096 }
 0x4aa   : > { %p2931_p7 = scmp.ne.s32.totalorder %s4618_s5, %s2930_s29  ;;  %p2935_p11 = scmp.lt.s32.totalorder %s4618_s5, %s4674_s4 }
 0x4ab   : > { %p2936_p12 = scmp.lt.s32.totalorder %s2934_s13, %s2930_s29 }
 0x4ac   : > { %p2932_p9 = pnand %p2931_p7, %p3076_p4 }
 0x4ad   : > { %p2937_p13 = por %p2936_p12, %p2935_p11 }
 0x4ae   : > { %p2933_p10 = pneg %p2932_p9 }
 0x4b0   : > { %p2938_p0 = pnand %p2937_p13, %p2933_p10 }
 0x4b2   : > { %2941 = shalt.err (!%p2938_p0)
}
 0x4b3   : > { %s3009_s22 = smov 256   ;;  %s3010_s24 = smov 16  }
 0x4b4   : > { %2771 = dma.vmem_to_hbm [thread:$0]  (%p3076_p4), %s4621_s6, 2048, %s4618_s5, %s4625_s7, %s3009_s22, %s3009_s22, %s3010_s24  }
 0x4b5 PF: > { %p2777_p1 = scmp.ge.s32.totalorder %s2992_s20, 2  ;;  %s2562_s26 = sand.u32 1, %s2972_s15  }
 0x4b6   : > { %s2563_s30 = scalar_lea.sflag [#allocation3], %s2562_s26 }
 0x4b7   : > { %p2774_p2 = pnand %p2777_p1, %p3083_p8 }
 0x4b9   : > { %p2775_p3 = pneg %p2774_p2 }
 0x4bb   : > { %2967 = dma.done.wait (%p2775_p3), %s2563_s30, 2048  }
 0x4bc   : > { %2969 = vsyncadd (%p2775_p3), %s2563_s30, 4294965248  ;;  %s17_s20 = sadd.s32 1, %s2992_s20   ;;  %s4797_s15 = smov %s2976_s16 }
 0x4bd   : > { %p14_p5 = scmp.ge.s32.totalorder %s17_s20, 4   ;;  %s4798_s16 = smov %s2980_s17 }
 0x4be   : > { %s4799_s17 = smov %s3089_s28  ;;  %s4800_s18 = smov %s2988_s19 }
 0x4bf   : > { %s4801_s19 = smov %s4803_s23  ;;  %16 = sbr.rel (!%p14_p5) target bundleno = 4 (0x4), region = 76 }
 0x4c4   :  { %2568 = vsyncpa [#allocation3], 1 }
 0x4c5   :  { %2570 = vsyncpa [#allocation3 + $0x1], 1 }

</bundles_post_ra>
